<compile_context>
chip_gen: v7x
topology: tpu7x:2x2x1
jax: 0.10.0
libtpu: 0.0.40
codegen_flags: <defaults>
</compile_context>

<pallas_src>
import functools

import jax
import jax.numpy as jnp
from jax.experimental import pallas as pl
from jax.experimental.pallas import tpu as pltpu


# (kd-1, kh-1, kw-1) offsets, in the same order as the weight reshape below.
_TAP_OFFSETS = [(dd, dh, dw)
                for dd in (-1, 0, 1) for dh in (-1, 0, 1) for dw in (-1, 0, 1)]


# ----------------------------------------------------------------------------
# Small host-side helpers (run under jit; O(C) / O(L) work only).
# ----------------------------------------------------------------------------
def _round_up(n, m):
    return ((n + m - 1) // m) * m


def _pad_axis_to(a, axis, size):
    if a.shape[axis] == size:
        return a
    pad = [(0, 0)] * a.ndim
    pad[axis] = (0, size - a.shape[axis])
    return jnp.pad(a, pad)


def _build_tap_masks(D, H, W):
    """(27, D*H*W) f32 0/1 masks: tap t is valid at output position l."""
    d = jnp.arange(D)[:, None, None]
    h = jnp.arange(H)[None, :, None]
    w = jnp.arange(W)[None, None, :]
    masks = []
    for dd, dh, dw in _TAP_OFFSETS:
        m = ((d + dd >= 0) & (d + dd < D) &
             (h + dh >= 0) & (h + dh < H) &
             (w + dw >= 0) & (w + dw < W))
        masks.append(jnp.broadcast_to(m, (D, H, W)).reshape(-1))
    return jnp.stack(masks, axis=0).astype(jnp.float32)


def _w_to_mat(w, cin_pad):
    """(3,3,3,Cin,Cout) -> (Cout, 27*cin_pad) bf16, rows t*cin_pad + ci."""
    kd, kh, kw, cin, cout = w.shape
    wp = _pad_axis_to(w, 3, cin_pad)                 # zero taps for pad channels
    return wp.reshape(kd * kh * kw * cin_pad, cout).T.astype(jnp.bfloat16)


def _bn_fold(mu, m2, gamma, beta, count, eps=1e-5):
    """Chan/Welford combine of per-block (mean, M2) -> folded BN scale/shift.

    mu, m2: (Nblk, C, 1); count = elements per block.  Biased variance, matching
    PyTorch training-mode normalization.  Avoids the E[x^2]-E[x]^2 cancellation.
    """
    nblk = mu.shape[0]
    mean = jnp.mean(mu, axis=0)                                   # (C, 1)
    m2t = jnp.sum(m2, axis=0) + count * jnp.sum((mu - mean) ** 2, axis=0)
    var = m2t / (nblk * count)
    scale = gamma.reshape(-1, 1) * jax.lax.rsqrt(var + eps)
    shift = beta.reshape(-1, 1) - mean * scale
    return scale, shift


# ----------------------------------------------------------------------------
# Kernel 1/2: [optional folded-BN + ReLU] -> 3x3x3 "same" conv as a single
# im2col matmul -> per-block Welford stats.  One batch item per grid step.
# ----------------------------------------------------------------------------
def _conv3x3x3_kernel(*refs, H, W, apply_bn):
    if apply_bn:
        x_ref, sc_ref, sh_ref, m_ref, w_ref, y_ref, mu_ref, m2_ref = refs
    else:
        x_ref, m_ref, w_ref, y_ref, mu_ref, m2_ref = refs

    x = x_ref[0]                                     # (Cp, L) f32, lane-dense
    if apply_bn:                                     # fused BN+ReLU prologue
        x = jnp.maximum(x * sc_ref[...] + sh_ref[...], 0.0)

    L = x.shape[1]
    # Build the (27*Cp, L) im2col: each tap is a static lane roll of the
    # flattened spatial axis, with boundary positions zeroed by a precomputed
    # 0/1 mask (this is the in-kernel "same" padding -- no padded HBM copy).
    # The roll uses the XLU slot, the mask-mul the VALU slot, both hidden
    # under the MXU contraction below.  Casting each (Cp, L) tap to bf16
    # before the concat is bit-exact (masks are 0/1) and halves the peak
    # VMEM / layout cost of the (27*Cp, L) column buffer.
    cols = []
    for t, (dd, dh, dw) in enumerate(_TAP_OFFSETS):
        off = dd * H * W + dh * W + dw
        shifted = x if off == 0 else jnp.roll(x, -off, axis=1)
        cols.append((shifted * m_ref[pl.ds(t, 1), :]).astype(jnp.bfloat16))
    col = jnp.concatenate(cols, axis=0)                           # (27*Cp, L) bf16

    # One MXU contraction: K = 27*Cp (108/216) instead of 27 tiny K=Cin dots;
    # bf16 operands, f32 accumulation; output (Cout, L) is lane-dense.
    y = jnp.dot(w_ref[...], col, preferred_element_type=jnp.float32)
    y_ref[0] = y

    # Per-block Welford stats (combined across blocks on the host), computed
    # on the f32 accumulator while it is still resident in vregs/VMEM.
    mu = jnp.sum(y, axis=1, keepdims=True) * (1.0 / L)            # (Cout, 1)
    d = y - mu
    mu_ref[0] = mu
    m2_ref[0] = jnp.sum(d * d, axis=1, keepdims=True)


def _conv_layer(x, masks, w_mat, scale, shift, *, H, W):
    """x: (N, Cp, L) f32; w_mat: (Cout, 27*Cp) bf16; scale/shift: (Cp, 1) or None.

    Returns y (N, Cout, L) f32 and per-item stats mu, m2 of shape (N, Cout, 1).
    """
    N, Cp, L = x.shape
    Cout = w_mat.shape[0]
    apply_bn = scale is not None

    in_specs = [pl.BlockSpec((1, Cp, L), lambda n: (n, 0, 0))]
    args = [x]
    if apply_bn:
        in_specs += [pl.BlockSpec((Cp, 1), lambda n: (0, 0)),
                     pl.BlockSpec((Cp, 1), lambda n: (0, 0))]
        args += [scale, shift]
    # Constant index_maps: the pipeline does not re-fetch masks/weights when
    # the block index is unchanged between consecutive grid steps.
    in_specs += [pl.BlockSpec((27, L), lambda n: (0, 0)),
                 pl.BlockSpec((Cout, 27 * Cp), lambda n: (0, 0))]
    args += [masks, w_mat]

    kern = functools.partial(_conv3x3x3_kernel, H=H, W=W, apply_bn=apply_bn)

    # TODO(synk): for large volumes (v7x: 64 MiB VMEM) additionally tile the
    # grid over D (2-plane halo) and add it as a second "parallel" axis, and
    # keep the intermediate activation in bf16 to halve HBM traffic.
    return pl.pallas_call(
        kern,
        out_shape=(jax.ShapeDtypeStruct((N, Cout, L), jnp.float32),
                   jax.ShapeDtypeStruct((N, Cout, 1), jnp.float32),
                   jax.ShapeDtypeStruct((N, Cout, 1), jnp.float32)),
        grid=(N,),
        in_specs=in_specs,
        out_specs=(pl.BlockSpec((1, Cout, L), lambda n: (n, 0, 0)),
                   pl.BlockSpec((1, Cout, 1), lambda n: (n, 0, 0)),
                   pl.BlockSpec((1, Cout, 1), lambda n: (n, 0, 0))),
        compiler_params=pltpu.CompilerParams(
            dimension_semantics=("parallel",),
            vmem_limit_bytes=32 * 1024 * 1024),
    )(*args)


# ----------------------------------------------------------------------------
# Kernel 3: final folded BN + ReLU, elementwise on lane-dense (C, L) blocks,
# aliased in place over the conv2 output (no extra HBM allocation).
# ----------------------------------------------------------------------------
def _bn_relu_kernel(x_ref, sc_ref, sh_ref, o_ref):
    o_ref[0] = jnp.maximum(x_ref[0] * sc_ref[...] + sh_ref[...], 0.0)


def _bn_relu(y, scale, shift):
    N, C, L = y.shape
    return pl.pallas_call(
        _bn_relu_kernel,
        out_shape=jax.ShapeDtypeStruct((N, C, L), jnp.float32),
        grid=(N,),
        in_specs=[pl.BlockSpec((1, C, L), lambda n: (n, 0, 0)),
                  pl.BlockSpec((C, 1), lambda n: (0, 0)),
                  pl.BlockSpec((C, 1), lambda n: (0, 0))],
        out_specs=pl.BlockSpec((1, C, L), lambda n: (n, 0, 0)),
        input_output_aliases={0: 0},          # in-place over y2 (P8)
        compiler_params=pltpu.CompilerParams(
            dimension_semantics=("parallel",),
            vmem_limit_bytes=32 * 1024 * 1024),
    )(y, scale, shift)


# ----------------------------------------------------------------------------
# Module forward: NCDHW in -> NCDHW out (no transposes, only free reshapes).
# ----------------------------------------------------------------------------
def conv_block_forward(x_ncdhw, params, eps=1e-5):
    N, Cin, D, H, W = x_ncdhw.shape
    Cout = params["w1"].shape[-1]
    L = D * H * W
    masks = _build_tap_masks(D, H, W)                 # (27, L) f32 boundary masks

    x = x_ncdhw.reshape(N, Cin, L)                    # free: DHW already contiguous
    cin_p = _round_up(Cin, 8)                         # sublane-align channels
    x = _pad_axis_to(x, 1, cin_p)
    w1m = _w_to_mat(params["w1"], cin_p)

    # Layer 1: conv1 + stats (conv bias dropped: cancelled by training-mode BN).
    y1, mu1, m21 = _conv_layer(x, masks, w1m, None, None, H=H, W=W)
    sc1, sh1 = _bn_fold(mu1, m21, params["g1"], params["beta1"], L, eps)

    # Layer 2: BN1 + ReLU fused into conv2's prologue, + stats of conv2 output.
    cmid_p = _round_up(Cout, 8)
    y1p = _pad_axis_to(y1, 1, cmid_p)
    sc1p = _pad_axis_to(sc1, 0, cmid_p)
    sh1p = _pad_axis_to(sh1, 0, cmid_p)
    w2m = _w_to_mat(params["w2"], cmid_p)
    y2, mu2, m22 = _conv_layer(y1p, masks, w2m, sc1p, sh1p, H=H, W=W)
    sc2, sh2 = _bn_fold(mu2, m22, params["g2"], params["beta2"], L, eps)

    # Layer 3: final BN2 + ReLU, in place over y2.
    out = _bn_relu(y2, sc2, sh2)
    return out.reshape(N, Cout, D, H, W)


# ----------------------------------------------------------------------------
# Pure-JAX reference (PyTorch semantics).  conv_dtype=bf16 gives a
# precision-matched reference for a tight structural check.
# ----------------------------------------------------------------------------
def _ref_conv(x, w, b, conv_dtype):
    y = jax.lax.conv_general_dilated(
        x.astype(conv_dtype), w.astype(conv_dtype),
        window_strides=(1, 1, 1), padding=[(1, 1)] * 3,
        dimension_numbers=("NCDHW", "DHWIO", "NCDHW"),
        preferred_element_type=jnp.float32)
    return y + b.reshape(1, -1, 1, 1, 1)


def _ref_bn_relu(y, g, be, eps):
    mean = y.mean(axis=(0, 2, 3, 4), keepdims=True)
    var = ((y - mean) ** 2).mean(axis=(0, 2, 3, 4), keepdims=True)
    yn = (y - mean) * jax.lax.rsqrt(var + eps)
    return jnp.maximum(yn * g.reshape(1, -1, 1, 1, 1)
                       + be.reshape(1, -1, 1, 1, 1), 0.0)


def ref_forward(x, params, eps=1e-5, conv_dtype=jnp.float32):
    y1 = _ref_bn_relu(_ref_conv(x, params["w1"], params["b1"], conv_dtype),
                      params["g1"], params["beta1"], eps)
    y2 = _ref_bn_relu(_ref_conv(y1, params["w2"], params["b2"], conv_dtype),
                      params["g2"], params["beta2"], eps)
    return y2


# ----------------------------------------------------------------------------
# Main
# ----------------------------------------------------------------------------
if __name__ == "__main__":
    N, Cin, Cout = 2, 4, 8
    D = H = W = 8

    key = jax.random.PRNGKey(0)
    kx, kw1, kb1, kw2, kb2 = jax.random.split(key, 5)

    x = jax.random.normal(kx, (N, Cin, D, H, W), jnp.float32)    # NCDHW (PyTorch)

    bound1 = 1.0 / (Cin * 27) ** 0.5
    bound2 = 1.0 / (Cout * 27) ** 0.5
    params = {
        "w1": jax.random.uniform(kw1, (3, 3, 3, Cin, Cout), jnp.float32,
                                 -bound1, bound1),
        "b1": jax.random.uniform(kb1, (Cout,), jnp.float32, -bound1, bound1),
        "g1": jnp.ones((Cout,), jnp.float32),
        "beta1": jnp.zeros((Cout,), jnp.float32),
        "w2": jax.random.uniform(kw2, (3, 3, 3, Cout, Cout), jnp.float32,
                                 -bound2, bound2),
        "b2": jax.random.uniform(kb2, (Cout,), jnp.float32, -bound2, bound2),
        "g2": jnp.ones((Cout,), jnp.float32),
        "beta2": jnp.zeros((Cout,), jnp.float32),
    }

    out = jax.block_until_ready(jax.jit(conv_block_forward)(x, params))

    ref_bf16 = ref_forward(x, params, conv_dtype=jnp.bfloat16)   # precision-matched
    ref_f32 = ref_forward(x, params, conv_dtype=jnp.float32)     # exact f32 math

    assert out.shape == (N, Cout, D, H, W), out.shape
    err_struct = float(jnp.max(jnp.abs(out - ref_bf16)))
    err_full = float(jnp.max(jnp.abs(out - ref_f32)))
    assert err_struct < 1e-2, f"vs bf16-matched reference: {err_struct}"
    assert err_full < 1e-1, f"vs f32 reference: {err_full}"
    print("KERNEL_OK")
</pallas_src>

<mosaic_0001>
module attributes {stable_mosaic.version = 11 : i64} {
  func.func @_conv3x3x3_kernel(%arg0: i32, %arg1: memref<1x8x512xf32, #tpu.memory_space<vmem>>, %arg2: memref<27x512xf32, #tpu.memory_space<vmem>>, %arg3: memref<8x216xbf16, #tpu.memory_space<vmem>>, %arg4: memref<1x8x512xf32, #tpu.memory_space<vmem>>, %arg5: memref<1x8x1xf32, #tpu.memory_space<vmem>>, %arg6: memref<1x8x1xf32, #tpu.memory_space<vmem>>) attributes {dimension_semantics = [#tpu.dimension_semantics<parallel>], iteration_bounds = array<i64: 2>, scalar_prefetch = 0 : i64, scratch_operands = 0 : i64, tpu.core_type = #tpu.core_type<tc>, window_params = [{transform_indices = @transform_0, window_bounds = array<i64: 1, 8, 512>}, {pipeline_mode = #tpu.pipeline_mode<synchronous>, transform_indices = @transform_1, window_bounds = array<i64: 27, 512>}, {pipeline_mode = #tpu.pipeline_mode<synchronous>, transform_indices = @transform_2, window_bounds = array<i64: 8, 216>}, {transform_indices = @transform_3, window_bounds = array<i64: 1, 8, 512>}, {transform_indices = @transform_4, window_bounds = array<i64: 1, 8, 1>}, {transform_indices = @transform_5, window_bounds = array<i64: 1, 8, 1>}]} {
    %c0 = arith.constant 0 : index
    %c0_0 = arith.constant 0 : index
    %c0_1 = arith.constant 0 : index
    %0 = vector.load %arg1[%c0, %c0_0, %c0_1] : memref<1x8x512xf32, #tpu.memory_space<vmem>>, vector<1x8x512xf32>
    %1 = vector.shape_cast %0 : vector<1x8x512xf32> to vector<8x512xf32>
    %2 = vector.extract_strided_slice %1 {offsets = [0, 439], sizes = [8, 73], strides = [1, 1]} : vector<8x512xf32> to vector<8x73xf32>
    %3 = vector.extract_strided_slice %1 {offsets = [0, 0], sizes = [8, 439], strides = [1, 1]} : vector<8x512xf32> to vector<8x439xf32>
    %4 = tpu.concatenate %2, %3 in 1 : vector<8x73xf32>, vector<8x439xf32> -> vector<8x512xf32>
    %c0_2 = arith.constant 0 : index
    %c0_3 = arith.constant 0 : index
    %5 = vector.load %arg2[%c0_2, %c0_3] : memref<27x512xf32, #tpu.memory_space<vmem>>, vector<1x512xf32>
    %6 = vector.broadcast %5 : vector<1x512xf32> to vector<8x512xf32>
    %7 = arith.mulf %4, %6 : vector<8x512xf32>
    %8 = arith.truncf %7 : vector<8x512xf32> to vector<8x512xbf16>
    %9 = vector.extract_strided_slice %1 {offsets = [0, 440], sizes = [8, 72], strides = [1, 1]} : vector<8x512xf32> to vector<8x72xf32>
    %10 = vector.extract_strided_slice %1 {offsets = [0, 0], sizes = [8, 440], strides = [1, 1]} : vector<8x512xf32> to vector<8x440xf32>
    %11 = tpu.concatenate %9, %10 in 1 : vector<8x72xf32>, vector<8x440xf32> -> vector<8x512xf32>
    %c1 = arith.constant 1 : index
    %c0_4 = arith.constant 0 : index
    %12 = vector.load %arg2[%c1, %c0_4] : memref<27x512xf32, #tpu.memory_space<vmem>>, vector<1x512xf32>
    %13 = vector.broadcast %12 : vector<1x512xf32> to vector<8x512xf32>
    %14 = arith.mulf %11, %13 : vector<8x512xf32>
    %15 = arith.truncf %14 : vector<8x512xf32> to vector<8x512xbf16>
    %16 = vector.extract_strided_slice %1 {offsets = [0, 441], sizes = [8, 71], strides = [1, 1]} : vector<8x512xf32> to vector<8x71xf32>
    %17 = vector.extract_strided_slice %1 {offsets = [0, 0], sizes = [8, 441], strides = [1, 1]} : vector<8x512xf32> to vector<8x441xf32>
    %18 = tpu.concatenate %16, %17 in 1 : vector<8x71xf32>, vector<8x441xf32> -> vector<8x512xf32>
    %c2 = arith.constant 2 : index
    %c0_5 = arith.constant 0 : index
    %19 = vector.load %arg2[%c2, %c0_5] : memref<27x512xf32, #tpu.memory_space<vmem>>, vector<1x512xf32>
    %20 = vector.broadcast %19 : vector<1x512xf32> to vector<8x512xf32>
    %21 = arith.mulf %18, %20 : vector<8x512xf32>
    %22 = arith.truncf %21 : vector<8x512xf32> to vector<8x512xbf16>
    %23 = vector.extract_strided_slice %1 {offsets = [0, 447], sizes = [8, 65], strides = [1, 1]} : vector<8x512xf32> to vector<8x65xf32>
    %24 = vector.extract_strided_slice %1 {offsets = [0, 0], sizes = [8, 447], strides = [1, 1]} : vector<8x512xf32> to vector<8x447xf32>
    %25 = tpu.concatenate %23, %24 in 1 : vector<8x65xf32>, vector<8x447xf32> -> vector<8x512xf32>
    %c3 = arith.constant 3 : index
    %c0_6 = arith.constant 0 : index
    %26 = vector.load %arg2[%c3, %c0_6] : memref<27x512xf32, #tpu.memory_space<vmem>>, vector<1x512xf32>
    %27 = vector.broadcast %26 : vector<1x512xf32> to vector<8x512xf32>
    %28 = arith.mulf %25, %27 : vector<8x512xf32>
    %29 = arith.truncf %28 : vector<8x512xf32> to vector<8x512xbf16>
    %30 = vector.extract_strided_slice %1 {offsets = [0, 448], sizes = [8, 64], strides = [1, 1]} : vector<8x512xf32> to vector<8x64xf32>
    %31 = vector.extract_strided_slice %1 {offsets = [0, 0], sizes = [8, 448], strides = [1, 1]} : vector<8x512xf32> to vector<8x448xf32>
    %32 = tpu.concatenate %30, %31 in 1 : vector<8x64xf32>, vector<8x448xf32> -> vector<8x512xf32>
    %c4 = arith.constant 4 : index
    %c0_7 = arith.constant 0 : index
    %33 = vector.load %arg2[%c4, %c0_7] : memref<27x512xf32, #tpu.memory_space<vmem>>, vector<1x512xf32>
    %34 = vector.broadcast %33 : vector<1x512xf32> to vector<8x512xf32>
    %35 = arith.mulf %32, %34 : vector<8x512xf32>
    %36 = arith.truncf %35 : vector<8x512xf32> to vector<8x512xbf16>
    %37 = vector.extract_strided_slice %1 {offsets = [0, 449], sizes = [8, 63], strides = [1, 1]} : vector<8x512xf32> to vector<8x63xf32>
    %38 = vector.extract_strided_slice %1 {offsets = [0, 0], sizes = [8, 449], strides = [1, 1]} : vector<8x512xf32> to vector<8x449xf32>
    %39 = tpu.concatenate %37, %38 in 1 : vector<8x63xf32>, vector<8x449xf32> -> vector<8x512xf32>
    %c5 = arith.constant 5 : index
    %c0_8 = arith.constant 0 : index
    %40 = vector.load %arg2[%c5, %c0_8] : memref<27x512xf32, #tpu.memory_space<vmem>>, vector<1x512xf32>
    %41 = vector.broadcast %40 : vector<1x512xf32> to vector<8x512xf32>
    %42 = arith.mulf %39, %41 : vector<8x512xf32>
    %43 = arith.truncf %42 : vector<8x512xf32> to vector<8x512xbf16>
    %44 = vector.extract_strided_slice %1 {offsets = [0, 455], sizes = [8, 57], strides = [1, 1]} : vector<8x512xf32> to vector<8x57xf32>
    %45 = vector.extract_strided_slice %1 {offsets = [0, 0], sizes = [8, 455], strides = [1, 1]} : vector<8x512xf32> to vector<8x455xf32>
    %46 = tpu.concatenate %44, %45 in 1 : vector<8x57xf32>, vector<8x455xf32> -> vector<8x512xf32>
    %c6 = arith.constant 6 : index
    %c0_9 = arith.constant 0 : index
    %47 = vector.load %arg2[%c6, %c0_9] : memref<27x512xf32, #tpu.memory_space<vmem>>, vector<1x512xf32>
    %48 = vector.broadcast %47 : vector<1x512xf32> to vector<8x512xf32>
    %49 = arith.mulf %46, %48 : vector<8x512xf32>
    %50 = arith.truncf %49 : vector<8x512xf32> to vector<8x512xbf16>
    %51 = vector.extract_strided_slice %1 {offsets = [0, 456], sizes = [8, 56], strides = [1, 1]} : vector<8x512xf32> to vector<8x56xf32>
    %52 = vector.extract_strided_slice %1 {offsets = [0, 0], sizes = [8, 456], strides = [1, 1]} : vector<8x512xf32> to vector<8x456xf32>
    %53 = tpu.concatenate %51, %52 in 1 : vector<8x56xf32>, vector<8x456xf32> -> vector<8x512xf32>
    %c7 = arith.constant 7 : index
    %c0_10 = arith.constant 0 : index
    %54 = vector.load %arg2[%c7, %c0_10] : memref<27x512xf32, #tpu.memory_space<vmem>>, vector<1x512xf32>
    %55 = vector.broadcast %54 : vector<1x512xf32> to vector<8x512xf32>
    %56 = arith.mulf %53, %55 : vector<8x512xf32>
    %57 = arith.truncf %56 : vector<8x512xf32> to vector<8x512xbf16>
    %58 = vector.extract_strided_slice %1 {offsets = [0, 457], sizes = [8, 55], strides = [1, 1]} : vector<8x512xf32> to vector<8x55xf32>
    %59 = vector.extract_strided_slice %1 {offsets = [0, 0], sizes = [8, 457], strides = [1, 1]} : vector<8x512xf32> to vector<8x457xf32>
    %60 = tpu.concatenate %58, %59 in 1 : vector<8x55xf32>, vector<8x457xf32> -> vector<8x512xf32>
    %c8 = arith.constant 8 : index
    %c0_11 = arith.constant 0 : index
    %61 = vector.load %arg2[%c8, %c0_11] : memref<27x512xf32, #tpu.memory_space<vmem>>, vector<1x512xf32>
    %62 = vector.broadcast %61 : vector<1x512xf32> to vector<8x512xf32>
    %63 = arith.mulf %60, %62 : vector<8x512xf32>
    %64 = arith.truncf %63 : vector<8x512xf32> to vector<8x512xbf16>
    %65 = vector.extract_strided_slice %1 {offsets = [0, 503], sizes = [8, 9], strides = [1, 1]} : vector<8x512xf32> to vector<8x9xf32>
    %66 = vector.extract_strided_slice %1 {offsets = [0, 0], sizes = [8, 503], strides = [1, 1]} : vector<8x512xf32> to vector<8x503xf32>
    %67 = tpu.concatenate %65, %66 in 1 : vector<8x9xf32>, vector<8x503xf32> -> vector<8x512xf32>
    %c9 = arith.constant 9 : index
    %c0_12 = arith.constant 0 : index
    %68 = vector.load %arg2[%c9, %c0_12] : memref<27x512xf32, #tpu.memory_space<vmem>>, vector<1x512xf32>
    %69 = vector.broadcast %68 : vector<1x512xf32> to vector<8x512xf32>
    %70 = arith.mulf %67, %69 : vector<8x512xf32>
    %71 = arith.truncf %70 : vector<8x512xf32> to vector<8x512xbf16>
    %72 = vector.extract_strided_slice %1 {offsets = [0, 504], sizes = [8, 8], strides = [1, 1]} : vector<8x512xf32> to vector<8x8xf32>
    %73 = vector.extract_strided_slice %1 {offsets = [0, 0], sizes = [8, 504], strides = [1, 1]} : vector<8x512xf32> to vector<8x504xf32>
    %74 = tpu.concatenate %72, %73 in 1 : vector<8x8xf32>, vector<8x504xf32> -> vector<8x512xf32>
    %c10 = arith.constant 10 : index
    %c0_13 = arith.constant 0 : index
    %75 = vector.load %arg2[%c10, %c0_13] : memref<27x512xf32, #tpu.memory_space<vmem>>, vector<1x512xf32>
    %76 = vector.broadcast %75 : vector<1x512xf32> to vector<8x512xf32>
    %77 = arith.mulf %74, %76 : vector<8x512xf32>
    %78 = arith.truncf %77 : vector<8x512xf32> to vector<8x512xbf16>
    %79 = vector.extract_strided_slice %1 {offsets = [0, 505], sizes = [8, 7], strides = [1, 1]} : vector<8x512xf32> to vector<8x7xf32>
    %80 = vector.extract_strided_slice %1 {offsets = [0, 0], sizes = [8, 505], strides = [1, 1]} : vector<8x512xf32> to vector<8x505xf32>
    %81 = tpu.concatenate %79, %80 in 1 : vector<8x7xf32>, vector<8x505xf32> -> vector<8x512xf32>
    %c11 = arith.constant 11 : index
    %c0_14 = arith.constant 0 : index
    %82 = vector.load %arg2[%c11, %c0_14] : memref<27x512xf32, #tpu.memory_space<vmem>>, vector<1x512xf32>
    %83 = vector.broadcast %82 : vector<1x512xf32> to vector<8x512xf32>
    %84 = arith.mulf %81, %83 : vector<8x512xf32>
    %85 = arith.truncf %84 : vector<8x512xf32> to vector<8x512xbf16>
    %86 = vector.extract_strided_slice %1 {offsets = [0, 511], sizes = [8, 1], strides = [1, 1]} : vector<8x512xf32> to vector<8x1xf32>
    %87 = vector.extract_strided_slice %1 {offsets = [0, 0], sizes = [8, 511], strides = [1, 1]} : vector<8x512xf32> to vector<8x511xf32>
    %88 = tpu.concatenate %86, %87 in 1 : vector<8x1xf32>, vector<8x511xf32> -> vector<8x512xf32>
    %c12 = arith.constant 12 : index
    %c0_15 = arith.constant 0 : index
    %89 = vector.load %arg2[%c12, %c0_15] : memref<27x512xf32, #tpu.memory_space<vmem>>, vector<1x512xf32>
    %90 = vector.broadcast %89 : vector<1x512xf32> to vector<8x512xf32>
    %91 = arith.mulf %88, %90 : vector<8x512xf32>
    %92 = arith.truncf %91 : vector<8x512xf32> to vector<8x512xbf16>
    %c13 = arith.constant 13 : index
    %c0_16 = arith.constant 0 : index
    %93 = vector.load %arg2[%c13, %c0_16] : memref<27x512xf32, #tpu.memory_space<vmem>>, vector<1x512xf32>
    %94 = vector.broadcast %93 : vector<1x512xf32> to vector<8x512xf32>
    %95 = arith.mulf %1, %94 : vector<8x512xf32>
    %96 = arith.truncf %95 : vector<8x512xf32> to vector<8x512xbf16>
    %97 = vector.extract_strided_slice %1 {offsets = [0, 1], sizes = [8, 511], strides = [1, 1]} : vector<8x512xf32> to vector<8x511xf32>
    %98 = vector.extract_strided_slice %1 {offsets = [0, 0], sizes = [8, 1], strides = [1, 1]} : vector<8x512xf32> to vector<8x1xf32>
    %99 = tpu.concatenate %97, %98 in 1 : vector<8x511xf32>, vector<8x1xf32> -> vector<8x512xf32>
    %c14 = arith.constant 14 : index
    %c0_17 = arith.constant 0 : index
    %100 = vector.load %arg2[%c14, %c0_17] : memref<27x512xf32, #tpu.memory_space<vmem>>, vector<1x512xf32>
    %101 = vector.broadcast %100 : vector<1x512xf32> to vector<8x512xf32>
    %102 = arith.mulf %99, %101 : vector<8x512xf32>
    %103 = arith.truncf %102 : vector<8x512xf32> to vector<8x512xbf16>
    %104 = vector.extract_strided_slice %1 {offsets = [0, 7], sizes = [8, 505], strides = [1, 1]} : vector<8x512xf32> to vector<8x505xf32>
    %105 = vector.extract_strided_slice %1 {offsets = [0, 0], sizes = [8, 7], strides = [1, 1]} : vector<8x512xf32> to vector<8x7xf32>
    %106 = tpu.concatenate %104, %105 in 1 : vector<8x505xf32>, vector<8x7xf32> -> vector<8x512xf32>
    %c15 = arith.constant 15 : index
    %c0_18 = arith.constant 0 : index
    %107 = vector.load %arg2[%c15, %c0_18] : memref<27x512xf32, #tpu.memory_space<vmem>>, vector<1x512xf32>
    %108 = vector.broadcast %107 : vector<1x512xf32> to vector<8x512xf32>
    %109 = arith.mulf %106, %108 : vector<8x512xf32>
    %110 = arith.truncf %109 : vector<8x512xf32> to vector<8x512xbf16>
    %111 = vector.extract_strided_slice %1 {offsets = [0, 8], sizes = [8, 504], strides = [1, 1]} : vector<8x512xf32> to vector<8x504xf32>
    %112 = vector.extract_strided_slice %1 {offsets = [0, 0], sizes = [8, 8], strides = [1, 1]} : vector<8x512xf32> to vector<8x8xf32>
    %113 = tpu.concatenate %111, %112 in 1 : vector<8x504xf32>, vector<8x8xf32> -> vector<8x512xf32>
    %c16 = arith.constant 16 : index
    %c0_19 = arith.constant 0 : index
    %114 = vector.load %arg2[%c16, %c0_19] : memref<27x512xf32, #tpu.memory_space<vmem>>, vector<1x512xf32>
    %115 = vector.broadcast %114 : vector<1x512xf32> to vector<8x512xf32>
    %116 = arith.mulf %113, %115 : vector<8x512xf32>
    %117 = arith.truncf %116 : vector<8x512xf32> to vector<8x512xbf16>
    %118 = vector.extract_strided_slice %1 {offsets = [0, 9], sizes = [8, 503], strides = [1, 1]} : vector<8x512xf32> to vector<8x503xf32>
    %119 = vector.extract_strided_slice %1 {offsets = [0, 0], sizes = [8, 9], strides = [1, 1]} : vector<8x512xf32> to vector<8x9xf32>
    %120 = tpu.concatenate %118, %119 in 1 : vector<8x503xf32>, vector<8x9xf32> -> vector<8x512xf32>
    %c17 = arith.constant 17 : index
    %c0_20 = arith.constant 0 : index
    %121 = vector.load %arg2[%c17, %c0_20] : memref<27x512xf32, #tpu.memory_space<vmem>>, vector<1x512xf32>
    %122 = vector.broadcast %121 : vector<1x512xf32> to vector<8x512xf32>
    %123 = arith.mulf %120, %122 : vector<8x512xf32>
    %124 = arith.truncf %123 : vector<8x512xf32> to vector<8x512xbf16>
    %125 = vector.extract_strided_slice %1 {offsets = [0, 55], sizes = [8, 457], strides = [1, 1]} : vector<8x512xf32> to vector<8x457xf32>
    %126 = vector.extract_strided_slice %1 {offsets = [0, 0], sizes = [8, 55], strides = [1, 1]} : vector<8x512xf32> to vector<8x55xf32>
    %127 = tpu.concatenate %125, %126 in 1 : vector<8x457xf32>, vector<8x55xf32> -> vector<8x512xf32>
    %c18 = arith.constant 18 : index
    %c0_21 = arith.constant 0 : index
    %128 = vector.load %arg2[%c18, %c0_21] : memref<27x512xf32, #tpu.memory_space<vmem>>, vector<1x512xf32>
    %129 = vector.broadcast %128 : vector<1x512xf32> to vector<8x512xf32>
    %130 = arith.mulf %127, %129 : vector<8x512xf32>
    %131 = arith.truncf %130 : vector<8x512xf32> to vector<8x512xbf16>
    %132 = vector.extract_strided_slice %1 {offsets = [0, 56], sizes = [8, 456], strides = [1, 1]} : vector<8x512xf32> to vector<8x456xf32>
    %133 = vector.extract_strided_slice %1 {offsets = [0, 0], sizes = [8, 56], strides = [1, 1]} : vector<8x512xf32> to vector<8x56xf32>
    %134 = tpu.concatenate %132, %133 in 1 : vector<8x456xf32>, vector<8x56xf32> -> vector<8x512xf32>
    %c19 = arith.constant 19 : index
    %c0_22 = arith.constant 0 : index
    %135 = vector.load %arg2[%c19, %c0_22] : memref<27x512xf32, #tpu.memory_space<vmem>>, vector<1x512xf32>
    %136 = vector.broadcast %135 : vector<1x512xf32> to vector<8x512xf32>
    %137 = arith.mulf %134, %136 : vector<8x512xf32>
    %138 = arith.truncf %137 : vector<8x512xf32> to vector<8x512xbf16>
    %139 = vector.extract_strided_slice %1 {offsets = [0, 57], sizes = [8, 455], strides = [1, 1]} : vector<8x512xf32> to vector<8x455xf32>
    %140 = vector.extract_strided_slice %1 {offsets = [0, 0], sizes = [8, 57], strides = [1, 1]} : vector<8x512xf32> to vector<8x57xf32>
    %141 = tpu.concatenate %139, %140 in 1 : vector<8x455xf32>, vector<8x57xf32> -> vector<8x512xf32>
    %c20 = arith.constant 20 : index
    %c0_23 = arith.constant 0 : index
    %142 = vector.load %arg2[%c20, %c0_23] : memref<27x512xf32, #tpu.memory_space<vmem>>, vector<1x512xf32>
    %143 = vector.broadcast %142 : vector<1x512xf32> to vector<8x512xf32>
    %144 = arith.mulf %141, %143 : vector<8x512xf32>
    %145 = arith.truncf %144 : vector<8x512xf32> to vector<8x512xbf16>
    %146 = vector.extract_strided_slice %1 {offsets = [0, 63], sizes = [8, 449], strides = [1, 1]} : vector<8x512xf32> to vector<8x449xf32>
    %147 = vector.extract_strided_slice %1 {offsets = [0, 0], sizes = [8, 63], strides = [1, 1]} : vector<8x512xf32> to vector<8x63xf32>
    %148 = tpu.concatenate %146, %147 in 1 : vector<8x449xf32>, vector<8x63xf32> -> vector<8x512xf32>
    %c21 = arith.constant 21 : index
    %c0_24 = arith.constant 0 : index
    %149 = vector.load %arg2[%c21, %c0_24] : memref<27x512xf32, #tpu.memory_space<vmem>>, vector<1x512xf32>
    %150 = vector.broadcast %149 : vector<1x512xf32> to vector<8x512xf32>
    %151 = arith.mulf %148, %150 : vector<8x512xf32>
    %152 = arith.truncf %151 : vector<8x512xf32> to vector<8x512xbf16>
    %153 = vector.extract_strided_slice %1 {offsets = [0, 64], sizes = [8, 448], strides = [1, 1]} : vector<8x512xf32> to vector<8x448xf32>
    %154 = vector.extract_strided_slice %1 {offsets = [0, 0], sizes = [8, 64], strides = [1, 1]} : vector<8x512xf32> to vector<8x64xf32>
    %155 = tpu.concatenate %153, %154 in 1 : vector<8x448xf32>, vector<8x64xf32> -> vector<8x512xf32>
    %c22 = arith.constant 22 : index
    %c0_25 = arith.constant 0 : index
    %156 = vector.load %arg2[%c22, %c0_25] : memref<27x512xf32, #tpu.memory_space<vmem>>, vector<1x512xf32>
    %157 = vector.broadcast %156 : vector<1x512xf32> to vector<8x512xf32>
    %158 = arith.mulf %155, %157 : vector<8x512xf32>
    %159 = arith.truncf %158 : vector<8x512xf32> to vector<8x512xbf16>
    %160 = vector.extract_strided_slice %1 {offsets = [0, 65], sizes = [8, 447], strides = [1, 1]} : vector<8x512xf32> to vector<8x447xf32>
    %161 = vector.extract_strided_slice %1 {offsets = [0, 0], sizes = [8, 65], strides = [1, 1]} : vector<8x512xf32> to vector<8x65xf32>
    %162 = tpu.concatenate %160, %161 in 1 : vector<8x447xf32>, vector<8x65xf32> -> vector<8x512xf32>
    %c23 = arith.constant 23 : index
    %c0_26 = arith.constant 0 : index
    %163 = vector.load %arg2[%c23, %c0_26] : memref<27x512xf32, #tpu.memory_space<vmem>>, vector<1x512xf32>
    %164 = vector.broadcast %163 : vector<1x512xf32> to vector<8x512xf32>
    %165 = arith.mulf %162, %164 : vector<8x512xf32>
    %166 = arith.truncf %165 : vector<8x512xf32> to vector<8x512xbf16>
    %167 = vector.extract_strided_slice %1 {offsets = [0, 71], sizes = [8, 441], strides = [1, 1]} : vector<8x512xf32> to vector<8x441xf32>
    %168 = vector.extract_strided_slice %1 {offsets = [0, 0], sizes = [8, 71], strides = [1, 1]} : vector<8x512xf32> to vector<8x71xf32>
    %169 = tpu.concatenate %167, %168 in 1 : vector<8x441xf32>, vector<8x71xf32> -> vector<8x512xf32>
    %c24 = arith.constant 24 : index
    %c0_27 = arith.constant 0 : index
    %170 = vector.load %arg2[%c24, %c0_27] : memref<27x512xf32, #tpu.memory_space<vmem>>, vector<1x512xf32>
    %171 = vector.broadcast %170 : vector<1x512xf32> to vector<8x512xf32>
    %172 = arith.mulf %169, %171 : vector<8x512xf32>
    %173 = arith.truncf %172 : vector<8x512xf32> to vector<8x512xbf16>
    %174 = vector.extract_strided_slice %1 {offsets = [0, 72], sizes = [8, 440], strides = [1, 1]} : vector<8x512xf32> to vector<8x440xf32>
    %175 = vector.extract_strided_slice %1 {offsets = [0, 0], sizes = [8, 72], strides = [1, 1]} : vector<8x512xf32> to vector<8x72xf32>
    %176 = tpu.concatenate %174, %175 in 1 : vector<8x440xf32>, vector<8x72xf32> -> vector<8x512xf32>
    %c25 = arith.constant 25 : index
    %c0_28 = arith.constant 0 : index
    %177 = vector.load %arg2[%c25, %c0_28] : memref<27x512xf32, #tpu.memory_space<vmem>>, vector<1x512xf32>
    %178 = vector.broadcast %177 : vector<1x512xf32> to vector<8x512xf32>
    %179 = arith.mulf %176, %178 : vector<8x512xf32>
    %180 = arith.truncf %179 : vector<8x512xf32> to vector<8x512xbf16>
    %181 = vector.extract_strided_slice %1 {offsets = [0, 73], sizes = [8, 439], strides = [1, 1]} : vector<8x512xf32> to vector<8x439xf32>
    %182 = vector.extract_strided_slice %1 {offsets = [0, 0], sizes = [8, 73], strides = [1, 1]} : vector<8x512xf32> to vector<8x73xf32>
    %183 = tpu.concatenate %181, %182 in 1 : vector<8x439xf32>, vector<8x73xf32> -> vector<8x512xf32>
    %c26 = arith.constant 26 : index
    %c0_29 = arith.constant 0 : index
    %184 = vector.load %arg2[%c26, %c0_29] : memref<27x512xf32, #tpu.memory_space<vmem>>, vector<1x512xf32>
    %185 = vector.broadcast %184 : vector<1x512xf32> to vector<8x512xf32>
    %186 = arith.mulf %183, %185 : vector<8x512xf32>
    %187 = arith.truncf %186 : vector<8x512xf32> to vector<8x512xbf16>
    %188 = tpu.concatenate %8, %15, %22, %29, %36, %43, %50, %57, %64, %71, %78, %85, %92, %96, %103, %110 in 0 : vector<8x512xbf16>, vector<8x512xbf16>, vector<8x512xbf16>, vector<8x512xbf16>, vector<8x512xbf16>, vector<8x512xbf16>, vector<8x512xbf16>, vector<8x512xbf16>, vector<8x512xbf16>, vector<8x512xbf16>, vector<8x512xbf16>, vector<8x512xbf16>, vector<8x512xbf16>, vector<8x512xbf16>, vector<8x512xbf16>, vector<8x512xbf16> -> vector<128x512xbf16>
    %189 = tpu.concatenate %117, %124, %131, %138, %145, %152, %159, %166, %173, %180, %187 in 0 : vector<8x512xbf16>, vector<8x512xbf16>, vector<8x512xbf16>, vector<8x512xbf16>, vector<8x512xbf16>, vector<8x512xbf16>, vector<8x512xbf16>, vector<8x512xbf16>, vector<8x512xbf16>, vector<8x512xbf16>, vector<8x512xbf16> -> vector<88x512xbf16>
    %190 = tpu.concatenate %188, %189 in 0 : vector<128x512xbf16>, vector<88x512xbf16> -> vector<216x512xbf16>
    %c0_30 = arith.constant 0 : index
    %c0_31 = arith.constant 0 : index
    %191 = vector.load %arg3[%c0_30, %c0_31] : memref<8x216xbf16, #tpu.memory_space<vmem>>, vector<8x216xbf16>
    %cst = arith.constant dense<0.000000e+00> : vector<8x512xf32>
    %192 = tpu.matmul %191, %190, %cst {dimension_numbers = #tpu.dot_dimension_numbers<[1], [0], [0], [1], [0, 0, 1, 1], [], []>} : vector<8x216xbf16>, vector<216x512xbf16>, vector<8x512xf32> -> vector<8x512xf32>
    %c0_32 = arith.constant 0 : index
    %c0_33 = arith.constant 0 : index
    %c0_34 = arith.constant 0 : index
    %193 = vector.load %arg4[%c0_32, %c0_33, %c0_34] : memref<1x8x512xf32, #tpu.memory_space<vmem>>, vector<1x8x512xf32>
    %194 = vector.shape_cast %193 : vector<1x8x512xf32> to vector<8x512xf32>
    %195 = vector.shape_cast %192 : vector<8x512xf32> to vector<1x8x512xf32>
    tpu.vector_store %arg4[%c0_32, %c0_33, %c0_34], %195 {strides = array<i32>} : memref<1x8x512xf32, #tpu.memory_space<vmem>>, vector<1x8x512xf32>,
    %cst_35 = arith.constant dense<0.000000e+00> : vector<8xf32>
    %196 = vector.multi_reduction <add>, %192, %cst_35 [1] : vector<8x512xf32> to vector<8xf32>
    %197 = vector.shape_cast %196 : vector<8xf32> to vector<8x1xf32>
    %cst_36 = arith.constant 0.001953125 : f32
    %198 = vector.broadcast %cst_36 : f32 to vector<8x1xf32>
    %199 = arith.mulf %197, %198 : vector<8x1xf32>
    %200 = vector.broadcast %199 : vector<8x1xf32> to vector<8x512xf32>
    %201 = arith.subf %192, %200 : vector<8x512xf32>
    %c0_37 = arith.constant 0 : index
    %c0_38 = arith.constant 0 : index
    %c0_39 = arith.constant 0 : index
    %202 = vector.load %arg5[%c0_37, %c0_38, %c0_39] : memref<1x8x1xf32, #tpu.memory_space<vmem>>, vector<1x8x1xf32>
    %203 = vector.shape_cast %202 : vector<1x8x1xf32> to vector<8x1xf32>
    %204 = vector.shape_cast %199 : vector<8x1xf32> to vector<1x8x1xf32>
    tpu.vector_store %arg5[%c0_37, %c0_38, %c0_39], %204 {strides = array<i32>} : memref<1x8x1xf32, #tpu.memory_space<vmem>>, vector<1x8x1xf32>,
    %205 = arith.mulf %201, %201 : vector<8x512xf32>
    %cst_40 = arith.constant dense<0.000000e+00> : vector<8xf32>
    %206 = vector.multi_reduction <add>, %205, %cst_40 [1] : vector<8x512xf32> to vector<8xf32>
    %207 = vector.shape_cast %206 : vector<8xf32> to vector<8x1xf32>
    %c0_41 = arith.constant 0 : index
    %c0_42 = arith.constant 0 : index
    %c0_43 = arith.constant 0 : index
    %208 = vector.load %arg6[%c0_41, %c0_42, %c0_43] : memref<1x8x1xf32, #tpu.memory_space<vmem>>, vector<1x8x1xf32>
    %209 = vector.shape_cast %208 : vector<1x8x1xf32> to vector<8x1xf32>
    %210 = vector.shape_cast %207 : vector<8x1xf32> to vector<1x8x1xf32>
    tpu.vector_store %arg6[%c0_41, %c0_42, %c0_43], %210 {strides = array<i32>} : memref<1x8x1xf32, #tpu.memory_space<vmem>>, vector<1x8x1xf32>,
    return
  }
  func.func @transform_0(%arg0: i32) -> (i32, i32, i32) {
    %c0_i32 = arith.constant 0 : i32
    %c0_i32_0 = arith.constant 0 : i32
    %c0_i32_1 = arith.constant 0 : i32
    return %arg0, %c0_i32, %c0_i32_0 : i32, i32, i32
  }
  func.func @transform_1(%arg0: i32) -> (i32, i32) {
    %c0_i32 = arith.constant 0 : i32
    %c0_i32_0 = arith.constant 0 : i32
    %c0_i32_1 = arith.constant 0 : i32
    return %c0_i32, %c0_i32_0 : i32, i32
  }
  func.func @transform_2(%arg0: i32) -> (i32, i32) {
    %c0_i32 = arith.constant 0 : i32
    %c0_i32_0 = arith.constant 0 : i32
    %c0_i32_1 = arith.constant 0 : i32
    return %c0_i32, %c0_i32_0 : i32, i32
  }
  func.func @transform_3(%arg0: i32) -> (i32, i32, i32) {
    %c0_i32 = arith.constant 0 : i32
    %c0_i32_0 = arith.constant 0 : i32
    %c0_i32_1 = arith.constant 0 : i32
    return %arg0, %c0_i32, %c0_i32_0 : i32, i32, i32
  }
  func.func @transform_4(%arg0: i32) -> (i32, i32, i32) {
    %c0_i32 = arith.constant 0 : i32
    %c0_i32_0 = arith.constant 0 : i32
    %c0_i32_1 = arith.constant 0 : i32
    return %arg0, %c0_i32, %c0_i32_0 : i32, i32, i32
  }
  func.func @transform_5(%arg0: i32) -> (i32, i32, i32) {
    %c0_i32 = arith.constant 0 : i32
    %c0_i32_0 = arith.constant 0 : i32
    %c0_i32_1 = arith.constant 0 : i32
    return %arg0, %c0_i32, %c0_i32_0 : i32, i32, i32
  }
}

module attributes {stable_mosaic.version = 11 : i64} {
  func.func @_conv3x3x3_kernel(%arg0: i32, %arg1: memref<1x8x512xf32, #tpu.memory_space<vmem>>, %arg2: memref<8x1xf32, #tpu.memory_space<vmem>>, %arg3: memref<8x1xf32, #tpu.memory_space<vmem>>, %arg4: memref<27x512xf32, #tpu.memory_space<vmem>>, %arg5: memref<8x216xbf16, #tpu.memory_space<vmem>>, %arg6: memref<1x8x512xf32, #tpu.memory_space<vmem>>, %arg7: memref<1x8x1xf32, #tpu.memory_space<vmem>>, %arg8: memref<1x8x1xf32, #tpu.memory_space<vmem>>) attributes {dimension_semantics = [#tpu.dimension_semantics<parallel>], iteration_bounds = array<i64: 2>, scalar_prefetch = 0 : i64, scratch_operands = 0 : i64, tpu.core_type = #tpu.core_type<tc>, window_params = [{transform_indices = @transform_0, window_bounds = array<i64: 1, 8, 512>}, {pipeline_mode = #tpu.pipeline_mode<synchronous>, transform_indices = @transform_1, window_bounds = array<i64: 8, 1>}, {pipeline_mode = #tpu.pipeline_mode<synchronous>, transform_indices = @transform_2, window_bounds = array<i64: 8, 1>}, {pipeline_mode = #tpu.pipeline_mode<synchronous>, transform_indices = @transform_3, window_bounds = array<i64: 27, 512>}, {pipeline_mode = #tpu.pipeline_mode<synchronous>, transform_indices = @transform_4, window_bounds = array<i64: 8, 216>}, {transform_indices = @transform_5, window_bounds = array<i64: 1, 8, 512>}, {transform_indices = @transform_6, window_bounds = array<i64: 1, 8, 1>}, {transform_indices = @transform_7, window_bounds = array<i64: 1, 8, 1>}]} {
    %c0 = arith.constant 0 : index
    %c0_0 = arith.constant 0 : index
    %c0_1 = arith.constant 0 : index
    %0 = vector.load %arg1[%c0, %c0_0, %c0_1] : memref<1x8x512xf32, #tpu.memory_space<vmem>>, vector<1x8x512xf32>
    %1 = vector.shape_cast %0 : vector<1x8x512xf32> to vector<8x512xf32>
    %c0_2 = arith.constant 0 : index
    %c0_3 = arith.constant 0 : index
    %2 = vector.load %arg2[%c0_2, %c0_3] : memref<8x1xf32, #tpu.memory_space<vmem>>, vector<8x1xf32>
    %3 = vector.broadcast %2 : vector<8x1xf32> to vector<8x512xf32>
    %4 = arith.mulf %1, %3 : vector<8x512xf32>
    %c0_4 = arith.constant 0 : index
    %c0_5 = arith.constant 0 : index
    %5 = vector.load %arg3[%c0_4, %c0_5] : memref<8x1xf32, #tpu.memory_space<vmem>>, vector<8x1xf32>
    %6 = vector.broadcast %5 : vector<8x1xf32> to vector<8x512xf32>
    %7 = arith.addf %4, %6 : vector<8x512xf32>
    %cst = arith.constant 0.000000e+00 : f32
    %8 = vector.broadcast %cst : f32 to vector<8x512xf32>
    %9 = arith.maximumf %7, %8 : vector<8x512xf32>
    %10 = vector.extract_strided_slice %9 {offsets = [0, 439], sizes = [8, 73], strides = [1, 1]} : vector<8x512xf32> to vector<8x73xf32>
    %11 = vector.extract_strided_slice %9 {offsets = [0, 0], sizes = [8, 439], strides = [1, 1]} : vector<8x512xf32> to vector<8x439xf32>
    %12 = tpu.concatenate %10, %11 in 1 : vector<8x73xf32>, vector<8x439xf32> -> vector<8x512xf32>
    %c0_6 = arith.constant 0 : index
    %c0_7 = arith.constant 0 : index
    %13 = vector.load %arg4[%c0_6, %c0_7] : memref<27x512xf32, #tpu.memory_space<vmem>>, vector<1x512xf32>
    %14 = vector.broadcast %13 : vector<1x512xf32> to vector<8x512xf32>
    %15 = arith.mulf %12, %14 : vector<8x512xf32>
    %16 = arith.truncf %15 : vector<8x512xf32> to vector<8x512xbf16>
    %17 = vector.extract_strided_slice %9 {offsets = [0, 440], sizes = [8, 72], strides = [1, 1]} : vector<8x512xf32> to vector<8x72xf32>
    %18 = vector.extract_strided_slice %9 {offsets = [0, 0], sizes = [8, 440], strides = [1, 1]} : vector<8x512xf32> to vector<8x440xf32>
    %19 = tpu.concatenate %17, %18 in 1 : vector<8x72xf32>, vector<8x440xf32> -> vector<8x512xf32>
    %c1 = arith.constant 1 : index
    %c0_8 = arith.constant 0 : index
    %20 = vector.load %arg4[%c1, %c0_8] : memref<27x512xf32, #tpu.memory_space<vmem>>, vector<1x512xf32>
    %21 = vector.broadcast %20 : vector<1x512xf32> to vector<8x512xf32>
    %22 = arith.mulf %19, %21 : vector<8x512xf32>
    %23 = arith.truncf %22 : vector<8x512xf32> to vector<8x512xbf16>
    %24 = vector.extract_strided_slice %9 {offsets = [0, 441], sizes = [8, 71], strides = [1, 1]} : vector<8x512xf32> to vector<8x71xf32>
    %25 = vector.extract_strided_slice %9 {offsets = [0, 0], sizes = [8, 441], strides = [1, 1]} : vector<8x512xf32> to vector<8x441xf32>
    %26 = tpu.concatenate %24, %25 in 1 : vector<8x71xf32>, vector<8x441xf32> -> vector<8x512xf32>
    %c2 = arith.constant 2 : index
    %c0_9 = arith.constant 0 : index
    %27 = vector.load %arg4[%c2, %c0_9] : memref<27x512xf32, #tpu.memory_space<vmem>>, vector<1x512xf32>
    %28 = vector.broadcast %27 : vector<1x512xf32> to vector<8x512xf32>
    %29 = arith.mulf %26, %28 : vector<8x512xf32>
    %30 = arith.truncf %29 : vector<8x512xf32> to vector<8x512xbf16>
    %31 = vector.extract_strided_slice %9 {offsets = [0, 447], sizes = [8, 65], strides = [1, 1]} : vector<8x512xf32> to vector<8x65xf32>
    %32 = vector.extract_strided_slice %9 {offsets = [0, 0], sizes = [8, 447], strides = [1, 1]} : vector<8x512xf32> to vector<8x447xf32>
    %33 = tpu.concatenate %31, %32 in 1 : vector<8x65xf32>, vector<8x447xf32> -> vector<8x512xf32>
    %c3 = arith.constant 3 : index
    %c0_10 = arith.constant 0 : index
    %34 = vector.load %arg4[%c3, %c0_10] : memref<27x512xf32, #tpu.memory_space<vmem>>, vector<1x512xf32>
    %35 = vector.broadcast %34 : vector<1x512xf32> to vector<8x512xf32>
    %36 = arith.mulf %33, %35 : vector<8x512xf32>
    %37 = arith.truncf %36 : vector<8x512xf32> to vector<8x512xbf16>
    %38 = vector.extract_strided_slice %9 {offsets = [0, 448], sizes = [8, 64], strides = [1, 1]} : vector<8x512xf32> to vector<8x64xf32>
    %39 = vector.extract_strided_slice %9 {offsets = [0, 0], sizes = [8, 448], strides = [1, 1]} : vector<8x512xf32> to vector<8x448xf32>
    %40 = tpu.concatenate %38, %39 in 1 : vector<8x64xf32>, vector<8x448xf32> -> vector<8x512xf32>
    %c4 = arith.constant 4 : index
    %c0_11 = arith.constant 0 : index
    %41 = vector.load %arg4[%c4, %c0_11] : memref<27x512xf32, #tpu.memory_space<vmem>>, vector<1x512xf32>
    %42 = vector.broadcast %41 : vector<1x512xf32> to vector<8x512xf32>
    %43 = arith.mulf %40, %42 : vector<8x512xf32>
    %44 = arith.truncf %43 : vector<8x512xf32> to vector<8x512xbf16>
    %45 = vector.extract_strided_slice %9 {offsets = [0, 449], sizes = [8, 63], strides = [1, 1]} : vector<8x512xf32> to vector<8x63xf32>
    %46 = vector.extract_strided_slice %9 {offsets = [0, 0], sizes = [8, 449], strides = [1, 1]} : vector<8x512xf32> to vector<8x449xf32>
    %47 = tpu.concatenate %45, %46 in 1 : vector<8x63xf32>, vector<8x449xf32> -> vector<8x512xf32>
    %c5 = arith.constant 5 : index
    %c0_12 = arith.constant 0 : index
    %48 = vector.load %arg4[%c5, %c0_12] : memref<27x512xf32, #tpu.memory_space<vmem>>, vector<1x512xf32>
    %49 = vector.broadcast %48 : vector<1x512xf32> to vector<8x512xf32>
    %50 = arith.mulf %47, %49 : vector<8x512xf32>
    %51 = arith.truncf %50 : vector<8x512xf32> to vector<8x512xbf16>
    %52 = vector.extract_strided_slice %9 {offsets = [0, 455], sizes = [8, 57], strides = [1, 1]} : vector<8x512xf32> to vector<8x57xf32>
    %53 = vector.extract_strided_slice %9 {offsets = [0, 0], sizes = [8, 455], strides = [1, 1]} : vector<8x512xf32> to vector<8x455xf32>
    %54 = tpu.concatenate %52, %53 in 1 : vector<8x57xf32>, vector<8x455xf32> -> vector<8x512xf32>
    %c6 = arith.constant 6 : index
    %c0_13 = arith.constant 0 : index
    %55 = vector.load %arg4[%c6, %c0_13] : memref<27x512xf32, #tpu.memory_space<vmem>>, vector<1x512xf32>
    %56 = vector.broadcast %55 : vector<1x512xf32> to vector<8x512xf32>
    %57 = arith.mulf %54, %56 : vector<8x512xf32>
    %58 = arith.truncf %57 : vector<8x512xf32> to vector<8x512xbf16>
    %59 = vector.extract_strided_slice %9 {offsets = [0, 456], sizes = [8, 56], strides = [1, 1]} : vector<8x512xf32> to vector<8x56xf32>
    %60 = vector.extract_strided_slice %9 {offsets = [0, 0], sizes = [8, 456], strides = [1, 1]} : vector<8x512xf32> to vector<8x456xf32>
    %61 = tpu.concatenate %59, %60 in 1 : vector<8x56xf32>, vector<8x456xf32> -> vector<8x512xf32>
    %c7 = arith.constant 7 : index
    %c0_14 = arith.constant 0 : index
    %62 = vector.load %arg4[%c7, %c0_14] : memref<27x512xf32, #tpu.memory_space<vmem>>, vector<1x512xf32>
    %63 = vector.broadcast %62 : vector<1x512xf32> to vector<8x512xf32>
    %64 = arith.mulf %61, %63 : vector<8x512xf32>
    %65 = arith.truncf %64 : vector<8x512xf32> to vector<8x512xbf16>
    %66 = vector.extract_strided_slice %9 {offsets = [0, 457], sizes = [8, 55], strides = [1, 1]} : vector<8x512xf32> to vector<8x55xf32>
    %67 = vector.extract_strided_slice %9 {offsets = [0, 0], sizes = [8, 457], strides = [1, 1]} : vector<8x512xf32> to vector<8x457xf32>
    %68 = tpu.concatenate %66, %67 in 1 : vector<8x55xf32>, vector<8x457xf32> -> vector<8x512xf32>
    %c8 = arith.constant 8 : index
    %c0_15 = arith.constant 0 : index
    %69 = vector.load %arg4[%c8, %c0_15] : memref<27x512xf32, #tpu.memory_space<vmem>>, vector<1x512xf32>
    %70 = vector.broadcast %69 : vector<1x512xf32> to vector<8x512xf32>
    %71 = arith.mulf %68, %70 : vector<8x512xf32>
    %72 = arith.truncf %71 : vector<8x512xf32> to vector<8x512xbf16>
    %73 = vector.extract_strided_slice %9 {offsets = [0, 503], sizes = [8, 9], strides = [1, 1]} : vector<8x512xf32> to vector<8x9xf32>
    %74 = vector.extract_strided_slice %9 {offsets = [0, 0], sizes = [8, 503], strides = [1, 1]} : vector<8x512xf32> to vector<8x503xf32>
    %75 = tpu.concatenate %73, %74 in 1 : vector<8x9xf32>, vector<8x503xf32> -> vector<8x512xf32>
    %c9 = arith.constant 9 : index
    %c0_16 = arith.constant 0 : index
    %76 = vector.load %arg4[%c9, %c0_16] : memref<27x512xf32, #tpu.memory_space<vmem>>, vector<1x512xf32>
    %77 = vector.broadcast %76 : vector<1x512xf32> to vector<8x512xf32>
    %78 = arith.mulf %75, %77 : vector<8x512xf32>
    %79 = arith.truncf %78 : vector<8x512xf32> to vector<8x512xbf16>
    %80 = vector.extract_strided_slice %9 {offsets = [0, 504], sizes = [8, 8], strides = [1, 1]} : vector<8x512xf32> to vector<8x8xf32>
    %81 = vector.extract_strided_slice %9 {offsets = [0, 0], sizes = [8, 504], strides = [1, 1]} : vector<8x512xf32> to vector<8x504xf32>
    %82 = tpu.concatenate %80, %81 in 1 : vector<8x8xf32>, vector<8x504xf32> -> vector<8x512xf32>
    %c10 = arith.constant 10 : index
    %c0_17 = arith.constant 0 : index
    %83 = vector.load %arg4[%c10, %c0_17] : memref<27x512xf32, #tpu.memory_space<vmem>>, vector<1x512xf32>
    %84 = vector.broadcast %83 : vector<1x512xf32> to vector<8x512xf32>
    %85 = arith.mulf %82, %84 : vector<8x512xf32>
    %86 = arith.truncf %85 : vector<8x512xf32> to vector<8x512xbf16>
    %87 = vector.extract_strided_slice %9 {offsets = [0, 505], sizes = [8, 7], strides = [1, 1]} : vector<8x512xf32> to vector<8x7xf32>
    %88 = vector.extract_strided_slice %9 {offsets = [0, 0], sizes = [8, 505], strides = [1, 1]} : vector<8x512xf32> to vector<8x505xf32>
    %89 = tpu.concatenate %87, %88 in 1 : vector<8x7xf32>, vector<8x505xf32> -> vector<8x512xf32>
    %c11 = arith.constant 11 : index
    %c0_18 = arith.constant 0 : index
    %90 = vector.load %arg4[%c11, %c0_18] : memref<27x512xf32, #tpu.memory_space<vmem>>, vector<1x512xf32>
    %91 = vector.broadcast %90 : vector<1x512xf32> to vector<8x512xf32>
    %92 = arith.mulf %89, %91 : vector<8x512xf32>
    %93 = arith.truncf %92 : vector<8x512xf32> to vector<8x512xbf16>
    %94 = vector.extract_strided_slice %9 {offsets = [0, 511], sizes = [8, 1], strides = [1, 1]} : vector<8x512xf32> to vector<8x1xf32>
    %95 = vector.extract_strided_slice %9 {offsets = [0, 0], sizes = [8, 511], strides = [1, 1]} : vector<8x512xf32> to vector<8x511xf32>
    %96 = tpu.concatenate %94, %95 in 1 : vector<8x1xf32>, vector<8x511xf32> -> vector<8x512xf32>
    %c12 = arith.constant 12 : index
    %c0_19 = arith.constant 0 : index
    %97 = vector.load %arg4[%c12, %c0_19] : memref<27x512xf32, #tpu.memory_space<vmem>>, vector<1x512xf32>
    %98 = vector.broadcast %97 : vector<1x512xf32> to vector<8x512xf32>
    %99 = arith.mulf %96, %98 : vector<8x512xf32>
    %100 = arith.truncf %99 : vector<8x512xf32> to vector<8x512xbf16>
    %c13 = arith.constant 13 : index
    %c0_20 = arith.constant 0 : index
    %101 = vector.load %arg4[%c13, %c0_20] : memref<27x512xf32, #tpu.memory_space<vmem>>, vector<1x512xf32>
    %102 = vector.broadcast %101 : vector<1x512xf32> to vector<8x512xf32>
    %103 = arith.mulf %9, %102 : vector<8x512xf32>
    %104 = arith.truncf %103 : vector<8x512xf32> to vector<8x512xbf16>
    %105 = vector.extract_strided_slice %9 {offsets = [0, 1], sizes = [8, 511], strides = [1, 1]} : vector<8x512xf32> to vector<8x511xf32>
    %106 = vector.extract_strided_slice %9 {offsets = [0, 0], sizes = [8, 1], strides = [1, 1]} : vector<8x512xf32> to vector<8x1xf32>
    %107 = tpu.concatenate %105, %106 in 1 : vector<8x511xf32>, vector<8x1xf32> -> vector<8x512xf32>
    %c14 = arith.constant 14 : index
    %c0_21 = arith.constant 0 : index
    %108 = vector.load %arg4[%c14, %c0_21] : memref<27x512xf32, #tpu.memory_space<vmem>>, vector<1x512xf32>
    %109 = vector.broadcast %108 : vector<1x512xf32> to vector<8x512xf32>
    %110 = arith.mulf %107, %109 : vector<8x512xf32>
    %111 = arith.truncf %110 : vector<8x512xf32> to vector<8x512xbf16>
    %112 = vector.extract_strided_slice %9 {offsets = [0, 7], sizes = [8, 505], strides = [1, 1]} : vector<8x512xf32> to vector<8x505xf32>
    %113 = vector.extract_strided_slice %9 {offsets = [0, 0], sizes = [8, 7], strides = [1, 1]} : vector<8x512xf32> to vector<8x7xf32>
    %114 = tpu.concatenate %112, %113 in 1 : vector<8x505xf32>, vector<8x7xf32> -> vector<8x512xf32>
    %c15 = arith.constant 15 : index
    %c0_22 = arith.constant 0 : index
    %115 = vector.load %arg4[%c15, %c0_22] : memref<27x512xf32, #tpu.memory_space<vmem>>, vector<1x512xf32>
    %116 = vector.broadcast %115 : vector<1x512xf32> to vector<8x512xf32>
    %117 = arith.mulf %114, %116 : vector<8x512xf32>
    %118 = arith.truncf %117 : vector<8x512xf32> to vector<8x512xbf16>
    %119 = vector.extract_strided_slice %9 {offsets = [0, 8], sizes = [8, 504], strides = [1, 1]} : vector<8x512xf32> to vector<8x504xf32>
    %120 = vector.extract_strided_slice %9 {offsets = [0, 0], sizes = [8, 8], strides = [1, 1]} : vector<8x512xf32> to vector<8x8xf32>
    %121 = tpu.concatenate %119, %120 in 1 : vector<8x504xf32>, vector<8x8xf32> -> vector<8x512xf32>
    %c16 = arith.constant 16 : index
    %c0_23 = arith.constant 0 : index
    %122 = vector.load %arg4[%c16, %c0_23] : memref<27x512xf32, #tpu.memory_space<vmem>>, vector<1x512xf32>
    %123 = vector.broadcast %122 : vector<1x512xf32> to vector<8x512xf32>
    %124 = arith.mulf %121, %123 : vector<8x512xf32>
    %125 = arith.truncf %124 : vector<8x512xf32> to vector<8x512xbf16>
    %126 = vector.extract_strided_slice %9 {offsets = [0, 9], sizes = [8, 503], strides = [1, 1]} : vector<8x512xf32> to vector<8x503xf32>
    %127 = vector.extract_strided_slice %9 {offsets = [0, 0], sizes = [8, 9], strides = [1, 1]} : vector<8x512xf32> to vector<8x9xf32>
    %128 = tpu.concatenate %126, %127 in 1 : vector<8x503xf32>, vector<8x9xf32> -> vector<8x512xf32>
    %c17 = arith.constant 17 : index
    %c0_24 = arith.constant 0 : index
    %129 = vector.load %arg4[%c17, %c0_24] : memref<27x512xf32, #tpu.memory_space<vmem>>, vector<1x512xf32>
    %130 = vector.broadcast %129 : vector<1x512xf32> to vector<8x512xf32>
    %131 = arith.mulf %128, %130 : vector<8x512xf32>
    %132 = arith.truncf %131 : vector<8x512xf32> to vector<8x512xbf16>
    %133 = vector.extract_strided_slice %9 {offsets = [0, 55], sizes = [8, 457], strides = [1, 1]} : vector<8x512xf32> to vector<8x457xf32>
    %134 = vector.extract_strided_slice %9 {offsets = [0, 0], sizes = [8, 55], strides = [1, 1]} : vector<8x512xf32> to vector<8x55xf32>
    %135 = tpu.concatenate %133, %134 in 1 : vector<8x457xf32>, vector<8x55xf32> -> vector<8x512xf32>
    %c18 = arith.constant 18 : index
    %c0_25 = arith.constant 0 : index
    %136 = vector.load %arg4[%c18, %c0_25] : memref<27x512xf32, #tpu.memory_space<vmem>>, vector<1x512xf32>
    %137 = vector.broadcast %136 : vector<1x512xf32> to vector<8x512xf32>
    %138 = arith.mulf %135, %137 : vector<8x512xf32>
    %139 = arith.truncf %138 : vector<8x512xf32> to vector<8x512xbf16>
    %140 = vector.extract_strided_slice %9 {offsets = [0, 56], sizes = [8, 456], strides = [1, 1]} : vector<8x512xf32> to vector<8x456xf32>
    %141 = vector.extract_strided_slice %9 {offsets = [0, 0], sizes = [8, 56], strides = [1, 1]} : vector<8x512xf32> to vector<8x56xf32>
    %142 = tpu.concatenate %140, %141 in 1 : vector<8x456xf32>, vector<8x56xf32> -> vector<8x512xf32>
    %c19 = arith.constant 19 : index
    %c0_26 = arith.constant 0 : index
    %143 = vector.load %arg4[%c19, %c0_26] : memref<27x512xf32, #tpu.memory_space<vmem>>, vector<1x512xf32>
    %144 = vector.broadcast %143 : vector<1x512xf32> to vector<8x512xf32>
    %145 = arith.mulf %142, %144 : vector<8x512xf32>
    %146 = arith.truncf %145 : vector<8x512xf32> to vector<8x512xbf16>
    %147 = vector.extract_strided_slice %9 {offsets = [0, 57], sizes = [8, 455], strides = [1, 1]} : vector<8x512xf32> to vector<8x455xf32>
    %148 = vector.extract_strided_slice %9 {offsets = [0, 0], sizes = [8, 57], strides = [1, 1]} : vector<8x512xf32> to vector<8x57xf32>
    %149 = tpu.concatenate %147, %148 in 1 : vector<8x455xf32>, vector<8x57xf32> -> vector<8x512xf32>
    %c20 = arith.constant 20 : index
    %c0_27 = arith.constant 0 : index
    %150 = vector.load %arg4[%c20, %c0_27] : memref<27x512xf32, #tpu.memory_space<vmem>>, vector<1x512xf32>
    %151 = vector.broadcast %150 : vector<1x512xf32> to vector<8x512xf32>
    %152 = arith.mulf %149, %151 : vector<8x512xf32>
    %153 = arith.truncf %152 : vector<8x512xf32> to vector<8x512xbf16>
    %154 = vector.extract_strided_slice %9 {offsets = [0, 63], sizes = [8, 449], strides = [1, 1]} : vector<8x512xf32> to vector<8x449xf32>
    %155 = vector.extract_strided_slice %9 {offsets = [0, 0], sizes = [8, 63], strides = [1, 1]} : vector<8x512xf32> to vector<8x63xf32>
    %156 = tpu.concatenate %154, %155 in 1 : vector<8x449xf32>, vector<8x63xf32> -> vector<8x512xf32>
    %c21 = arith.constant 21 : index
    %c0_28 = arith.constant 0 : index
    %157 = vector.load %arg4[%c21, %c0_28] : memref<27x512xf32, #tpu.memory_space<vmem>>, vector<1x512xf32>
    %158 = vector.broadcast %157 : vector<1x512xf32> to vector<8x512xf32>
    %159 = arith.mulf %156, %158 : vector<8x512xf32>
    %160 = arith.truncf %159 : vector<8x512xf32> to vector<8x512xbf16>
    %161 = vector.extract_strided_slice %9 {offsets = [0, 64], sizes = [8, 448], strides = [1, 1]} : vector<8x512xf32> to vector<8x448xf32>
    %162 = vector.extract_strided_slice %9 {offsets = [0, 0], sizes = [8, 64], strides = [1, 1]} : vector<8x512xf32> to vector<8x64xf32>
    %163 = tpu.concatenate %161, %162 in 1 : vector<8x448xf32>, vector<8x64xf32> -> vector<8x512xf32>
    %c22 = arith.constant 22 : index
    %c0_29 = arith.constant 0 : index
    %164 = vector.load %arg4[%c22, %c0_29] : memref<27x512xf32, #tpu.memory_space<vmem>>, vector<1x512xf32>
    %165 = vector.broadcast %164 : vector<1x512xf32> to vector<8x512xf32>
    %166 = arith.mulf %163, %165 : vector<8x512xf32>
    %167 = arith.truncf %166 : vector<8x512xf32> to vector<8x512xbf16>
    %168 = vector.extract_strided_slice %9 {offsets = [0, 65], sizes = [8, 447], strides = [1, 1]} : vector<8x512xf32> to vector<8x447xf32>
    %169 = vector.extract_strided_slice %9 {offsets = [0, 0], sizes = [8, 65], strides = [1, 1]} : vector<8x512xf32> to vector<8x65xf32>
    %170 = tpu.concatenate %168, %169 in 1 : vector<8x447xf32>, vector<8x65xf32> -> vector<8x512xf32>
    %c23 = arith.constant 23 : index
    %c0_30 = arith.constant 0 : index
    %171 = vector.load %arg4[%c23, %c0_30] : memref<27x512xf32, #tpu.memory_space<vmem>>, vector<1x512xf32>
    %172 = vector.broadcast %171 : vector<1x512xf32> to vector<8x512xf32>
    %173 = arith.mulf %170, %172 : vector<8x512xf32>
    %174 = arith.truncf %173 : vector<8x512xf32> to vector<8x512xbf16>
    %175 = vector.extract_strided_slice %9 {offsets = [0, 71], sizes = [8, 441], strides = [1, 1]} : vector<8x512xf32> to vector<8x441xf32>
    %176 = vector.extract_strided_slice %9 {offsets = [0, 0], sizes = [8, 71], strides = [1, 1]} : vector<8x512xf32> to vector<8x71xf32>
    %177 = tpu.concatenate %175, %176 in 1 : vector<8x441xf32>, vector<8x71xf32> -> vector<8x512xf32>
    %c24 = arith.constant 24 : index
    %c0_31 = arith.constant 0 : index
    %178 = vector.load %arg4[%c24, %c0_31] : memref<27x512xf32, #tpu.memory_space<vmem>>, vector<1x512xf32>
    %179 = vector.broadcast %178 : vector<1x512xf32> to vector<8x512xf32>
    %180 = arith.mulf %177, %179 : vector<8x512xf32>
    %181 = arith.truncf %180 : vector<8x512xf32> to vector<8x512xbf16>
    %182 = vector.extract_strided_slice %9 {offsets = [0, 72], sizes = [8, 440], strides = [1, 1]} : vector<8x512xf32> to vector<8x440xf32>
    %183 = vector.extract_strided_slice %9 {offsets = [0, 0], sizes = [8, 72], strides = [1, 1]} : vector<8x512xf32> to vector<8x72xf32>
    %184 = tpu.concatenate %182, %183 in 1 : vector<8x440xf32>, vector<8x72xf32> -> vector<8x512xf32>
    %c25 = arith.constant 25 : index
    %c0_32 = arith.constant 0 : index
    %185 = vector.load %arg4[%c25, %c0_32] : memref<27x512xf32, #tpu.memory_space<vmem>>, vector<1x512xf32>
    %186 = vector.broadcast %185 : vector<1x512xf32> to vector<8x512xf32>
    %187 = arith.mulf %184, %186 : vector<8x512xf32>
    %188 = arith.truncf %187 : vector<8x512xf32> to vector<8x512xbf16>
    %189 = vector.extract_strided_slice %9 {offsets = [0, 73], sizes = [8, 439], strides = [1, 1]} : vector<8x512xf32> to vector<8x439xf32>
    %190 = vector.extract_strided_slice %9 {offsets = [0, 0], sizes = [8, 73], strides = [1, 1]} : vector<8x512xf32> to vector<8x73xf32>
    %191 = tpu.concatenate %189, %190 in 1 : vector<8x439xf32>, vector<8x73xf32> -> vector<8x512xf32>
    %c26 = arith.constant 26 : index
    %c0_33 = arith.constant 0 : index
    %192 = vector.load %arg4[%c26, %c0_33] : memref<27x512xf32, #tpu.memory_space<vmem>>, vector<1x512xf32>
    %193 = vector.broadcast %192 : vector<1x512xf32> to vector<8x512xf32>
    %194 = arith.mulf %191, %193 : vector<8x512xf32>
    %195 = arith.truncf %194 : vector<8x512xf32> to vector<8x512xbf16>
    %196 = tpu.concatenate %16, %23, %30, %37, %44, %51, %58, %65, %72, %79, %86, %93, %100, %104, %111, %118 in 0 : vector<8x512xbf16>, vector<8x512xbf16>, vector<8x512xbf16>, vector<8x512xbf16>, vector<8x512xbf16>, vector<8x512xbf16>, vector<8x512xbf16>, vector<8x512xbf16>, vector<8x512xbf16>, vector<8x512xbf16>, vector<8x512xbf16>, vector<8x512xbf16>, vector<8x512xbf16>, vector<8x512xbf16>, vector<8x512xbf16>, vector<8x512xbf16> -> vector<128x512xbf16>
    %197 = tpu.concatenate %125, %132, %139, %146, %153, %160, %167, %174, %181, %188, %195 in 0 : vector<8x512xbf16>, vector<8x512xbf16>, vector<8x512xbf16>, vector<8x512xbf16>, vector<8x512xbf16>, vector<8x512xbf16>, vector<8x512xbf16>, vector<8x512xbf16>, vector<8x512xbf16>, vector<8x512xbf16>, vector<8x512xbf16> -> vector<88x512xbf16>
    %198 = tpu.concatenate %196, %197 in 0 : vector<128x512xbf16>, vector<88x512xbf16> -> vector<216x512xbf16>
    %c0_34 = arith.constant 0 : index
    %c0_35 = arith.constant 0 : index
    %199 = vector.load %arg5[%c0_34, %c0_35] : memref<8x216xbf16, #tpu.memory_space<vmem>>, vector<8x216xbf16>
    %cst_36 = arith.constant dense<0.000000e+00> : vector<8x512xf32>
    %200 = tpu.matmul %199, %198, %cst_36 {dimension_numbers = #tpu.dot_dimension_numbers<[1], [0], [0], [1], [0, 0, 1, 1], [], []>} : vector<8x216xbf16>, vector<216x512xbf16>, vector<8x512xf32> -> vector<8x512xf32>
    %c0_37 = arith.constant 0 : index
    %c0_38 = arith.constant 0 : index
    %c0_39 = arith.constant 0 : index
    %201 = vector.load %arg6[%c0_37, %c0_38, %c0_39] : memref<1x8x512xf32, #tpu.memory_space<vmem>>, vector<1x8x512xf32>
    %202 = vector.shape_cast %201 : vector<1x8x512xf32> to vector<8x512xf32>
    %203 = vector.shape_cast %200 : vector<8x512xf32> to vector<1x8x512xf32>
    tpu.vector_store %arg6[%c0_37, %c0_38, %c0_39], %203 {strides = array<i32>} : memref<1x8x512xf32, #tpu.memory_space<vmem>>, vector<1x8x512xf32>,
    %cst_40 = arith.constant dense<0.000000e+00> : vector<8xf32>
    %204 = vector.multi_reduction <add>, %200, %cst_40 [1] : vector<8x512xf32> to vector<8xf32>
    %205 = vector.shape_cast %204 : vector<8xf32> to vector<8x1xf32>
    %cst_41 = arith.constant 0.001953125 : f32
    %206 = vector.broadcast %cst_41 : f32 to vector<8x1xf32>
    %207 = arith.mulf %205, %206 : vector<8x1xf32>
    %208 = vector.broadcast %207 : vector<8x1xf32> to vector<8x512xf32>
    %209 = arith.subf %200, %208 : vector<8x512xf32>
    %c0_42 = arith.constant 0 : index
    %c0_43 = arith.constant 0 : index
    %c0_44 = arith.constant 0 : index
    %210 = vector.load %arg7[%c0_42, %c0_43, %c0_44] : memref<1x8x1xf32, #tpu.memory_space<vmem>>, vector<1x8x1xf32>
    %211 = vector.shape_cast %210 : vector<1x8x1xf32> to vector<8x1xf32>
    %212 = vector.shape_cast %207 : vector<8x1xf32> to vector<1x8x1xf32>
    tpu.vector_store %arg7[%c0_42, %c0_43, %c0_44], %212 {strides = array<i32>} : memref<1x8x1xf32, #tpu.memory_space<vmem>>, vector<1x8x1xf32>,
    %213 = arith.mulf %209, %209 : vector<8x512xf32>
    %cst_45 = arith.constant dense<0.000000e+00> : vector<8xf32>
    %214 = vector.multi_reduction <add>, %213, %cst_45 [1] : vector<8x512xf32> to vector<8xf32>
    %215 = vector.shape_cast %214 : vector<8xf32> to vector<8x1xf32>
    %c0_46 = arith.constant 0 : index
    %c0_47 = arith.constant 0 : index
    %c0_48 = arith.constant 0 : index
    %216 = vector.load %arg8[%c0_46, %c0_47, %c0_48] : memref<1x8x1xf32, #tpu.memory_space<vmem>>, vector<1x8x1xf32>
    %217 = vector.shape_cast %216 : vector<1x8x1xf32> to vector<8x1xf32>
    %218 = vector.shape_cast %215 : vector<8x1xf32> to vector<1x8x1xf32>
    tpu.vector_store %arg8[%c0_46, %c0_47, %c0_48], %218 {strides = array<i32>} : memref<1x8x1xf32, #tpu.memory_space<vmem>>, vector<1x8x1xf32>,
    return
  }
  func.func @transform_0(%arg0: i32) -> (i32, i32, i32) {
    %c0_i32 = arith.constant 0 : i32
    %c0_i32_0 = arith.constant 0 : i32
    %c0_i32_1 = arith.constant 0 : i32
    return %arg0, %c0_i32, %c0_i32_0 : i32, i32, i32
  }
  func.func @transform_1(%arg0: i32) -> (i32, i32) {
    %c0_i32 = arith.constant 0 : i32
    %c0_i32_0 = arith.constant 0 : i32
    %c0_i32_1 = arith.constant 0 : i32
    return %c0_i32, %c0_i32_0 : i32, i32
  }
  func.func @transform_2(%arg0: i32) -> (i32, i32) {
    %c0_i32 = arith.constant 0 : i32
    %c0_i32_0 = arith.constant 0 : i32
    %c0_i32_1 = arith.constant 0 : i32
    return %c0_i32, %c0_i32_0 : i32, i32
  }
  func.func @transform_3(%arg0: i32) -> (i32, i32) {
    %c0_i32 = arith.constant 0 : i32
    %c0_i32_0 = arith.constant 0 : i32
    %c0_i32_1 = arith.constant 0 : i32
    return %c0_i32, %c0_i32_0 : i32, i32
  }
  func.func @transform_4(%arg0: i32) -> (i32, i32) {
    %c0_i32 = arith.constant 0 : i32
    %c0_i32_0 = arith.constant 0 : i32
    %c0_i32_1 = arith.constant 0 : i32
    return %c0_i32, %c0_i32_0 : i32, i32
  }
  func.func @transform_5(%arg0: i32) -> (i32, i32, i32) {
    %c0_i32 = arith.constant 0 : i32
    %c0_i32_0 = arith.constant 0 : i32
    %c0_i32_1 = arith.constant 0 : i32
    return %arg0, %c0_i32, %c0_i32_0 : i32, i32, i32
  }
  func.func @transform_6(%arg0: i32) -> (i32, i32, i32) {
    %c0_i32 = arith.constant 0 : i32
    %c0_i32_0 = arith.constant 0 : i32
    %c0_i32_1 = arith.constant 0 : i32
    return %arg0, %c0_i32, %c0_i32_0 : i32, i32, i32
  }
  func.func @transform_7(%arg0: i32) -> (i32, i32, i32) {
    %c0_i32 = arith.constant 0 : i32
    %c0_i32_0 = arith.constant 0 : i32
    %c0_i32_1 = arith.constant 0 : i32
    return %arg0, %c0_i32, %c0_i32_0 : i32, i32, i32
  }
}

module attributes {stable_mosaic.version = 11 : i64} {
  func.func @_bn_relu_kernel(%arg0: i32, %arg1: memref<1x8x512xf32, #tpu.memory_space<vmem>>, %arg2: memref<8x1xf32, #tpu.memory_space<vmem>>, %arg3: memref<8x1xf32, #tpu.memory_space<vmem>>, %arg4: memref<1x8x512xf32, #tpu.memory_space<vmem>>) attributes {dimension_semantics = [#tpu.dimension_semantics<parallel>], iteration_bounds = array<i64: 2>, scalar_prefetch = 0 : i64, scratch_operands = 0 : i64, tpu.core_type = #tpu.core_type<tc>, window_params = [{transform_indices = @transform_0, window_bounds = array<i64: 1, 8, 512>}, {pipeline_mode = #tpu.pipeline_mode<synchronous>, transform_indices = @transform_1, window_bounds = array<i64: 8, 1>}, {pipeline_mode = #tpu.pipeline_mode<synchronous>, transform_indices = @transform_2, window_bounds = array<i64: 8, 1>}, {transform_indices = @transform_3, window_bounds = array<i64: 1, 8, 512>}]} {
    %c0 = arith.constant 0 : index
    %c0_0 = arith.constant 0 : index
    %c0_1 = arith.constant 0 : index
    %0 = vector.load %arg1[%c0, %c0_0, %c0_1] : memref<1x8x512xf32, #tpu.memory_space<vmem>>, vector<1x8x512xf32>
    %1 = vector.shape_cast %0 : vector<1x8x512xf32> to vector<8x512xf32>
    %c0_2 = arith.constant 0 : index
    %c0_3 = arith.constant 0 : index
    %2 = vector.load %arg2[%c0_2, %c0_3] : memref<8x1xf32, #tpu.memory_space<vmem>>, vector<8x1xf32>
    %3 = vector.broadcast %2 : vector<8x1xf32> to vector<8x512xf32>
    %4 = arith.mulf %1, %3 : vector<8x512xf32>
    %c0_4 = arith.constant 0 : index
    %c0_5 = arith.constant 0 : index
    %5 = vector.load %arg3[%c0_4, %c0_5] : memref<8x1xf32, #tpu.memory_space<vmem>>, vector<8x1xf32>
    %6 = vector.broadcast %5 : vector<8x1xf32> to vector<8x512xf32>
    %7 = arith.addf %4, %6 : vector<8x512xf32>
    %cst = arith.constant 0.000000e+00 : f32
    %8 = vector.broadcast %cst : f32 to vector<8x512xf32>
    %9 = arith.maximumf %7, %8 : vector<8x512xf32>
    %c0_6 = arith.constant 0 : index
    %c0_7 = arith.constant 0 : index
    %c0_8 = arith.constant 0 : index
    %10 = vector.load %arg4[%c0_6, %c0_7, %c0_8] : memref<1x8x512xf32, #tpu.memory_space<vmem>>, vector<1x8x512xf32>
    %11 = vector.shape_cast %10 : vector<1x8x512xf32> to vector<8x512xf32>
    %12 = vector.shape_cast %9 : vector<8x512xf32> to vector<1x8x512xf32>
    tpu.vector_store %arg4[%c0_6, %c0_7, %c0_8], %12 {strides = array<i32>} : memref<1x8x512xf32, #tpu.memory_space<vmem>>, vector<1x8x512xf32>,
    return
  }
  func.func @transform_0(%arg0: i32) -> (i32, i32, i32) {
    %c0_i32 = arith.constant 0 : i32
    %c0_i32_0 = arith.constant 0 : i32
    %c0_i32_1 = arith.constant 0 : i32
    return %arg0, %c0_i32, %c0_i32_0 : i32, i32, i32
  }
  func.func @transform_1(%arg0: i32) -> (i32, i32) {
    %c0_i32 = arith.constant 0 : i32
    %c0_i32_0 = arith.constant 0 : i32
    %c0_i32_1 = arith.constant 0 : i32
    return %c0_i32, %c0_i32_0 : i32, i32
  }
  func.func @transform_2(%arg0: i32) -> (i32, i32) {
    %c0_i32 = arith.constant 0 : i32
    %c0_i32_0 = arith.constant 0 : i32
    %c0_i32_1 = arith.constant 0 : i32
    return %c0_i32, %c0_i32_0 : i32, i32
  }
  func.func @transform_3(%arg0: i32) -> (i32, i32, i32) {
    %c0_i32 = arith.constant 0 : i32
    %c0_i32_0 = arith.constant 0 : i32
    %c0_i32_1 = arith.constant 0 : i32
    return %arg0, %c0_i32, %c0_i32_0 : i32, i32, i32
  }
}

</mosaic_0001>

<bundles_post_ra>
// kernel: conv_block_forward.5
= control target key start
LH: loop header
LB: loop body
LE: loop exit
PB: predicated region body
PF: predicated region fallthrough
CT: control target
= control target key end

     0   :  { %s310_s12 = smov 0   ;;  %s333_s0 = inlined_call_operand.vmem [shape: f32[2,8,512], index: 0, kind: input, shape index: {}, may-alias: {0,3}]   ;;  %s334_s1 = inlined_call_operand.vmem [shape: f32[8,1], index: 1, kind: input, shape index: {}]   ;;  %s335_s2 = inlined_call_operand.vmem [shape: f32[8,1], index: 2, kind: input, shape index: {}]   ;;  %s336_s3 = inlined_call_operand.vmem [shape: f32[2,8,512], index: 3, kind: output, shape index: {}, may-alias: {0,3}]  }
   0x1 LB: > { %s258_s13 = sadd.s32 4294967295, %s287_s12   ;;  %p262_p0 = scmp.ge.s32.totalorder %s287_s12, 1  ;;  %s287_s12 = sphi %s310_s12, %s13_s12  }
   0x2   : > { %p137_p1 = scmp.lt.s32.totalorder %s287_s12, 3 }
   0x4   : > { %p138_p2 = pnand %p262_p0, %p137_p1 }
   0x5   : > { %v175_v0 = vld [vmem:[%s334_s1] sm:$0xff] (!%p138_p2)  ;;  %v289_v1 = vmov (!%p138_p2), 0   ;;  %p161_p3 = scmp.lt.s32.totalorder (!%p138_p2), %s258_s13, 1 }
   0x6   : > { %141 = sbr.rel (%p138_p2) target bundleno = 145 (0x91), region = 32  ;;  %280 = vset.pattern.permute.xlu0 (!%p138_p2), %v289_v1  ;;  %v185_v2 = vld [vmem:[%s335_s2] sm:$0xff] (!%p138_p2) }
   0x7   : > { %178 = vperm.xlu0 (!%p138_p2), %280, %v175_v0  }
   0xb   : > { %188 = vperm.xlu0 (!%p138_p2), %280, %v185_v2  }
   0xd   : > { %s338_s13 = smov (!%p161_p3, %s258_s13), 1 }
   0xe   : > { %s269_s18 = sshll.u32 %s338_s13, 5 }
   0xf   : > { %s165_s21 = scalar_lea.vmem %s333_s0, %s269_s18  ;;  %s170_s24 = scalar_lea.vmem %s336_s3, %s269_s18 }
  0x10   : > { %v171_v3 = vld [vmem:[%s165_s21] sm:$0xff]  ;;  %v172_v5 = vld [vmem:[%s165_s21 + $0x8] sm:$0xff]  ;;  %v173_v6 = vld [vmem:[%s165_s21 + $0x10] sm:$0xff] }
  0x11   : > { %v174_v7 = vld [vmem:[%s165_s21 + $0x18] sm:$0xff] }
  0x86   : > { %v179_v4 = vpop.permute.xlu0 %178 }
  0x87   : > { %v181_v8 = vmul.f32 %v179_v4, %v171_v3  ;;  %v182_v9 = vmul.f32 %v179_v4, %v172_v5  ;;  %v183_v10 = vmul.f32 %v179_v4, %v173_v6  ;;  %v184_v11 = vmul.f32 %v179_v4, %v174_v7 }
  0x8a   : > { %v189_v12 = vpop.permute.xlu0 %188 }
  0x8b   : > { %v191_v13 = vadd.f32 %v189_v12, %v181_v8  ;;  %v192_v14 = vadd.f32 %v189_v12, %v182_v9  ;;  %v193_v15 = vadd.f32 %v189_v12, %v183_v10  ;;  %v194_v16 = vadd.f32 %v189_v12, %v184_v11 }
  0x8d   : > { %v195_v17 = vmax.f32 %v191_v13, 0.0  ;;  %v196_v18 = vmax.f32 %v192_v14, 0.0  ;;  %v197_v19 = vmax.f32 %v193_v15, 0.0  ;;  %v198_v20 = vmax.f32 %v194_v16, 0.0 }
  0x8f   : > { %199 = vst [vmem:[%s170_s24] sm:$0xff] %v195_v17  ;;  %200 = vst [vmem:[%s170_s24 + $0x8] sm:$0xff] %v196_v18 }
  0x90   : > { %201 = vst [vmem:[%s170_s24 + $0x10] sm:$0xff] %v197_v19  ;;  %202 = vst [vmem:[%s170_s24 + $0x18] sm:$0xff] %v198_v20 }
  0x91 PF: > { %s13_s12 = sadd.s32 1, %s287_s12  }
  0x92   : > { %p10_p4 = scmp.ge.s32.totalorder %s13_s12, 4  }
  0x94   :  { %12 = sbr.rel (!%p10_p4) target bundleno = 1 (0x1), region = 62 }

// kernel: conv_block_forward.3
= control target key start
LH: loop header
LB: loop body
LE: loop exit
PB: predicated region body
PF: predicated region fallthrough
CT: control target
= control target key end

     0   :  { %s2090_s18 = smov 0   ;;  %s2918_s0 = inlined_call_operand.vmem [shape: f32[2,8,512], index: 0, kind: input, shape index: {}]   ;;  %s2919_s1 = inlined_call_operand.vmem [shape: f32[27,512], index: 1, kind: input, shape index: {}]   ;;  %s2920_s2 = inlined_call_operand.vmem [shape: bf16[8,216], index: 2, kind: input, shape index: {}]   ;;  %s2921_s3 = inlined_call_operand.vmem [shape: f32[2,8,512], index: 3, kind: output, shape index: {0}]   ;;  %s2922_s4 = inlined_call_operand.vmem [shape: f32[2,8,1], index: 4, kind: output, shape index: {1}]   ;;  %s2923_s5 = inlined_call_operand.vmem [shape: f32[2,8,1], index: 5, kind: output, shape index: {2}]  }
   0x1 LB: > { %s1957_s19 = sadd.s32 4294967295, %s2041_s18   ;;  %p1961_p0 = scmp.ge.s32.totalorder %s2041_s18, 1  ;;  %s2041_s18 = sphi %s2090_s18, %s16_s18  }
   0x2   : > { %p192_p1 = scmp.lt.s32.totalorder %s2041_s18, 3 }
   0x4   : > { %p193_p2 = pnand %p1961_p0, %p192_p1 }
   0x5   : > { %p228_p3 = scmp.lt.s32.totalorder (!%p193_p2), %s1957_s19, 1  ;;  %s2043_s24 = smov (!%p193_p2), 72   ;;  %v275_v4 = vlaneseq (!%p193_p2)  ;;  %v2181_v7 = vld [vmem:[%s2919_s1 + $0x1] ss:$8 sm:$0xf] (!%p193_p2)  ;;  %vm312_vm0 = vcmask (!%p193_p2), 588800  }
   0x6   : > { %196 = sbr.rel (%p193_p2) target bundleno = 811 (0x32b), region = 32  ;;  %s2044_s25 = smov (!%p193_p2), 73   ;;  %v2188_v9 = vld [vmem:[%s2919_s1 + $0x43] ss:$8 sm:$0xf] (!%p193_p2)  ;;  %vm264_vm1 = vcmask (!%p193_p2), 596992  }
   0x7   : > { %s2045_s26 = smov (!%p193_p2), 65   ;;  %s2046_s27 = smov (!%p193_p2), 71   ;;  %v276_v5 = vshrl.u32 (!%p193_p2), %v275_v4, 7  ;;  %v2195_v11 = vld [vmem:[%s2919_s1] ss:$8 sm:$0xf] (!%p193_p2) }
   0x8   : > { %s2047_s28 = smov (!%p193_p2), 63   ;;  %s2048_s29 = smov (!%p193_p2), 64   ;;  %v2206_v13 = vld [vmem:[%s2919_s1 + $0x42] ss:$8 sm:$0xf] (!%p193_p2)  ;;  %vm1461_vm2 = vcmask (!%p193_p2), 1043456  }
   0x9   : > { %s2049_s30 = smov (!%p193_p2), 56   ;;  %s2050_s6 = smov (!%p193_p2), 57   ;;  %v2176_v6 = vsub.s32 (!%p193_p2), 0, %v276_v5  ;;  %v2183_v8 = vsub.s32 (!%p193_p2), 3, %v276_v5  ;;  %v2190_v10 = vsub.s32 (!%p193_p2), 1, %v276_v5  ;;  %v2197_v12 = vsub.s32 (!%p193_p2), 2, %v276_v5 }
   0xa   : > { %s2051_s7 = smov (!%p193_p2), 9   ;;  %s2052_s8 = smov (!%p193_p2), 55   ;;  %v2229_v23 = vld [vmem:[%s2919_s1 + $0x3] ss:$8 sm:$0xf] (!%p193_p2)  ;;  %vm410_vm3 = vcmask (!%p193_p2), 531456  }
   0xb   : > { %s2053_s9 = smov (!%p193_p2), 7   ;;  %s2054_s10 = smov (!%p193_p2), 8   ;;  %v327_v14 = vrot.slane (!%p193_p2), %v2181_v7, %v2176_v6  ;;  %v1167_v15 = vrot.slane (!%p193_p2), %v2188_v9, %v2183_v8  ;;  %v331_v16 = vrot.slane (!%p193_p2), %v2181_v7, %v2190_v10  ;;  %v1155_v17 = vrot.slane (!%p193_p2), %v2188_v9, %v2176_v6  ;;  %v2234_v24 = vld [vmem:[%s2919_s1 + $0x45] ss:$8 sm:$0xf] (!%p193_p2) }
   0xc   : > { %s2055_s11 = smov (!%p193_p2), 1   ;;  %s2056_s12 = smov (!%p193_p2), 121   ;;  %v278_v18 = vrot.slane (!%p193_p2), %v2195_v11, %v2176_v6  ;;  %v1136_v19 = vrot.slane (!%p193_p2), %v2206_v13, %v2183_v8  ;;  %v282_v20 = vrot.slane (!%p193_p2), %v2195_v11, %v2190_v10  ;;  %v1124_v21 = vrot.slane (!%p193_p2), %v2206_v13, %v2176_v6  ;;  %v2249_v28 = vld [vmem:[%s2919_s1 + $0x2] ss:$8 sm:$0xf] (!%p193_p2) }
   0xd   : > { %s2941_s19 = smov (!%p228_p3, %s1957_s19), 1  ;;  %s2057_s22 = smov 127   ;;  %v335_v22 = vrot.slane %v2181_v7, %v2197_v12  ;;  %v339_v25 = vrot.slane %v2181_v7, %v2183_v8  ;;  %v1159_v26 = vrot.slane %v2188_v9, %v2190_v10  ;;  %v1163_v27 = vrot.slane %v2188_v9, %v2197_v12  ;;  %v2254_v29 = vld [vmem:[%s2919_s1 + $0x44] ss:$8 sm:$0xf] }
   0xe   : > { %s2002_s20 = sshll.u32 %s2941_s19, 5  ;;  %v286_v30 = vrot.slane %v2195_v11, %v2197_v12  ;;  %v290_v31 = vrot.slane %v2195_v11, %v2183_v8  ;;  %v1128_v32 = vrot.slane %v2206_v13, %v2190_v10  ;;  %v1132_v33 = vrot.slane %v2206_v13, %v2197_v12  ;;  %v2295_v47 = vld [vmem:[%s2919_s1 + $0x5] ss:$8 sm:$0xf]  ;;  %s2059_s21 = smov 120  }
   0xf   : > { %s2106_s23 = scalar_lea.vmem %s2918_s0, %s2002_s20  ;;  %v429_v36 = vrot.slane %v2229_v23, %v2190_v10  ;;  %v1217_v37 = vrot.slane %v2234_v24, %v2176_v6  ;;  %v425_v38 = vrot.slane %v2229_v23, %v2176_v6  ;;  %v1229_v39 = vrot.slane %v2234_v24, %v2183_v8  ;;  %v2300_v48 = vld [vmem:[%s2919_s1 + $0x47] ss:$8 sm:$0xf]  ;;  %v2317_v59 = vld [vmem:[%s2919_s1 + $0x4] ss:$8 sm:$0xf] }
  0x10   : > { %v2109_v0 = vld [vmem:[%s2106_s23 + $0x18] sm:$0xff]  ;;  %v2112_v1 = vld [vmem:[%s2106_s23] sm:$0xff]  ;;  %v2117_v2 = vld [vmem:[%s2106_s23 + $0x8] sm:$0xff]  ;;  %v376_v41 = vrot.slane %v2249_v28, %v2176_v6  ;;  %v1198_v42 = vrot.slane %v2254_v29, %v2183_v8  ;;  %v380_v43 = vrot.slane %v2249_v28, %v2190_v10  ;;  %v1186_v44 = vrot.slane %v2254_v29, %v2176_v6 }
  0x11   : > { %303 = vrot.lane.b32.xlu1 %v2109_v0, %s2043_s24  ;;  %306 = vrot.lane.b32.xlu0 %v2112_v1, %s2043_s24  ;;  %v2124_v3 = vld [vmem:[%s2106_s23 + $0x10] sm:$0xff]  ;;  %v433_v45 = vrot.slane %v2229_v23, %v2197_v12  ;;  %v437_v46 = vrot.slane %v2229_v23, %v2183_v8  ;;  %v1221_v51 = vrot.slane %v2234_v24, %v2190_v10  ;;  %vm361_vm4 = vcmask 580608  }
  0x12   : > { %v2322_v60 = vld [vmem:[%s2919_s1 + $0x46] ss:$8 sm:$0xf]  ;;  %vm508_vm5 = vcmask 515072   ;;  %vm459_vm6 = vcmask 523264   ;;  %vm1717_vm7 = vcmask 719872  }
  0x13   : > { %vm606_vm8 = vcmask 457728   ;;  %vm557_vm9 = vcmask 465920   ;;  %vm704_vm10 = vcmask 72704   ;;  %vm655_vm11 = vcmask 449536  }
  0x14   : > { %vm802_vm12 = vcmask 56320   ;;  %vm753_vm13 = vcmask 64512   ;;  %vm851_vm14 = vcmask 7168   ;;  %vm979_vm15 = vcmask 990208  }
  0x15   : > { %258 = vrot.lane.b32.xlu1 %v2112_v1, %s2044_s25  ;;  %308 = vrot.lane.b32.xlu0 %v2117_v2, %s2043_s24 }
  0x19   : > { %252 = vrot.lane.b32.xlu1 %v2109_v0, %s2044_s25  ;;  %260 = vrot.lane.b32.xlu0 %v2117_v2, %s2044_s25 }
  0x1d   : > { %404 = vrot.lane.b32.xlu1 %v2112_v1, %s2045_s26  ;;  %310 = vrot.lane.b32.xlu0 %v2124_v3, %s2043_s24 }
  0x21   : > { %262 = vrot.lane.b32.xlu1 %v2124_v3, %s2044_s25  ;;  %406 = vrot.lane.b32.xlu0 %v2117_v2, %s2045_s26 }
  0x25   : > { %355 = vrot.lane.b32.xlu1 %v2112_v1, %s2046_s27  ;;  %401 = vrot.lane.b32.xlu0 %v2109_v0, %s2045_s26 }
  0x29   : > { %352 = vrot.lane.b32.xlu1 %v2109_v0, %s2046_s27  ;;  %357 = vrot.lane.b32.xlu0 %v2117_v2, %s2046_s27 }
  0x2d   : > { %502 = vrot.lane.b32.xlu1 %v2112_v1, %s2047_s28  ;;  %408 = vrot.lane.b32.xlu0 %v2124_v3, %s2045_s26 }
  0x31   : > { %359 = vrot.lane.b32.xlu1 %v2124_v3, %s2046_s27  ;;  %504 = vrot.lane.b32.xlu0 %v2117_v2, %s2047_s28 }
  0x35   : > { %453 = vrot.lane.b32.xlu1 %v2112_v1, %s2048_s29  ;;  %499 = vrot.lane.b32.xlu0 %v2109_v0, %s2047_s28 }
  0x39   : > { %450 = vrot.lane.b32.xlu1 %v2109_v0, %s2048_s29  ;;  %455 = vrot.lane.b32.xlu0 %v2117_v2, %s2048_s29 }
  0x3d   : > { %600 = vrot.lane.b32.xlu1 %v2112_v1, %s2049_s30  ;;  %506 = vrot.lane.b32.xlu0 %v2124_v3, %s2047_s28 }
  0x41   : > { %457 = vrot.lane.b32.xlu1 %v2124_v3, %s2048_s29  ;;  %602 = vrot.lane.b32.xlu0 %v2117_v2, %s2049_s30 }
  0x45   : > { %551 = vrot.lane.b32.xlu1 %v2112_v1, %s2050_s6  ;;  %597 = vrot.lane.b32.xlu0 %v2109_v0, %s2049_s30 }
  0x49   : > { %548 = vrot.lane.b32.xlu1 %v2109_v0, %s2050_s6  ;;  %553 = vrot.lane.b32.xlu0 %v2117_v2, %s2050_s6 }
  0x4d   : > { %698 = vrot.lane.b32.xlu1 %v2112_v1, %s2051_s7  ;;  %604 = vrot.lane.b32.xlu0 %v2124_v3, %s2049_s30 }
  0x51   : > { %555 = vrot.lane.b32.xlu1 %v2124_v3, %s2050_s6  ;;  %700 = vrot.lane.b32.xlu0 %v2117_v2, %s2051_s7 }
  0x55   : > { %649 = vrot.lane.b32.xlu1 %v2112_v1, %s2052_s8  ;;  %695 = vrot.lane.b32.xlu0 %v2109_v0, %s2051_s7 }
  0x59   : > { %646 = vrot.lane.b32.xlu1 %v2109_v0, %s2052_s8  ;;  %651 = vrot.lane.b32.xlu0 %v2117_v2, %s2052_s8 }
  0x5d   : > { %796 = vrot.lane.b32.xlu1 %v2112_v1, %s2053_s9  ;;  %702 = vrot.lane.b32.xlu0 %v2124_v3, %s2051_s7 }
  0x61   : > { %653 = vrot.lane.b32.xlu1 %v2124_v3, %s2052_s8  ;;  %798 = vrot.lane.b32.xlu0 %v2117_v2, %s2053_s9 }
  0x65   : > { %747 = vrot.lane.b32.xlu1 %v2112_v1, %s2054_s10  ;;  %793 = vrot.lane.b32.xlu0 %v2109_v0, %s2053_s9 }
  0x69   : > { %744 = vrot.lane.b32.xlu1 %v2109_v0, %s2054_s10  ;;  %749 = vrot.lane.b32.xlu0 %v2117_v2, %s2054_s10 }
  0x6d   : > { %751 = vrot.lane.b32.xlu1 %v2124_v3, %s2054_s10  ;;  %800 = vrot.lane.b32.xlu0 %v2124_v3, %s2053_s9  ;;  %s2058_s9 = smov 119   ;;  %s237_s10 = scalar_lea.vmem %s2921_s3, %s2002_s20 }
  0x71   : > { %847 = vrot.lane.b32.xlu1 %v2117_v2, %s2055_s11  ;;  %845 = vrot.lane.b32.xlu0 %v2112_v1, %s2055_s11 }
  0x75   : > { %973 = vrot.lane.b32.xlu1 %v2117_v2, %s2056_s12  ;;  %842 = vrot.lane.b32.xlu0 %v2109_v0, %s2055_s11 }
  0x79   : > { %849 = vrot.lane.b32.xlu1 %v2124_v3, %s2055_s11  ;;  %975 = vrot.lane.b32.xlu0 %v2124_v3, %s2056_s12  ;;  %s1966_s11 = sshll.u32 %s2941_s19, 3 }
  0x7a   : > { %s241_s14 = scalar_lea.vmem %s2922_s4, %s1966_s11  ;;  %s245_s15 = scalar_lea.vmem %s2923_s5, %s1966_s11 }
  0x7d   : > { %924 = vrot.lane.b32.xlu1 %v2117_v2, %s2057_s22  ;;  %971 = vrot.lane.b32.xlu0 %v2112_v1, %s2056_s12 }
  0x81   : > { %922 = vrot.lane.b32.xlu1 %v2112_v1, %s2057_s22  ;;  %926 = vrot.lane.b32.xlu0 %v2124_v3, %s2057_s22 }
  0x83   : > { %v2264_v34 = vpop.permute.xlu1 %303  ;;  %v307_v35 = vpop.permute.xlu0 %306 }
  0x84   : > { %v320_v40 = vsel %vm312_vm0, %v2264_v34, %v307_v35 }
  0x85   : > { %1071 = vrot.lane.b32.xlu1 %v2117_v2, %s2058_s9  ;;  %977 = vrot.lane.b32.xlu0 %v2109_v0, %s2056_s12  ;;  %v344_v49 = vmul.f32 %v327_v14, %v320_v40  ;;  %v1175_v50 = vmul.f32 %v1167_v15, %v320_v40 }
  0x87   : > { %v259_v53 = vpop.permute.xlu1 %258  ;;  %v309_v54 = vpop.permute.xlu0 %308  ;;  %v1179_v40 = vpack.c.bf16 %v1175_v50, %v1175_v50 }
  0x88   : > { %v313_v61 = vsel %vm312_vm0, %v307_v35, %v309_v54  ;;  %v348_v35 = vpack.c.bf16 %v344_v49, %v344_v49 }
  0x89   : > { %v345_v5 = vmul.f32 %v331_v16, %v313_v61  ;;  %v1172_v14 = vmul.f32 %v1155_v17, %v313_v61  ;;  %928 = vrot.lane.b32.xlu1 %v2109_v0, %s2057_s22  ;;  %1073 = vrot.lane.b32.xlu0 %v2124_v3, %s2058_s9  ;;  %v1605_v50 = vrot.slane %v1179_v40, 4 }
  0x8a   : > { %v1401_v4 = vrot.slane %v348_v35, 4 }
  0x8b   : > { %v349_v16 = vpack.c.bf16 %v345_v5, %v345_v5  ;;  %v1176_v17 = vpack.c.bf16 %v1172_v14, %v1172_v14  ;;  %v253_v61 = vpop.permute.xlu1 %252  ;;  %v261_v62 = vpop.permute.xlu0 %260 }
  0x8c   : > { %v272_v15 = vsel %vm264_vm1, %v253_v61, %v259_v53  ;;  %v265_v49 = vsel %vm264_vm1, %v259_v53, %v261_v62 }
  0x8d   : > { %v295_v5 = vmul.f32 %v278_v18, %v272_v15  ;;  %v1144_v14 = vmul.f32 %v1136_v19, %v272_v15  ;;  %1022 = vrot.lane.b32.xlu1 %v2117_v2, %s2059_s21  ;;  %1069 = vrot.lane.b32.xlu0 %v2112_v1, %s2058_s9  ;;  %v296_v18 = vmul.f32 %v282_v20, %v265_v49  ;;  %v1402_v15 = vrot.slane %v349_v16, 4 }
  0x8e   : > { %v1141_v19 = vmul.f32 %v1124_v21, %v265_v49  ;;  %v1602_v57 = vrot.slane %v1176_v17, 4  ;;  %v486_v17 = vrot.slane %v2317_v59, %v2183_v8 }
  0x8f   : > { %v299_v2 = vpack.c.bf16 %v295_v5, %v295_v5  ;;  %v1148_v58 = vpack.c.bf16 %v1144_v14, %v1144_v14  ;;  %v405_v63 = vpop.permute.xlu1 %404  ;;  %v311_v56 = vpop.permute.xlu0 %310  ;;  %v300_v55 = vpack.c.bf16 %v296_v18, %v296_v18 }
  0x90   : > { %v1145_v52 = vpack.c.bf16 %v1141_v19, %v1141_v19  ;;  %v314_v53 = vsel %vm312_vm0, %v309_v54, %v311_v56  ;;  %v315_v35 = vsel %vm312_vm0, %v311_v56, %v2264_v34  ;;  %vm930_vm0 = vcmask 1039360  }
  0x91   : > { %v346_v20 = vmul.f32 %v335_v22, %v314_v53  ;;  %v347_v21 = vmul.f32 %v339_v25, %v315_v35  ;;  %v1173_v40 = vmul.f32 %v1159_v26, %v314_v53  ;;  %v1174_v16 = vmul.f32 %v1163_v27, %v315_v35  ;;  %1020 = vrot.lane.b32.xlu1 %v2112_v1, %s2059_s21 }
  0x92   : > { %1024 = vrot.lane.b32.xlu0 %v2124_v3, %s2059_s21  ;;  %v1468_v22 = vsel %vm1461_vm2, %v300_v55, %v1402_v15  ;;  %v1464_v7 = vsel %vm1461_vm2, %v299_v2, %v1401_v4  ;;  %v2391_v25 = vsel %vm1461_vm2, %v1145_v52, %v1602_v57  ;;  %v2394_v26 = vsel %vm1461_vm2, %v1148_v58, %v1605_v50 }
  0x93   : > { %v350_v34 = vpack.c.bf16 %v346_v20, %v346_v20  ;;  %v351_v9 = vpack.c.bf16 %v347_v21, %v347_v21  ;;  %v1177_v27 = vpack.c.bf16 %v1173_v40, %v1173_v40  ;;  %1733 = vmatprep.subr.bf16.mxu0 %v1468_v22  ;;  %v263_v54 = vpop.permute.xlu1 %262  ;;  %v2396_v1 = vpop.permute.xlu0 %406  ;;  %v1287_v3 = vrot.slane %v2300_v48, %v2197_v12 }
  0x94   : > { %v266_v55 = vsel %vm264_vm1, %v261_v62, %v263_v54  ;;  %v267_v56 = vsel %vm264_vm1, %v263_v54, %v253_v61  ;;  %1734 = vmatpush1.bf16.msra.mxu0 %v1464_v7  ;;  %v411_v52 = vsel %vm410_vm3, %v405_v63, %v2396_v1  ;;  %v482_v57 = vrot.slane %v2317_v59, %v2197_v12 }
  0x95   : > { %v1178_v58 = vpack.c.bf16 %v1174_v16, %v1174_v16  ;;  %v1403_v4 = vrot.slane %v350_v34, 4  ;;  %1026 = vrot.lane.b32.xlu1 %v2109_v0, %s2059_s21  ;;  %v1252_v62 = vrot.slane %v2322_v60, %v2190_v10  ;;  %v297_v61 = vmul.f32 %v286_v30, %v266_v55 }
  0x96   : > { %v298_v49 = vmul.f32 %v290_v31, %v267_v56  ;;  %v1142_v50 = vmul.f32 %v1128_v32, %v266_v55  ;;  %v1143_v5 = vmul.f32 %v1132_v33, %v267_v56  ;;  %1075 = vrot.lane.b32.xlu0 %v2109_v0, %s2058_s9  ;;  %v1404_v14 = vrot.slane %v351_v9, 4  ;;  %v2435_v0 = vld [vmem:[%s2919_s1 + $0x7] ss:$8 sm:$0xf] }
  0x97   : > { %v1603_v53 = vrot.slane %v1177_v27, 4  ;;  %v443_v30 = vmul.f32 %v429_v36, %v411_v52  ;;  %v1234_v11 = vmul.f32 %v1217_v37, %v411_v52  ;;  %v356_v31 = vpop.permute.xlu1 %355  ;;  %v402_v18 = vpop.permute.xlu0 %401  ;;  %v301_v32 = vpack.c.bf16 %v297_v61, %v297_v61 }
  0x98   : > { %v302_v19 = vpack.c.bf16 %v298_v49, %v298_v49  ;;  %v1146_v15 = vpack.c.bf16 %v1142_v50, %v1142_v50  ;;  %v1147_v13 = vpack.c.bf16 %v1143_v5, %v1143_v5  ;;  %v1604_v33 = vrot.slane %v1178_v58, 4 }
  0x99   : > { %v447_v2 = vpack.c.bf16 %v443_v30, %v443_v30  ;;  %v1238_v35 = vpack.c.bf16 %v1234_v11, %v1234_v11  ;;  %v418_v36 = vsel %vm410_vm3, %v402_v18, %v405_v63  ;;  %v1472_v40 = vsel %vm1461_vm2, %v301_v32, %v1403_v4 }
  0x9a   : > { %v442_v37 = vmul.f32 %v425_v38, %v418_v36  ;;  %v1237_v20 = vmul.f32 %v1229_v39, %v418_v36  ;;  %v1476_v21 = vsel %vm1461_vm2, %v302_v19, %v1404_v14  ;;  %v1256_v7 = vrot.slane %v2322_v60, %v2197_v12  ;;  %v2453_v38 = vld [vmem:[%s2919_s1 + $0x61] ss:$8 sm:$0xf] }
  0x9b   : > { %1774 = vmatprep.subr.bf16.mxu1 %v1476_v21  ;;  %v353_v16 = vpop.permute.xlu1 %352  ;;  %v358_v22 = vpop.permute.xlu0 %357  ;;  %v625_v63 = vrot.slane %v2435_v0, %v2190_v10  ;;  %v2456_v39 = vsel %vm1461_vm2, %v1146_v15, %v1603_v53  ;;  %v2459_v34 = vsel %vm1461_vm2, %v1147_v13, %v1604_v33  ;;  %v1410_v61 = vrot.slane %v447_v2, 4 }
  0x9c   : > { %v446_v9 = vpack.c.bf16 %v442_v37, %v442_v37  ;;  %v1241_v27 = vpack.c.bf16 %v1237_v20, %v1237_v20  ;;  %v369_v54 = vsel %vm361_vm4, %v353_v16, %v356_v31  ;;  %1775 = vmatpush1.bf16.msra.mxu1 %v1472_v40  ;;  %v362_v55 = vsel %vm361_vm4, %v356_v31, %v358_v22 }
  0x9d   : > { %v393_v56 = vmul.f32 %v376_v41, %v369_v54  ;;  %v1206_v52 = vmul.f32 %v1198_v42, %v369_v54  ;;  %v394_v58 = vmul.f32 %v380_v43, %v362_v55  ;;  %v1203_v4 = vmul.f32 %v1186_v44, %v362_v55  ;;  %v2520_v54 = vld [vmem:[%s2920_s2] sm:$0xff] }
  0x9e   : > { %v1610_v49 = vrot.slane %v1238_v35, 4  ;;  %v1341_v50 = vrot.slane %v2453_v38, %v2176_v6  ;;  %v621_v41 = vrot.slane %v2435_v0, %v2176_v6  ;;  %v1409_v31 = vrot.slane %v446_v9, 4 }
  0x9f   : > { %v397_v5 = vpack.c.bf16 %v393_v56, %v393_v56  ;;  %v1210_v14 = vpack.c.bf16 %v1206_v52, %v1206_v52  ;;  %v398_v53 = vpack.c.bf16 %v394_v58, %v394_v58  ;;  %v1207_v42 = vpack.c.bf16 %v1203_v4, %v1203_v4  ;;  %v503_v30 = vpop.permute.xlu1 %502  ;;  %v409_v11 = vpop.permute.xlu0 %408 }
  0xa0   : > { %v1613_v43 = vrot.slane %v1241_v27, 4  ;;  %v412_v32 = vsel %vm410_vm3, %v2396_v1, %v409_v11  ;;  %v413_v44 = vsel %vm410_vm3, %v409_v11, %v402_v18  ;;  %v2924_v33 = vrot.slane %v2234_v24, %v2197_v12  ;;  %v2497_v1 = vld [vmem:[%s2919_s1 + $0x6] ss:$8 sm:$0xf] }
  0xa1   : > { %v444_v19 = vmul.f32 %v433_v45, %v412_v32  ;;  %v445_v15 = vmul.f32 %v437_v46, %v413_v44  ;;  %v1235_v13 = vmul.f32 %v1221_v51, %v412_v32  ;;  %v1484_v45 = vsel %vm1461_vm2, %v398_v53, %v1410_v61 }
  0xa2   : > { %v1236_v2 = vmul.f32 %v2924_v33, %v413_v44  ;;  %v1480_v18 = vsel %vm1461_vm2, %v397_v5, %v1409_v31  ;;  %v2502_v23 = vsel %vm1461_vm2, %v1207_v42, %v1610_v49  ;;  %v2505_v46 = vsel %vm1461_vm2, %v1210_v14, %v1613_v43  ;;  %1735 = vmatprep.subr.bf16.mxu0 %v1484_v45 }
  0xa3   : > { %v448_v51 = vpack.c.bf16 %v444_v19, %v444_v19  ;;  %v449_v35 = vpack.c.bf16 %v445_v15, %v445_v15  ;;  %v1239_v24 = vpack.c.bf16 %v1235_v13, %v1235_v13  ;;  %v360_v36 = vpop.permute.xlu1 %359  ;;  %v2507_v37 = vpop.permute.xlu0 %504  ;;  %v1353_v20 = vrot.slane %v2453_v38, %v2183_v8  ;;  %1736 = vmatpush1.bf16.msra.mxu0 %v1480_v18 }
  0xa4   : > { %v363_v21 = vsel %vm361_vm4, %v358_v22, %v360_v36  ;;  %v364_v40 = vsel %vm361_vm4, %v360_v36, %v353_v16  ;;  %v509_v9 = vsel %vm508_vm5, %v503_v30, %v2507_v37  ;;  %v572_v27 = vrot.slane %v2497_v1, %v2176_v6 }
  0xa5   : > { %v1240_v55 = vpack.c.bf16 %v1236_v2, %v1236_v2  ;;  %v1411_v56 = vrot.slane %v448_v51, 4  ;;  %v1412_v52 = vrot.slane %v449_v35, 4  ;;  %v2925_v22 = vrot.slane %v2249_v28, %v2197_v12 }
  0xa6   : > { %v2926_v58 = vrot.slane %v2249_v28, %v2183_v8  ;;  %v2927_v61 = vrot.slane %v2254_v29, %v2190_v10  ;;  %v2928_v5 = vrot.slane %v2254_v29, %v2197_v12  ;;  %v1611_v53 = vrot.slane %v1239_v24, 4  ;;  %v2545_v29 = vld [vmem:[%s2919_s1 + $0x60] ss:$8 sm:$0xf] }
  0xa7   : > { %v395_v16 = vmul.f32 %v2925_v22, %v363_v21  ;;  %v2929_v42 = vrot.slane %v2295_v47, %v2190_v10  ;;  %v2930_v31 = vrot.slane %v2300_v48, %v2176_v6  ;;  %v454_v32 = vpop.permute.xlu1 %453  ;;  %v500_v28 = vpop.permute.xlu0 %499  ;;  %v1995_v44 = vcombine.high %v2520_v54, %v2520_v54 }
  0xa8   : > { %v396_v4 = vmul.f32 %v2926_v58, %v364_v40  ;;  %v1204_v49 = vmul.f32 %v2927_v61, %v363_v21  ;;  %v1205_v14 = vmul.f32 %v2928_v5, %v364_v40  ;;  %v1612_v2 = vrot.slane %v1240_v55, 4 }
  0xa9   : > { %v541_v11 = vmul.f32 %v2929_v42, %v509_v9  ;;  %v1296_v43 = vmul.f32 %v2930_v31, %v509_v9  ;;  %v399_v19 = vpack.c.bf16 %v395_v16, %v395_v16  ;;  %v516_v51 = vsel %vm508_vm5, %v500_v28, %v503_v30  ;;  %1997 = vmatprep.mubr.msk.bf16.mxu0 %vm1717_vm7, %v1995_v44 }
  0xaa   : > { %v400_v15 = vpack.c.bf16 %v396_v4, %v396_v4  ;;  %v1208_v13 = vpack.c.bf16 %v1204_v49, %v1204_v49  ;;  %v1209_v33 = vpack.c.bf16 %v1205_v14, %v1205_v14  ;;  %1999 = vmatprep.mubr.msk.bf16.mxu1 %vm1717_vm7, %v1995_v44  ;;  %v2931_v35 = vrot.slane %v2295_v47, %v2176_v6 }
  0xab   : > { %v545_v45 = vpack.c.bf16 %v541_v11, %v541_v11  ;;  %v1300_v18 = vpack.c.bf16 %v1296_v43, %v1296_v43  ;;  %v2932_v36 = vrot.slane %v2300_v48, %v2183_v8  ;;  %v1488_v9 = vsel %vm1461_vm2, %v399_v19, %v1411_v56  ;;  %v451_v55 = vpop.permute.xlu1 %450  ;;  %v456_v30 = vpop.permute.xlu0 %455 }
  0xac   : > { %v540_v24 = vmul.f32 %v2931_v35, %v516_v51  ;;  %v1492_v40 = vsel %vm1461_vm2, %v400_v15, %v1412_v52  ;;  %v1322_v22 = vrot.slane %v2545_v29, %v2183_v8  ;;  %v576_v16 = vrot.slane %v2497_v1, %v2190_v10 }
  0xad   : > { %v1299_v21 = vmul.f32 %v2932_v36, %v516_v51  ;;  %1776 = vmatprep.subr.bf16.mxu1 %v1492_v40  ;;  %v2563_v58 = vsel %vm1461_vm2, %v1208_v13, %v1611_v53  ;;  %v2566_v4 = vsel %vm1461_vm2, %v1209_v33, %v1612_v2  ;;  %v467_v52 = vsel %vm459_vm6, %v451_v55, %v454_v32 }
  0xae   : > { %v544_v61 = vpack.c.bf16 %v540_v24, %v540_v24  ;;  %1777 = vmatpush1.bf16.msra.mxu1 %v1488_v9  ;;  %v460_v56 = vsel %vm459_vm6, %v454_v32, %v456_v30  ;;  %v2933_v5 = vrot.slane %v2317_v59, %v2176_v6  ;;  %v2934_v42 = vrot.slane %v2322_v60, %v2183_v8 }
  0xaf   : > { %v1303_v49 = vpack.c.bf16 %v1299_v21, %v1299_v21  ;;  %v2935_v53 = vrot.slane %v2317_v59, %v2190_v10  ;;  %v2936_v43 = vrot.slane %v2322_v60, %v2176_v6  ;;  %v1418_v19 = vrot.slane %v545_v45, 4  ;;  %v601_v24 = vpop.permute.xlu1 %600  ;;  %v507_v36 = vpop.permute.xlu0 %506 }
  0xb0   : > { %v491_v14 = vmul.f32 %v2933_v5, %v467_v52  ;;  %v1268_v11 = vmul.f32 %v2934_v42, %v467_v52  ;;  %v1618_v15 = vrot.slane %v1300_v18, 4  ;;  %v1310_v32 = vrot.slane %v2545_v29, %v2176_v6 }
  0xb1   : > { %v492_v31 = vmul.f32 %v2935_v53, %v460_v56  ;;  %v1265_v44 = vmul.f32 %v2936_v43, %v460_v56  ;;  %v629_v13 = vrot.slane %v2435_v0, %v2197_v12  ;;  %v1417_v21 = vrot.slane %v544_v61, 4 }
  0xb2   : > { %v495_v33 = vpack.c.bf16 %v491_v14, %v491_v14  ;;  %v1272_v2 = vpack.c.bf16 %v1268_v11, %v1268_v11  ;;  %v1621_v40 = vrot.slane %v1303_v49, 4  ;;  %v510_v9 = vsel %vm508_vm5, %v2507_v37, %v507_v36 }
  0xb3   : > { %v496_v51 = vpack.c.bf16 %v492_v31, %v492_v31  ;;  %v1269_v35 = vpack.c.bf16 %v1265_v44, %v1265_v44  ;;  %v511_v45 = vsel %vm508_vm5, %v507_v36, %v500_v28  ;;  %v2937_v18 = vrot.slane %v2295_v47, %v2197_v12  ;;  %v458_v43 = vpop.permute.xlu1 %457  ;;  %v603_v44 = vpop.permute.xlu0 %602 }
  0xb4   : > { %v2938_v56 = vrot.slane %v2295_v47, %v2183_v8  ;;  %v2939_v14 = vrot.slane %v2300_v48, %v2190_v10  ;;  %v1298_v61 = vmul.f32 %v1287_v3, %v511_v45  ;;  %v1496_v28 = vsel %vm1461_vm2, %v495_v33, %v1417_v21 }
  0xb5   : > { %v542_v52 = vmul.f32 %v2937_v18, %v510_v9  ;;  %v1500_v37 = vsel %vm1461_vm2, %v496_v51, %v1418_v19  ;;  %v2604_v49 = vsel %vm1461_vm2, %v1269_v35, %v1618_v15  ;;  %v2607_v11 = vsel %vm1461_vm2, %v1272_v2, %v1621_v40 }
  0xb6   : > { %v543_v5 = vmul.f32 %v2938_v56, %v511_v45  ;;  %v1297_v42 = vmul.f32 %v2939_v14, %v510_v9  ;;  %1737 = vmatprep.subr.bf16.mxu0 %v1500_v37  ;;  %v633_v48 = vrot.slane %v2435_v0, %v2183_v8  ;;  %v461_v3 = vsel %vm459_vm6, %v456_v30, %v458_v43 }
  0xb7   : > { %v546_v47 = vpack.c.bf16 %v542_v52, %v542_v52  ;;  %v462_v19 = vsel %vm459_vm6, %v458_v43, %v451_v55  ;;  %1738 = vmatpush1.bf16.msra.mxu0 %v1496_v28  ;;  %v607_v15 = vsel %vm606_vm8, %v601_v24, %v603_v44  ;;  %v1345_v33 = vrot.slane %v2453_v38, %v2190_v10  ;;  %v552_v59 = vpop.permute.xlu1 %551 }
  0xb8   : > { %v547_v53 = vpack.c.bf16 %v543_v5, %v543_v5  ;;  %v1301_v31 = vpack.c.bf16 %v1297_v42, %v1297_v42  ;;  %v1302_v2 = vpack.c.bf16 %v1298_v61, %v1298_v61  ;;  %v1349_v35 = vrot.slane %v2453_v38, %v2197_v12 }
  0xb9   : > { %v1419_v51 = vrot.slane %v546_v47, 4  ;;  %v580_v36 = vrot.slane %v2497_v1, %v2197_v12  ;;  %v493_v30 = vmul.f32 %v482_v57, %v461_v3  ;;  %v494_v55 = vmul.f32 %v486_v17, %v462_v19  ;;  %v598_v17 = vpop.permute.xlu0 %597 }
  0xba   : > { %v1266_v21 = vmul.f32 %v1252_v62, %v461_v3  ;;  %v1267_v40 = vmul.f32 %v1256_v7, %v462_v19  ;;  %v1420_v9 = vrot.slane %v547_v53, 4  ;;  %v1619_v45 = vrot.slane %v1301_v31, 4 }
  0xbb   : > { %v639_v18 = vmul.f32 %v625_v63, %v607_v15  ;;  %v1358_v57 = vmul.f32 %v1341_v50, %v607_v15  ;;  %v497_v52 = vpack.c.bf16 %v493_v30, %v493_v30  ;;  %v498_v56 = vpack.c.bf16 %v494_v55, %v494_v55  ;;  %v549_v28 = vpop.permute.xlu1 %548 }
  0xbc   : > { %v1270_v5 = vpack.c.bf16 %v1266_v21, %v1266_v21  ;;  %v1271_v62 = vpack.c.bf16 %v1267_v40, %v1267_v40  ;;  %v1620_v14 = vrot.slane %v1302_v2, 4  ;;  %v614_v7 = vsel %vm606_vm8, %v598_v17, %v601_v24 }
  0xbd   : > { %v643_v42 = vpack.c.bf16 %v639_v18, %v639_v18  ;;  %v1362_v60 = vpack.c.bf16 %v1358_v57, %v1358_v57  ;;  %v638_v61 = vmul.f32 %v621_v41, %v614_v7  ;;  %v1361_v63 = vmul.f32 %v1353_v20, %v614_v7  ;;  %v554_v47 = vpop.permute.xlu0 %553 }
  0xbe   : > { %v1508_v50 = vsel %vm1461_vm2, %v498_v56, %v1420_v9  ;;  %v1504_v37 = vsel %vm1461_vm2, %v497_v52, %v1419_v51  ;;  %v584_v53 = vrot.slane %v2497_v1, %v2183_v8  ;;  %v1314_v24 = vrot.slane %v2545_v29, %v2190_v10 }
  0xbf   : > { %1778 = vmatprep.subr.bf16.mxu1 %v1508_v50  ;;  %v2652_v31 = vsel %vm1461_vm2, %v1270_v5, %v1619_v45  ;;  %v2655_v41 = vsel %vm1461_vm2, %v1271_v62, %v1620_v14  ;;  %v642_v38 = vpack.c.bf16 %v638_v61, %v638_v61  ;;  %v1365_v20 = vpack.c.bf16 %v1361_v63, %v1361_v63  ;;  %v699_v18 = vpop.permute.xlu1 %698 }
  0xc0   : > { %v565_v43 = vsel %vm557_vm9, %v549_v28, %v552_v59  ;;  %1779 = vmatpush1.bf16.msra.mxu1 %v1504_v37  ;;  %v558_v3 = vsel %vm557_vm9, %v552_v59, %v554_v47  ;;  %v1426_v30 = vrot.slane %v643_v42, 4  ;;  %v1626_v55 = vrot.slane %v1362_v60, 4 }
  0xc1   : > { %v589_v19 = vmul.f32 %v572_v27, %v565_v43  ;;  %v1330_v15 = vmul.f32 %v1322_v22, %v565_v43  ;;  %v590_v2 = vmul.f32 %v576_v16, %v558_v3  ;;  %v1327_v51 = vmul.f32 %v1310_v32, %v558_v3  ;;  %v605_v22 = vpop.permute.xlu0 %604  ;;  %v2678_v32 = vld [vmem:[%s2919_s1 + $0x21] ss:$8 sm:$0xf] }
  0xc2   : > { %v1318_v21 = vrot.slane %v2545_v29, %v2197_v12  ;;  %v1425_v57 = vrot.slane %v642_v38, 4  ;;  %v1629_v59 = vrot.slane %v1365_v20, 4  ;;  %v608_v16 = vsel %vm606_vm8, %v603_v44, %v605_v22 }
  0xc3   : > { %v593_v40 = vpack.c.bf16 %v589_v19, %v589_v19  ;;  %v1334_v27 = vpack.c.bf16 %v1330_v15, %v1330_v15  ;;  %v594_v9 = vpack.c.bf16 %v590_v2, %v590_v2  ;;  %v1331_v45 = vpack.c.bf16 %v1327_v51, %v1327_v51 }
  0xc4   : > { %v609_v52 = vsel %vm606_vm8, %v605_v22, %v598_v17  ;;  %v640_v29 = vmul.f32 %v629_v13, %v608_v16  ;;  %v1359_v5 = vmul.f32 %v1345_v33, %v608_v16  ;;  %v556_v13 = vpop.permute.xlu1 %555  ;;  %v723_v0 = vrot.slane %v2678_v32, %v2190_v10 }
  0xc5   : > { %v641_v56 = vmul.f32 %v633_v48, %v609_v52  ;;  %v1360_v62 = vmul.f32 %v1349_v35, %v609_v52  ;;  %v1516_v14 = vsel %vm1461_vm2, %v594_v9, %v1426_v30  ;;  %v1512_v44 = vsel %vm1461_vm2, %v593_v40, %v1425_v57  ;;  %v701_v48 = vpop.permute.xlu0 %700 }
  0xc6   : > { %v2689_v17 = vsel %vm1461_vm2, %v1331_v45, %v1626_v55  ;;  %v2692_v42 = vsel %vm1461_vm2, %v1334_v27, %v1629_v59  ;;  %v644_v60 = vpack.c.bf16 %v640_v29, %v640_v29  ;;  %v1363_v61 = vpack.c.bf16 %v1359_v5, %v1359_v5  ;;  %1739 = vmatprep.subr.bf16.mxu0 %v1516_v14 }
  0xc7   : > { %v645_v7 = vpack.c.bf16 %v641_v56, %v641_v56  ;;  %v559_v33 = vsel %vm557_vm9, %v554_v47, %v556_v13  ;;  %v560_v35 = vsel %vm557_vm9, %v556_v13, %v549_v28  ;;  %1740 = vmatpush1.bf16.msra.mxu0 %v1512_v44  ;;  %v705_v63 = vsel %vm704_vm10, %v699_v18, %v701_v48  ;;  %v1975_v47 = vld [vmem:[%s2919_s1 + $0x20] ss:$8 sm:$0xf] }
  0xc8   : > { %v1364_v50 = vpack.c.bf16 %v1360_v62, %v1360_v62  ;;  %v719_v37 = vrot.slane %v2678_v32, %v2176_v6  ;;  %v591_v38 = vmul.f32 %v580_v36, %v559_v33  ;;  %v592_v20 = vmul.f32 %v584_v53, %v560_v35  ;;  %v650_v51 = vpop.permute.xlu1 %649 }
  0xc9   : > { %v1328_v43 = vmul.f32 %v1314_v24, %v559_v33  ;;  %v1329_v3 = vmul.f32 %v1318_v21, %v560_v35  ;;  %v1427_v28 = vrot.slane %v644_v60, 4  ;;  %v1428_v19 = vrot.slane %v645_v7, 4  ;;  %v696_v30 = vpop.permute.xlu0 %695 }
  0xca   : > { %v1627_v15 = vrot.slane %v1363_v61, 4  ;;  %v737_v2 = vmul.f32 %v723_v0, %v705_v63  ;;  %v595_v55 = vpack.c.bf16 %v591_v38, %v591_v38  ;;  %v596_v40 = vpack.c.bf16 %v592_v20, %v592_v20  ;;  %v2737_v20 = vld [vmem:[%s2919_s1 + $0x23] ss:$8 sm:$0xf] }
  0xcb   : > { %v1332_v27 = vpack.c.bf16 %v1328_v43, %v1328_v43  ;;  %v1333_v9 = vpack.c.bf16 %v1329_v3, %v1329_v3  ;;  %v1628_v45 = vrot.slane %v1364_v50, 4  ;;  %v712_v1 = vsel %vm704_vm10, %v696_v30, %v699_v18 }
  0xcc   : > { %v670_v36 = vrot.slane %v1975_v47, %v2176_v6  ;;  %v674_v53 = vrot.slane %v1975_v47, %v2190_v10  ;;  %v736_v24 = vmul.f32 %v719_v37, %v712_v1  ;;  %v1524_v21 = vsel %vm1461_vm2, %v596_v40, %v1428_v19  ;;  %v647_v16 = vpop.permute.xlu1 %646  ;;  %v1977_v1 = vld [vmem:[%s2919_s1 + $0x22] ss:$8 sm:$0xf] }
  0xcd   : > { %v1520_v22 = vsel %vm1461_vm2, %v595_v55, %v1427_v28  ;;  %v2713_v57 = vsel %vm1461_vm2, %v1332_v27, %v1627_v15  ;;  %v741_v59 = vpack.c.bf16 %v737_v2, %v737_v2  ;;  %1780 = vmatprep.subr.bf16.mxu1 %v1524_v21  ;;  %v652_v52 = vpop.permute.xlu0 %651  ;;  %v2716_v29 = vsel %vm1461_vm2, %v1333_v9, %v1628_v45 }
  0xce   : > { %v740_v18 = vpack.c.bf16 %v736_v24, %v736_v24  ;;  %v2719_v56 = vsel %vm655_vm11, %v647_v16, %v650_v51  ;;  %1781 = vmatpush1.bf16.msra.mxu1 %v1520_v22  ;;  %v2722_v5 = vsel %vm655_vm11, %v650_v51, %v652_v52  ;;  %v727_v44 = vrot.slane %v2678_v32, %v2197_v12  ;;  %v2746_v51 = vld [vmem:[%s2919_s1 + $0x25] ss:$8 sm:$0xf] }
  0xcf   : > { %v687_v62 = vmul.f32 %v670_v36, %v2719_v56  ;;  %v688_v14 = vmul.f32 %v674_v53, %v2722_v5  ;;  %v731_v60 = vrot.slane %v2678_v32, %v2183_v8  ;;  %v678_v7 = vrot.slane %v1975_v47, %v2197_v12 }
  0xd0   : > { %v1434_v61 = vrot.slane %v741_v59, 4  ;;  %v1433_v13 = vrot.slane %v740_v18, 4  ;;  %v797_v35 = vpop.permute.xlu1 %796  ;;  %v682_v38 = vrot.slane %v1975_v47, %v2183_v8  ;;  %v821_v47 = vrot.slane %v2737_v20, %v2190_v10 }
  0xd1   : > { %v691_v0 = vpack.c.bf16 %v687_v62, %v687_v62  ;;  %v692_v33 = vpack.c.bf16 %v688_v14, %v688_v14  ;;  %v703_v63 = vpop.permute.xlu0 %702  ;;  %v817_v45 = vrot.slane %v2737_v20, %v2176_v6  ;;  %v901_v53 = vrot.slane %v2746_v51, %v2190_v10 }
  0xd2   : > { %v706_v50 = vsel %vm704_vm10, %v701_v48, %v703_v63  ;;  %v707_v37 = vsel %vm704_vm10, %v703_v63, %v696_v30  ;;  %v768_v62 = vrot.slane %v1977_v1, %v2176_v6  ;;  %vm1077_vm1 = vcmask 973824  }
  0xd3   : > { %v738_v32 = vmul.f32 %v727_v44, %v706_v50  ;;  %v739_v43 = vmul.f32 %v731_v60, %v707_v37  ;;  %v1532_v3 = vsel %vm1461_vm2, %v692_v33, %v1434_v61  ;;  %v1528_v28 = vsel %vm1461_vm2, %v691_v0, %v1433_v13  ;;  %v2772_v61 = vld [vmem:[%s2919_s1 + $0x24] ss:$8 sm:$0xf] }
  0xd4   : > { %1741 = vmatprep.subr.bf16.mxu0 %v1532_v3  ;;  %v654_v48 = vpop.permute.xlu1 %653  ;;  %v2031_v13 = vld [vmem:[%s2106_s23 + $0x8] sm:$0xff]  ;;  %v897_v33 = vrot.slane %v2746_v51, %v2176_v6  ;;  %vm1028_vm3 = vcmask 982016  }
  0xd5   : > { %v742_v19 = vpack.c.bf16 %v738_v32, %v738_v32  ;;  %v743_v15 = vpack.c.bf16 %v739_v43, %v739_v43  ;;  %1742 = vmatpush1.bf16.msra.mxu0 %v1528_v28  ;;  %v799_v2 = vpop.permute.xlu0 %798  ;;  %v2749_v30 = vsel %vm655_vm11, %v652_v52, %v654_v48  ;;  %v2752_v55 = vsel %vm655_vm11, %v654_v48, %v647_v16 }
  0xd6   : > { %v803_v40 = vsel %vm802_vm12, %v797_v35, %v799_v2  ;;  %v689_v27 = vmul.f32 %v678_v7, %v2749_v30  ;;  %v690_v9 = vmul.f32 %v682_v38, %v2752_v55  ;;  %v772_v7 = vrot.slane %v1977_v1, %v2190_v10 }
  0xd7   : > { %v1435_v36 = vrot.slane %v742_v19, 4  ;;  %v1436_v24 = vrot.slane %v743_v15, 4  ;;  %v835_v59 = vmul.f32 %v821_v47, %v803_v40  ;;  %v915_v0 = vmul.f32 %v2031_v13, %v901_v53 }
  0xd8   : > { %v693_v21 = vpack.c.bf16 %v689_v27, %v689_v27  ;;  %v694_v22 = vpack.c.bf16 %v690_v9, %v690_v9  ;;  %v748_v16 = vpop.permute.xlu1 %747  ;;  %v776_v38 = vrot.slane %v1977_v1, %v2197_v12  ;;  %v780_v32 = vrot.slane %v1977_v1, %v2183_v8  ;;  %v2032_v27 = vld [vmem:[%s2106_s23] sm:$0xff] }
  0xd9   : > { %v794_v52 = vpop.permute.xlu0 %793  ;;  %v825_v28 = vrot.slane %v2737_v20, %v2197_v12  ;;  %v829_v19 = vrot.slane %v2737_v20, %v2183_v8  ;;  %v870_v47 = vrot.slane %v2772_v61, %v2190_v10  ;;  %v919_v40 = vpack.c.bf16 %v915_v0, %v915_v0 }
  0xda   : > { %v810_v18 = vsel %vm802_vm12, %v794_v52, %v797_v35  ;;  %v1540_v44 = vsel %vm1461_vm2, %v694_v22, %v1436_v24  ;;  %v1536_v60 = vsel %vm1461_vm2, %v693_v21, %v1435_v36  ;;  %v839_v35 = vpack.c.bf16 %v835_v59, %v835_v59 }
  0xdb   : > { %v834_v14 = vmul.f32 %v817_v45, %v810_v18  ;;  %1782 = vmatprep.subr.bf16.mxu1 %v1540_v44  ;;  %v914_v9 = vmul.f32 %v2032_v27, %v897_v33  ;;  %v909_v45 = vrot.slane %v2746_v51, %v2183_v8  ;;  %v905_v1 = vrot.slane %v2746_v51, %v2197_v12 }
  0xdc   : > { %v745_v50 = vpop.permute.xlu1 %744  ;;  %1783 = vmatpush1.bf16.msra.mxu1 %v1536_v60  ;;  %v1442_v36 = vrot.slane %v839_v35, 4  ;;  %v866_v0 = vrot.slane %v2772_v61, %v2176_v6 }
  0xdd   : > { %v838_v63 = vpack.c.bf16 %v834_v14, %v834_v14  ;;  %v750_v37 = vpop.permute.xlu0 %749  ;;  %v761_v43 = vsel %vm753_vm13, %v745_v50, %v748_v16 }
  0xde   : > { %v754_v3 = vsel %vm753_vm13, %v748_v16, %v750_v37  ;;  %v785_v15 = vmul.f32 %v768_v62, %v761_v43 }
  0xdf   : > { %v786_v48 = vmul.f32 %v772_v7, %v754_v3  ;;  %v1441_v53 = vrot.slane %v838_v63, 4  ;;  %v2034_v3 = vld [vmem:[%s2106_s23 + $0x10] sm:$0xff] }
  0xe0   : > { %v789_v24 = vpack.c.bf16 %v785_v15, %v785_v15  ;;  %v752_v20 = vpop.permute.xlu1 %751 }
  0xe1   : > { %v790_v21 = vpack.c.bf16 %v786_v48, %v786_v48  ;;  %v801_v22 = vpop.permute.xlu0 %800  ;;  %v755_v59 = vsel %vm753_vm13, %v750_v37, %v752_v20  ;;  %v756_v16 = vsel %vm753_vm13, %v752_v20, %v745_v50  ;;  %v1450_v50 = vrot.slane %v919_v40, 4 }
  0xe2   : > { %v804_v18 = vsel %vm802_vm12, %v799_v2, %v801_v22  ;;  %v805_v62 = vsel %vm802_vm12, %v801_v22, %v794_v52  ;;  %v787_v14 = vmul.f32 %v776_v38, %v755_v59  ;;  %v788_v44 = vmul.f32 %v780_v32, %v756_v16  ;;  %v2033_v32 = vld [vmem:[%s2106_s23 + $0x18] sm:$0xff] }
  0xe3   : > { %v836_v60 = vmul.f32 %v825_v28, %v804_v18  ;;  %v837_v7 = vmul.f32 %v829_v19, %v805_v62  ;;  %v1548_v51 = vsel %vm1461_vm2, %v790_v21, %v1442_v36  ;;  %v1544_v13 = vsel %vm1461_vm2, %v789_v24, %v1441_v53 }
  0xe4   : > { %1743 = vmatprep.subr.bf16.mxu0 %v1548_v51  ;;  %v848_v63 = vpop.permute.xlu1 %847  ;;  %v918_v52 = vpack.c.bf16 %v914_v9, %v914_v9  ;;  %v791_v37 = vpack.c.bf16 %v787_v14, %v787_v14  ;;  %v917_v43 = vmul.f32 %v2033_v32, %v909_v45  ;;  %v916_v28 = vmul.f32 %v2034_v3, %v905_v1 }
  0xe5   : > { %v840_v33 = vpack.c.bf16 %v836_v60, %v836_v60  ;;  %v841_v35 = vpack.c.bf16 %v837_v7, %v837_v7  ;;  %v846_v2 = vpop.permute.xlu0 %845  ;;  %1744 = vmatpush1.bf16.msra.mxu0 %v1544_v13  ;;  %v792_v19 = vpack.c.bf16 %v788_v44, %v788_v44  ;;  %v874_v9 = vrot.slane %v2772_v61, %v2197_v12 }
  0xe6   : > { %v852_v38 = vsel %vm851_vm14, %v846_v2, %v848_v63  ;;  %v878_v45 = vrot.slane %v2772_v61, %v2183_v8  ;;  %v921_v1 = vpack.c.bf16 %v917_v43, %v917_v43  ;;  %v1449_v16 = vrot.slane %v918_v52, 4 }
  0xe7   : > { %v1443_v15 = vrot.slane %v840_v33, 4  ;;  %v1444_v48 = vrot.slane %v841_v35, 4  ;;  %v884_v27 = vmul.f32 %v870_v47, %v852_v38  ;;  %v1982_v47 = vld [vmem:[%s2919_s1 + $0x27] ss:$8 sm:$0xf]  ;;  %v920_v18 = vpack.c.bf16 %v916_v28, %v916_v28 }
  0xe8   : > { %v974_v53 = vpop.permute.xlu1 %973  ;;  %v999_v44 = vrot.slane %v1982_v47, %v2190_v10  ;;  %v995_v61 = vrot.slane %v1982_v47, %v2176_v6 }
  0xe9   : > { %v888_v36 = vpack.c.bf16 %v884_v27, %v884_v27  ;;  %v843_v24 = vpop.permute.xlu0 %842  ;;  %v1556_v21 = vsel %vm1461_vm2, %v792_v19, %v1444_v48  ;;  %v1552_v40 = vsel %vm1461_vm2, %v791_v37, %v1443_v15  ;;  %v1451_v52 = vrot.slane %v920_v18, 4 }
  0xea   : > { %v859_v20 = vsel %vm851_vm14, %v843_v24, %v846_v2  ;;  %1784 = vmatprep.subr.bf16.mxu1 %v1556_v21 }
  0xeb   : > { %v883_v22 = vmul.f32 %v866_v0, %v859_v20  ;;  %1785 = vmatpush1.bf16.msra.mxu1 %v1552_v40  ;;  %v1564_v59 = vsel %vm1461_vm2, %v888_v36, %v1450_v50  ;;  %v1452_v0 = vrot.slane %v921_v1, 4  ;;  %v1981_v50 = vld [vmem:[%s2919_s1 + $0x26] ss:$8 sm:$0xf]  ;;  %v1003_v1 = vrot.slane %v1982_v47, %v2197_v12 }
  0xec   : > { %1745 = vmatprep.subr.bf16.mxu0 %v1564_v59  ;;  %v850_v14 = vpop.permute.xlu1 %849  ;;  %v946_v28 = vrot.slane %v1981_v50, %v2176_v6  ;;  %v950_v27 = vrot.slane %v1981_v50, %v2190_v10  ;;  %v954_v59 = vrot.slane %v1981_v50, %v2197_v12 }
  0xed   : > { %v887_v62 = vpack.c.bf16 %v883_v22, %v883_v22  ;;  %v976_v60 = vpop.permute.xlu0 %975  ;;  %v853_v7 = vsel %vm851_vm14, %v848_v63, %v850_v14  ;;  %v854_v51 = vsel %vm851_vm14, %v850_v14, %v843_v24  ;;  %v1007_v22 = vrot.slane %v1982_v47, %v2183_v8 }
  0xee   : > { %v981_v13 = vsel %vm979_vm15, %v974_v53, %v976_v60  ;;  %v885_v33 = vmul.f32 %v874_v9, %v853_v7  ;;  %v886_v35 = vmul.f32 %v878_v45, %v854_v51 }
  0xef   : > { %v1560_v2 = vsel %vm1461_vm2, %v887_v62, %v1449_v16  ;;  %v1013_v32 = vmul.f32 %v999_v44, %v981_v13  ;;  %v958_v13 = vrot.slane %v1981_v50, %v2183_v8 }
  0xf0   : > { %1746 = vmatpush1.bf16.msra.mxu0 %v1560_v2  ;;  %v889_v37 = vpack.c.bf16 %v885_v33, %v885_v33  ;;  %v890_v38 = vpack.c.bf16 %v886_v35, %v886_v35  ;;  %v925_v43 = vpop.permute.xlu1 %924 }
  0xf1   : > { %v972_v63 = vpop.permute.xlu0 %971  ;;  %v1017_v36 = vpack.c.bf16 %v1013_v32, %v1013_v32 }
  0xf2   : > { %v980_v3 = vsel %vm979_vm15, %v972_v63, %v974_v53  ;;  %v1572_v15 = vsel %vm1461_vm2, %v890_v38, %v1452_v0  ;;  %v1568_v48 = vsel %vm1461_vm2, %v889_v37, %v1451_v52  ;;  %v1984_v0 = vld [vmem:[%s2919_s1 + $0x41] ss:$8 sm:$0xf] }
  0xf3   : > { %v1012_v19 = vmul.f32 %v995_v61, %v980_v3  ;;  %1786 = vmatprep.subr.bf16.mxu1 %v1572_v15  ;;  %v1458_v16 = vrot.slane %v1017_v36, 4 }
  0xf4   : > { %v923_v21 = vpop.permute.xlu1 %922  ;;  %1787 = vmatpush1.bf16.msra.mxu1 %v1568_v48  ;;  %v1983_v48 = vld [vmem:[%s2919_s1 + $0x40] ss:$8 sm:$0xf] }
  0xf5   : > { %v1016_v24 = vpack.c.bf16 %v1012_v19, %v1012_v19  ;;  %v927_v40 = vpop.permute.xlu0 %926  ;;  %v931_v9 = vsel %vm930_vm0, %v923_v21, %v925_v43  ;;  %v1093_v19 = vrot.slane %v1984_v0, %v2176_v6 }
  0xf6   : > { %v932_v53 = vsel %vm930_vm0, %v925_v43, %v927_v40  ;;  %v963_v20 = vmul.f32 %v946_v28, %v931_v9 }
  0xf7   : > { %v964_v45 = vmul.f32 %v950_v27, %v932_v53  ;;  %v1457_v18 = vrot.slane %v1016_v24, 4 }
  0xf8   : > { %v967_v62 = vpack.c.bf16 %v963_v20, %v963_v20  ;;  %v1072_v44 = vpop.permute.xlu1 %1071 }
  0xf9   : > { %v968_v14 = vpack.c.bf16 %v964_v45, %v964_v45  ;;  %v978_v61 = vpop.permute.xlu0 %977 }
  0xfa   : > { %v982_v7 = vsel %vm979_vm15, %v976_v60, %v978_v61  ;;  %v988_v51 = vsel %vm979_vm15, %v978_v61, %v972_v63  ;;  %v1576_v2 = vsel %vm1461_vm2, %v967_v62, %v1457_v18  ;;  %v1097_v60 = vrot.slane %v1984_v0, %v2190_v10 }
  0xfb   : > { %v1014_v47 = vmul.f32 %v1003_v1, %v982_v7  ;;  %v1015_v33 = vmul.f32 %v1007_v22, %v988_v51  ;;  %v1580_v35 = vsel %vm1461_vm2, %v968_v14, %v1458_v16  ;;  %v1044_v1 = vrot.slane %v1983_v48, %v2176_v6 }
  0xfc   : > { %1747 = vmatprep.subr.bf16.mxu0 %v1580_v35  ;;  %v929_v38 = vpop.permute.xlu1 %928  ;;  %v1052_v51 = vrot.slane %v1983_v48, %v2197_v12  ;;  %v1105_v35 = vrot.slane %v1984_v0, %v2183_v8 }
  0xfd   : > { %v1018_v52 = vpack.c.bf16 %v1014_v47, %v1014_v47  ;;  %v1019_v37 = vpack.c.bf16 %v1015_v33, %v1015_v33  ;;  %v1074_v32 = vpop.permute.xlu0 %1073  ;;  %1748 = vmatpush1.bf16.msra.mxu0 %v1576_v2  ;;  %v933_v50 = vsel %vm930_vm0, %v927_v40, %v929_v38  ;;  %v939_v43 = vsel %vm930_vm0, %v929_v38, %v923_v21 }
  0xfe   : > { %v1079_v63 = vsel %vm1077_vm1, %v1072_v44, %v1074_v32  ;;  %v965_v3 = vmul.f32 %v954_v59, %v933_v50  ;;  %v966_v28 = vmul.f32 %v958_v13, %v939_v43  ;;  %v1048_v59 = vrot.slane %v1983_v48, %v2190_v10 }
  0xff   : > { %v1459_v15 = vrot.slane %v1018_v52, 4  ;;  %v1460_v27 = vrot.slane %v1019_v37, 4  ;;  %v1111_v9 = vmul.f32 %v1097_v60, %v1079_v63  ;;  %v1056_v13 = vrot.slane %v1983_v48, %v2183_v8 }
 0x100   : > { %v969_v36 = vpack.c.bf16 %v965_v3, %v965_v3  ;;  %v970_v24 = vpack.c.bf16 %v966_v28, %v966_v28  ;;  %v1023_v53 = vpop.permute.xlu1 %1022  ;;  %v1101_v33 = vrot.slane %v1984_v0, %v2197_v12 }
 0x101   : > { %v1070_v20 = vpop.permute.xlu0 %1069  ;;  %v1115_v16 = vpack.c.bf16 %v1111_v9, %v1111_v9 }
 0x102   : > { %v1078_v40 = vsel %vm1077_vm1, %v1070_v20, %v1072_v44  ;;  %v1588_v45 = vsel %vm1461_vm2, %v970_v24, %v1460_v27  ;;  %v1584_v22 = vsel %vm1461_vm2, %v969_v36, %v1459_v15 }
 0x103   : > { %v1110_v21 = vmul.f32 %v1093_v19, %v1078_v40  ;;  %1788 = vmatprep.subr.bf16.mxu1 %v1588_v45  ;;  %v1595_v2 = vrot.slane %v1115_v16, 4 }
 0x104   : > { %v1021_v18 = vpop.permute.xlu1 %1020  ;;  %1789 = vmatpush1.bf16.msra.mxu1 %v1584_v22 }
 0x105   : > { %v1114_v62 = vpack.c.bf16 %v1110_v21, %v1110_v21  ;;  %v1029_v14 = vsel %vm1028_vm3, %v1021_v18, %v1023_v53  ;;  %v1025_v61 = vpop.permute.xlu0 %1024 }
 0x106   : > { %v1061_v7 = vmul.f32 %v1044_v1, %v1029_v14  ;;  %v1030_v44 = vsel %vm1028_vm3, %v1023_v53, %v1025_v61 }
 0x107   : > { %v1062_v47 = vmul.f32 %v1048_v59, %v1030_v44  ;;  %v1594_v38 = vrot.slane %v1114_v62, 4 }
 0x108   : > { %v1065_v52 = vpack.c.bf16 %v1061_v7, %v1061_v7  ;;  %v1027_v37 = vpop.permute.xlu1 %1026 }
 0x109   : > { %v1066_v60 = vpack.c.bf16 %v1062_v47, %v1062_v47  ;;  %v1031_v50 = vsel %vm1028_vm3, %v1025_v61, %v1027_v37  ;;  %v1037_v43 = vsel %vm1028_vm3, %v1027_v37, %v1021_v18  ;;  %v1076_v63 = vpop.permute.xlu0 %1075 }
 0x10a   : > { %v1063_v3 = vmul.f32 %v1052_v51, %v1031_v50  ;;  %v1064_v28 = vmul.f32 %v1056_v13, %v1037_v43  ;;  %v1080_v19 = vsel %vm1077_vm1, %v1074_v32, %v1076_v63  ;;  %v1086_v15 = vsel %vm1077_vm1, %v1076_v63, %v1070_v20  ;;  %v1993_v32 = vld [vmem:[%s2919_s1 + $0x62] ss:$8 sm:$0xf] }
 0x10b   : > { %v1112_v48 = vmul.f32 %v1101_v33, %v1080_v19  ;;  %v1113_v27 = vmul.f32 %v1105_v35, %v1086_v15  ;;  %v1636_v0 = vsel %vm1461_vm2, %v1066_v60, %v1595_v2  ;;  %v1632_v36 = vsel %vm1461_vm2, %v1065_v52, %v1594_v38 }
 0x10c   : > { %1749 = vmatprep.subr.bf16.mxu0 %v1636_v0  ;;  %v1067_v53 = vpack.c.bf16 %v1063_v3, %v1063_v3  ;;  %v1068_v40 = vpack.c.bf16 %v1064_v28, %v1064_v28  ;;  %v1376_v22 = vrot.slane %v1993_v32, %v2190_v10  ;;  %v1380_v10 = vrot.slane %v1993_v32, %v2197_v12 }
 0x10d   : > { %v1116_v24 = vpack.c.bf16 %v1112_v48, %v1112_v48  ;;  %v1117_v9 = vpack.c.bf16 %v1113_v27, %v1113_v27  ;;  %1750 = vmatpush1.bf16.msra.mxu0 %v1632_v36  ;;  %v1994_v12 = vcombine.low %v2520_v54, %v2520_v54 }
 0x10e   : > { %1751 = vmatprep.subr.bf16.mxu0 %v2456_v39  ;;  %v1372_v39 = vrot.slane %v1993_v32, %v2176_v6  ;;  %v1390_v59 = vmul.f32 %v1376_v22, %v2749_v30  ;;  %v1384_v6 = vrot.slane %v1993_v32, %v2183_v8 }
 0x10f   : > { %v1596_v21 = vrot.slane %v1116_v24, 4  ;;  %v1597_v45 = vrot.slane %v1117_v9, 4 }
 0x111   : > { %1752 = vmatpush1.bf16.msra.mxu0 %v2391_v25  ;;  %v1644_v20 = vsel %vm1461_vm2, %v1068_v40, %v1597_v45  ;;  %v1640_v1 = vsel %vm1461_vm2, %v1067_v53, %v1596_v21  ;;  %v1389_v25 = vmul.f32 %v1372_v39, %v2722_v5 }
 0x112   : > { %1753 = vmatprep.subr.bf16.mxu0 %v2563_v58  ;;  %1790 = vmatprep.subr.bf16.mxu1 %v1644_v20 }
 0x113   : > { %1791 = vmatpush1.bf16.msra.mxu1 %v1640_v1 }
 0x114   : > { %1792 = vmatprep.subr.bf16.mxu1 %v2394_v26  ;;  %v1393_v26 = vpack.c.bf16 %v1389_v25, %v1389_v25 }
 0x115   : > { %1754 = vmatpush1.bf16.msra.mxu0 %v2502_v23  ;;  %v1394_v23 = vpack.c.bf16 %v1390_v59, %v1390_v59 }
 0x116   : > { %1755 = vmatprep.subr.bf16.mxu0 %v2652_v31  ;;  %v1722_v8 = vsel %vm1461_vm2, %v1393_v26, 0 }
 0x117   : > { %1793 = vmatpush1.bf16.msra.mxu1 %v2459_v34  ;;  %v1392_v34 = vmul.f32 %v1384_v6, %v2719_v56 }
 0x118   : > { %1794 = vmatprep.subr.bf16.mxu1 %v2505_v46  ;;  %v1391_v46 = vmul.f32 %v1380_v10, %v2752_v55 }
 0x119   : > { %1756 = vmatpush1.bf16.msra.mxu0 %v2604_v49  ;;  %v1396_v58 = vpack.c.bf16 %v1392_v34, %v1392_v34 }
 0x11a   : > { %1757 = vmatprep.subr.bf16.mxu0 %v2713_v57 }
 0x11b   : > { %1795 = vmatpush1.bf16.msra.mxu1 %v2566_v4  ;;  %v1395_v4 = vpack.c.bf16 %v1391_v46, %v1391_v46 }
 0x11c   : > { %1796 = vmatprep.subr.bf16.mxu1 %v2607_v11 }
 0x11d   : > { %1758 = vmatpush1.bf16.msra.mxu0 %v2689_v17  ;;  %v1728_v49 = vsel %vm1461_vm2, %v1395_v4, 0 }
 0x11e   : > { %1996 = vmatprep.subr.msk.bf16.mxu0 %vm1461_vm2, %v1394_v23 }
 0x11f   : > { %1797 = vmatpush1.bf16.msra.mxu1 %v2655_v41 }
 0x120   : > { %1798 = vmatprep.subr.bf16.mxu1 %v2692_v42 }
 0x121   : > { %1760 = vmatpush1.bf16.msra.mxu0 %v1722_v8 }
 0x123   : > { %1799 = vmatpush1.bf16.msra.mxu1 %v2716_v29 }
 0x124   : > { %1766 = vmatmul.mubr.bf16.vlgmr.msra.gmra.mrb[0].mxu0 %v1994_v12  ;;  %1998 = vmatprep.subr.msk.bf16.mxu1 %vm1461_vm2, %v1396_v58 }
 0x127   : > { %1801 = vmatpush1.bf16.msra.mxu1 %v1728_v49 }
 0x12a   : > { %1807 = vmatmul.mubr.bf16.vlgmr.msra.gmra.mrb[0].mxu1 %v1994_v12 }
 0x1f7   : > { %v1767_v11 = vpop.f32.mrb[0].mxu0 }
 0x1f8   : > { %1815 = vst [vmem:[%s237_s10] sm:$0xff] %v1767_v11  ;;  %v1769_v54 = vpop.f32.mrb[1].mxu0 }
 0x1f9   : > { %1816 = vst [vmem:[%s237_s10 + $0x8] sm:$0xff] %v1769_v54  ;;  %v1819_v31 = vadd.f32 %v1769_v54, %v1767_v11  ;;  %v1771_v41 = vpop.f32.mrb[2].mxu0 }
 0x1fa   : > { %v1772_v17 = vpop.f32.mrb[3].mxu0 }
 0x1fd   : > { %v1808_v42 = vpop.f32.mrb[0].mxu1 }
 0x1fe   : > { %1817 = vst [vmem:[%s237_s10 + $0x10] sm:$0xff] %v1808_v42  ;;  %v1810_v57 = vpop.f32.mrb[1].mxu1  ;;  %v1820_v29 = vadd.f32 %v1819_v31, %v1808_v42 }
 0x1ff   : > { %1818 = vst [vmem:[%s237_s10 + $0x18] sm:$0xff] %v1810_v57  ;;  %v1812_v56 = vpop.f32.mrb[2].mxu1 }
 0x200   : > { %v1813_v5 = vpop.f32.mrb[3].mxu1  ;;  %v1821_v30 = vadd.f32 %v1820_v29, %v1810_v57 }
 0x202   : > { %1822 = vadd.xlane.f32.xlu0 %v1821_v30 }
 0x28f   : > { %v1823_v55 = vpop.xlane.xlu0 %1822 }
 0x290   : > { %v1824_v16 = vmul.f32 0.001953125, %v1823_v55 }
 0x292   : > { %v1825_v18 = vsub.f32 %v1767_v11, %v1824_v16  ;;  %v1826_v62 = vsub.f32 %v1769_v54, %v1824_v16  ;;  %v1827_v14 = vsub.f32 %v1808_v42, %v1824_v16  ;;  %1829 = vst.msk [vmem:[%s241_s14] sm:$0xff] %vm851_vm14, %v1824_v16  ;;  %v1828_v61 = vsub.f32 %v1810_v57, %v1824_v16 }
 0x294   : > { %v1830_v7 = vmul.f32 %v1825_v18, %v1825_v18  ;;  %v1831_v44 = vmul.f32 %v1826_v62, %v1826_v62  ;;  %v1832_v51 = vmul.f32 %v1827_v14, %v1827_v14  ;;  %v1833_v47 = vmul.f32 %v1828_v61, %v1828_v61 }
 0x296   : > { %v1834_v13 = vadd.f32 %v1831_v44, %v1830_v7 }
 0x298   : > { %v1835_v33 = vadd.f32 %v1834_v13, %v1832_v51 }
 0x29a   : > { %v1836_v35 = vadd.f32 %v1835_v33, %v1833_v47 }
 0x29c   : > { %1837 = vadd.xlane.f32.xlu1 %v1836_v35 }
 0x329   : > { %v1838_v2 = vpop.xlane.xlu1 %1837 }
 0x32a   : > { %1839 = vst.msk [vmem:[%s245_s15] sm:$0xff] %vm851_vm14, %v1838_v2 }
 0x32b PF: > { %s16_s18 = sadd.s32 1, %s2041_s18  }
 0x32c   : > { %p13_p4 = scmp.ge.s32.totalorder %s16_s18, 4  }
 0x32e   :  { %15 = sbr.rel (!%p13_p4) target bundleno = 1 (0x1), region = 112 }

// kernel: conv_block_forward.4
= control target key start
LH: loop header
LB: loop body
LE: loop exit
PB: predicated region body
PF: predicated region fallthrough
CT: control target
= control target key end

     0   :  { %s2177_s24 = smov 0   ;;  %s3039_s0 = inlined_call_operand.vmem [shape: f32[2,8,512], index: 0, kind: input, shape index: {}]   ;;  %s3040_s1 = inlined_call_operand.vmem [shape: f32[8,1], index: 1, kind: input, shape index: {}]   ;;  %s3041_s2 = inlined_call_operand.vmem [shape: f32[8,1], index: 2, kind: input, shape index: {}]   ;;  %s3042_s3 = inlined_call_operand.vmem [shape: f32[27,512], index: 3, kind: input, shape index: {}]   ;;  %s3043_s4 = inlined_call_operand.vmem [shape: bf16[8,216], index: 4, kind: input, shape index: {}]   ;;  %s3044_s5 = inlined_call_operand.vmem [shape: f32[2,8,512], index: 5, kind: output, shape index: {0}]   ;;  %s3045_s6 = inlined_call_operand.vmem [shape: f32[2,8,1], index: 6, kind: output, shape index: {1}]   ;;  %s3046_s7 = inlined_call_operand.vmem [shape: f32[2,8,1], index: 7, kind: output, shape index: {2}]  }
   0x1 LB: > { %s2035_s25 = sadd.s32 4294967295, %s2117_s24   ;;  %p2039_p0 = scmp.ge.s32.totalorder %s2117_s24, 1  ;;  %s2117_s24 = sphi %s2177_s24, %s18_s24  }
   0x2   : > { %p242_p1 = scmp.lt.s32.totalorder %s2117_s24, 3 }
   0x4   : > { %p243_p2 = pnand %p2039_p0, %p242_p1 }
   0x5   : > { %v305_v0 = vld [vmem:[%s3040_s1] sm:$0xff] (!%p243_p2)  ;;  %v2119_v1 = vmov (!%p243_p2), 0   ;;  %p282_p3 = scmp.lt.s32.totalorder (!%p243_p2), %s2035_s25, 1  ;;  %s2120_s11 = smov (!%p243_p2), 72   ;;  %v353_v21 = vlaneseq (!%p243_p2)  ;;  %vm390_vm0 = vcmask (!%p243_p2), 588800   ;;  %vm342_vm1 = vcmask (!%p243_p2), 596992  }
   0x6   : > { %246 = sbr.rel (%p243_p2) target bundleno = 937 (0x3a9), region = 40  ;;  %2108 = vset.pattern.permute.xlu0 (!%p243_p2), %v2119_v1  ;;  %v315_v2 = vld [vmem:[%s3041_s2] sm:$0xff] (!%p243_p2)  ;;  %s2121_s12 = smov (!%p243_p2), 73   ;;  %vm1539_vm2 = vcmask (!%p243_p2), 1043456   ;;  %vm488_vm3 = vcmask (!%p243_p2), 531456   ;;  %vm439_vm4 = vcmask (!%p243_p2), 580608  }
   0x7   : > { %308 = vperm.xlu0 (!%p243_p2), %2108, %v305_v0   ;;  %s2122_s13 = smov (!%p243_p2), 65   ;;  %s2123_s14 = smov (!%p243_p2), 71   ;;  %v354_v22 = vshrl.u32 (!%p243_p2), %v353_v21, 7  ;;  %v2267_v23 = vld [vmem:[%s3042_s3 + $0x1] ss:$8 sm:$0xf] (!%p243_p2) }
   0x8   : > { %s2124_s15 = smov (!%p243_p2), 63   ;;  %s2125_s16 = smov (!%p243_p2), 64   ;;  %v2272_v24 = vld [vmem:[%s3042_s3 + $0x43] ss:$8 sm:$0xf] (!%p243_p2)  ;;  %vm586_vm5 = vcmask (!%p243_p2), 515072  }
   0x9   : > { %s2126_s17 = smov (!%p243_p2), 56   ;;  %s2127_s18 = smov (!%p243_p2), 57   ;;  %v2274_v25 = vsub.s32 (!%p243_p2), 0, %v354_v22  ;;  %v2276_v26 = vsub.s32 (!%p243_p2), 3, %v354_v22  ;;  %v2278_v27 = vsub.s32 (!%p243_p2), 1, %v354_v22  ;;  %v2280_v28 = vsub.s32 (!%p243_p2), 2, %v354_v22 }
   0xa   : > { %s2128_s19 = smov (!%p243_p2), 9   ;;  %s2129_s20 = smov (!%p243_p2), 55   ;;  %v2285_v29 = vld [vmem:[%s3042_s3] ss:$8 sm:$0xf] (!%p243_p2)  ;;  %vm1795_vm6 = vcmask (!%p243_p2), 719872  }
   0xb   : > { %318 = vperm.xlu0 (!%p243_p2), %2108, %v315_v2   ;;  %s2130_s21 = smov (!%p243_p2), 7   ;;  %s2131_s22 = smov (!%p243_p2), 8   ;;  %v405_v30 = vrot.slane (!%p243_p2), %v2267_v23, %v2274_v25  ;;  %v1245_v31 = vrot.slane (!%p243_p2), %v2272_v24, %v2276_v26  ;;  %v2297_v32 = vld [vmem:[%s3042_s3 + $0x42] ss:$8 sm:$0xf] (!%p243_p2)  ;;  %v409_v34 = vrot.slane (!%p243_p2), %v2267_v23, %v2278_v27  ;;  %v1233_v35 = vrot.slane (!%p243_p2), %v2272_v24, %v2274_v25 }
   0xc   : > { %s2132_s23 = smov (!%p243_p2), 1   ;;  %s2133_s26 = smov (!%p243_p2), 121   ;;  %v2302_v33 = vld [vmem:[%s3042_s3 + $0x3] ss:$8 sm:$0xf] (!%p243_p2)  ;;  %v413_v36 = vrot.slane (!%p243_p2), %v2267_v23, %v2280_v28  ;;  %v417_v37 = vrot.slane (!%p243_p2), %v2267_v23, %v2276_v26  ;;  %v1237_v41 = vrot.slane (!%p243_p2), %v2272_v24, %v2278_v27  ;;  %v1241_v42 = vrot.slane (!%p243_p2), %v2272_v24, %v2280_v28 }
   0xd   : > { %s3067_s25 = smov (!%p282_p3, %s2035_s25), 1  ;;  %s2134_s27 = smov 127   ;;  %v2315_v38 = vld [vmem:[%s3042_s3 + $0x45] ss:$8 sm:$0xf]  ;;  %v360_v43 = vrot.slane %v2285_v29, %v2278_v27  ;;  %v1202_v44 = vrot.slane %v2297_v32, %v2274_v25  ;;  %v356_v45 = vrot.slane %v2285_v29, %v2274_v25  ;;  %v1214_v46 = vrot.slane %v2297_v32, %v2276_v26 }
   0xe   : > { %s2080_s30 = sshll.u32 %s3067_s25, 5  ;;  %v503_v47 = vrot.slane %v2302_v33, %v2274_v25  ;;  %v507_v48 = vrot.slane %v2302_v33, %v2278_v27  ;;  %v1295_v49 = vrot.slane %v2315_v38, %v2274_v25  ;;  %v1307_v50 = vrot.slane %v2315_v38, %v2276_v26  ;;  %v2346_v51 = vld [vmem:[%s3042_s3 + $0x2] ss:$8 sm:$0xf]  ;;  %s2044_s8 = sshll.u32 %s3067_s25, 3 }
   0xf   : > { %s286_s10 = scalar_lea.vmem %s3039_s0, %s2080_s30  ;;  %v2351_v52 = vld [vmem:[%s3042_s3 + $0x44] ss:$8 sm:$0xf]  ;;  %v364_v53 = vrot.slane %v2285_v29, %v2280_v28  ;;  %v368_v54 = vrot.slane %v2285_v29, %v2276_v26  ;;  %v1206_v55 = vrot.slane %v2297_v32, %v2278_v27  ;;  %v1210_v56 = vrot.slane %v2297_v32, %v2280_v28  ;;  %v2374_v63 = vld [vmem:[%s3042_s3 + $0x5] ss:$8 sm:$0xf]  ;;  %s291_s29 = scalar_lea.vmem %s3044_s5, %s2080_s30 }
  0x10   : > { %v301_v4 = vld [vmem:[%s286_s10] sm:$0xff]  ;;  %v304_v5 = vld [vmem:[%s286_s10 + $0x18] sm:$0xff]  ;;  %v302_v6 = vld [vmem:[%s286_s10 + $0x8] sm:$0xff]  ;;  %v511_v59 = vrot.slane %v2302_v33, %v2280_v28  ;;  %v515_v60 = vrot.slane %v2302_v33, %v2276_v26  ;;  %v1299_v61 = vrot.slane %v2315_v38, %v2278_v27  ;;  %vm537_vm7 = vcmask 523264  }
  0x11   : > { %v303_v13 = vld [vmem:[%s286_s10 + $0x10] sm:$0xff]  ;;  %v2582_v33 = vld [vmem:[%s3043_s4] sm:$0xff]  ;;  %vm684_vm8 = vcmask 457728   ;;  %vm635_vm9 = vcmask 465920   ;;  %vm782_vm10 = vcmask 72704   ;;  %vm733_vm11 = vcmask 449536   ;;  %s295_s10 = scalar_lea.vmem %s3045_s6, %s2044_s8 }
  0x12   : > { %v2379_v0 = vld [vmem:[%s3042_s3 + $0x47] ss:$8 sm:$0xf]  ;;  %vm880_vm12 = vcmask 56320   ;;  %vm831_vm13 = vcmask 64512   ;;  %vm929_vm14 = vcmask 7168  }
  0x13   : > { %vm1057_vm15 = vcmask 990208  }
  0x86   : > { %v309_v3 = vpop.permute.xlu0 %308 }
  0x87   : > { %v311_v7 = vmul.f32 %v309_v3, %v301_v4  ;;  %v314_v8 = vmul.f32 %v309_v3, %v304_v5  ;;  %v312_v10 = vmul.f32 %v309_v3, %v302_v6  ;;  %v313_v17 = vmul.f32 %v309_v3, %v303_v13 }
  0x88   : > { %v458_v3 = vrot.slane %v2346_v51, %v2278_v27  ;;  %v1264_v4 = vrot.slane %v2351_v52, %v2274_v25 }
  0x8a   : > { %v319_v9 = vpop.permute.xlu0 %318 }
  0x8b   : > { %v321_v11 = vadd.f32 %v319_v9, %v311_v7  ;;  %v324_v12 = vadd.f32 %v319_v9, %v314_v8  ;;  %v322_v14 = vadd.f32 %v319_v9, %v312_v10  ;;  %v323_v18 = vadd.f32 %v319_v9, %v313_v17 }
  0x8c   : > { %v454_v7 = vrot.slane %v2346_v51, %v2274_v25  ;;  %v1276_v8 = vrot.slane %v2351_v52, %v2276_v26 }
  0x8d   : > { %v2199_v15 = vmax.f32 %v321_v11, 0.0  ;;  %v2201_v16 = vmax.f32 %v324_v12, 0.0  ;;  %v2205_v19 = vmax.f32 %v322_v14, 0.0  ;;  %v2209_v20 = vmax.f32 %v323_v18, 0.0 }
  0x8f   : > { %381 = vrot.lane.b32.xlu0 %v2201_v16, %s2120_s11  ;;  %384 = vrot.lane.b32.xlu1 %v2199_v15, %s2120_s11 }
  0x93   : > { %338 = vrot.lane.b32.xlu0 %v2205_v19, %s2121_s12  ;;  %386 = vrot.lane.b32.xlu1 %v2205_v19, %s2120_s11 }
  0x97   : > { %388 = vrot.lane.b32.xlu0 %v2209_v20, %s2120_s11  ;;  %336 = vrot.lane.b32.xlu1 %v2199_v15, %s2121_s12 }
  0x9b   : > { %484 = vrot.lane.b32.xlu0 %v2205_v19, %s2122_s13  ;;  %330 = vrot.lane.b32.xlu1 %v2201_v16, %s2121_s12 }
  0x9f   : > { %479 = vrot.lane.b32.xlu0 %v2201_v16, %s2122_s13  ;;  %482 = vrot.lane.b32.xlu1 %v2199_v15, %s2122_s13 }
  0xa3   : > { %435 = vrot.lane.b32.xlu0 %v2205_v19, %s2123_s14  ;;  %340 = vrot.lane.b32.xlu1 %v2209_v20, %s2121_s12  ;;  %s2136_s12 = smov 120  }
  0xa7   : > { %486 = vrot.lane.b32.xlu0 %v2209_v20, %s2122_s13  ;;  %433 = vrot.lane.b32.xlu1 %v2199_v15, %s2123_s14 }
  0xab   : > { %582 = vrot.lane.b32.xlu0 %v2205_v19, %s2124_s15  ;;  %430 = vrot.lane.b32.xlu1 %v2201_v16, %s2123_s14 }
  0xaf   : > { %577 = vrot.lane.b32.xlu0 %v2201_v16, %s2124_s15  ;;  %580 = vrot.lane.b32.xlu1 %v2199_v15, %s2124_s15 }
  0xb3   : > { %533 = vrot.lane.b32.xlu0 %v2205_v19, %s2125_s16  ;;  %437 = vrot.lane.b32.xlu1 %v2209_v20, %s2123_s14 }
  0xb7   : > { %584 = vrot.lane.b32.xlu0 %v2209_v20, %s2124_s15  ;;  %531 = vrot.lane.b32.xlu1 %v2199_v15, %s2125_s16 }
  0xbb   : > { %680 = vrot.lane.b32.xlu0 %v2205_v19, %s2126_s17  ;;  %528 = vrot.lane.b32.xlu1 %v2201_v16, %s2125_s16 }
  0xbf   : > { %675 = vrot.lane.b32.xlu0 %v2201_v16, %s2126_s17  ;;  %678 = vrot.lane.b32.xlu1 %v2199_v15, %s2126_s17 }
  0xc3   : > { %631 = vrot.lane.b32.xlu0 %v2205_v19, %s2127_s18  ;;  %535 = vrot.lane.b32.xlu1 %v2209_v20, %s2125_s16 }
  0xc7   : > { %682 = vrot.lane.b32.xlu0 %v2209_v20, %s2126_s17  ;;  %629 = vrot.lane.b32.xlu1 %v2199_v15, %s2127_s18 }
  0xcb   : > { %778 = vrot.lane.b32.xlu0 %v2205_v19, %s2128_s19  ;;  %626 = vrot.lane.b32.xlu1 %v2201_v16, %s2127_s18 }
  0xcf   : > { %773 = vrot.lane.b32.xlu0 %v2201_v16, %s2128_s19  ;;  %776 = vrot.lane.b32.xlu1 %v2199_v15, %s2128_s19 }
  0xd3   : > { %729 = vrot.lane.b32.xlu0 %v2205_v19, %s2129_s20  ;;  %633 = vrot.lane.b32.xlu1 %v2209_v20, %s2127_s18  ;;  %s2135_s18 = smov 119  }
  0xd7   : > { %780 = vrot.lane.b32.xlu0 %v2209_v20, %s2128_s19  ;;  %727 = vrot.lane.b32.xlu1 %v2199_v15, %s2129_s20 }
  0xdb   : > { %876 = vrot.lane.b32.xlu0 %v2205_v19, %s2130_s21  ;;  %724 = vrot.lane.b32.xlu1 %v2201_v16, %s2129_s20 }
  0xdf   : > { %871 = vrot.lane.b32.xlu0 %v2201_v16, %s2130_s21  ;;  %874 = vrot.lane.b32.xlu1 %v2199_v15, %s2130_s21 }
  0xe3   : > { %827 = vrot.lane.b32.xlu0 %v2205_v19, %s2131_s22  ;;  %731 = vrot.lane.b32.xlu1 %v2209_v20, %s2129_s20 }
  0xe7   : > { %878 = vrot.lane.b32.xlu0 %v2209_v20, %s2130_s21  ;;  %825 = vrot.lane.b32.xlu1 %v2199_v15, %s2131_s22 }
  0xeb   : > { %923 = vrot.lane.b32.xlu0 %v2199_v15, %s2132_s23  ;;  %822 = vrot.lane.b32.xlu1 %v2201_v16, %s2131_s22 }
  0xef   : > { %920 = vrot.lane.b32.xlu0 %v2201_v16, %s2132_s23  ;;  %829 = vrot.lane.b32.xlu1 %v2209_v20, %s2131_s22 }
  0xf3   : > { %1053 = vrot.lane.b32.xlu0 %v2209_v20, %s2133_s26  ;;  %925 = vrot.lane.b32.xlu1 %v2205_v19, %s2132_s23 }
  0xf7   : > { %1049 = vrot.lane.b32.xlu0 %v2199_v15, %s2133_s26  ;;  %1051 = vrot.lane.b32.xlu1 %v2205_v19, %s2133_s26 }
  0xfb   : > { %1004 = vrot.lane.b32.xlu0 %v2209_v20, %s2134_s27  ;;  %927 = vrot.lane.b32.xlu1 %v2209_v20, %s2132_s23 }
  0xff   : > { %1055 = vrot.lane.b32.xlu0 %v2201_v16, %s2133_s26  ;;  %1002 = vrot.lane.b32.xlu1 %v2205_v19, %s2134_s27 }
 0x101   : > { %v2317_v39 = vpop.permute.xlu0 %381  ;;  %v385_v40 = vpop.permute.xlu1 %384 }
 0x102   : > { %v398_v1 = vsel %vm390_vm0, %v2317_v39, %v385_v40 }
 0x103   : > { %1151 = vrot.lane.b32.xlu0 %v2209_v20, %s2135_s18  ;;  %1000 = vrot.lane.b32.xlu1 %v2199_v15, %s2134_s27  ;;  %v422_v12 = vmul.f32 %v405_v30, %v398_v1  ;;  %v1253_v22 = vmul.f32 %v1245_v31, %v398_v1 }
 0x105   : > { %v2361_v57 = vpop.permute.xlu0 %338  ;;  %v387_v58 = vpop.permute.xlu1 %386 }
 0x106   : > { %v391_v2 = vsel %vm390_vm0, %v385_v40, %v387_v58  ;;  %v2417_v40 = vld [vmem:[%s3042_s3 + $0x4] ss:$8 sm:$0xf] }
 0x107   : > { %v423_v5 = vmul.f32 %v409_v34, %v391_v2  ;;  %v1250_v6 = vmul.f32 %v1233_v35, %v391_v2  ;;  %1147 = vrot.lane.b32.xlu0 %v2199_v15, %s2135_s18  ;;  %1149 = vrot.lane.b32.xlu1 %v2205_v19, %s2135_s18  ;;  %v2422_v2 = vld [vmem:[%s3042_s3 + $0x46] ss:$8 sm:$0xf] }
 0x109   : > { %v389_v13 = vpop.permute.xlu0 %388  ;;  %v337_v14 = vpop.permute.xlu1 %336  ;;  %v427_v31 = vpack.c.bf16 %v423_v5, %v423_v5  ;;  %v1254_v1 = vpack.c.bf16 %v1250_v6, %v1250_v6  ;;  %v426_v6 = vpack.c.bf16 %v422_v12, %v422_v12  ;;  %v2447_v12 = vld [vmem:[%s3042_s3 + $0x7] ss:$8 sm:$0xf] }
 0x10a   : > { %v343_v34 = vsel %vm342_vm1, %v337_v14, %v2361_v57 }
 0x10b   : > { %1102 = vrot.lane.b32.xlu0 %v2209_v20, %s2136_s12  ;;  %1006 = vrot.lane.b32.xlu1 %v2201_v16, %s2134_s27  ;;  %v374_v11 = vmul.f32 %v360_v43, %v343_v34  ;;  %v1219_v30 = vmul.f32 %v1202_v44, %v343_v34  ;;  %v1257_v44 = vpack.c.bf16 %v1253_v22, %v1253_v22  ;;  %v1480_v5 = vrot.slane %v427_v31, 4 }
 0x10c   : > { %v1680_v62 = vrot.slane %v1254_v1, 4  ;;  %v392_v22 = vsel %vm390_vm0, %v387_v58, %v389_v13  ;;  %v1479_v1 = vrot.slane %v426_v6, 4 }
 0x10d   : > { %v2434_v9 = vpop.permute.xlu0 %484  ;;  %v331_v21 = vpop.permute.xlu1 %330  ;;  %v378_v34 = vpack.c.bf16 %v374_v11, %v374_v11  ;;  %v1223_v17 = vpack.c.bf16 %v1219_v30, %v1219_v30  ;;  %v393_v30 = vsel %vm390_vm0, %v389_v13, %v2317_v39  ;;  %v2471_v39 = vld [vmem:[%s3042_s3 + $0x61] ss:$8 sm:$0xf]  ;;  %v1683_v13 = vrot.slane %v1257_v44, 4 }
 0x10e   : > { %v350_v18 = vsel %vm342_vm1, %v331_v21, %v337_v14  ;;  %v425_v6 = vmul.f32 %v417_v37, %v393_v30  ;;  %v1419_v44 = vrot.slane %v2471_v39, %v2274_v25  ;;  %v1252_v37 = vmul.f32 %v1241_v42, %v393_v30 }
 0x10f   : > { %1153 = vrot.lane.b32.xlu0 %v2201_v16, %s2135_s18  ;;  %1100 = vrot.lane.b32.xlu1 %v2205_v19, %s2136_s12  ;;  %v373_v31 = vmul.f32 %v356_v45, %v350_v18  ;;  %v1222_v14 = vmul.f32 %v1214_v46, %v350_v18  ;;  %v1546_v35 = vsel %vm1539_vm2, %v378_v34, %v1480_v5  ;;  %vm1008_vm0 = vcmask 1039360  }
 0x110   : > { %v2474_v45 = vsel %vm1539_vm2, %v1223_v17, %v1680_v62  ;;  %1811 = vmatprep.subr.bf16.mxu0 %v1546_v35  ;;  %v424_v5 = vmul.f32 %v413_v36, %v392_v22  ;;  %v1251_v62 = vmul.f32 %v1237_v41, %v392_v22  ;;  %v703_v17 = vrot.slane %v2447_v12, %v2278_v27 }
 0x111   : > { %v480_v43 = vpop.permute.xlu0 %479  ;;  %v483_v10 = vpop.permute.xlu1 %482  ;;  %v377_v11 = vpack.c.bf16 %v373_v31, %v373_v31  ;;  %v1226_v46 = vpack.c.bf16 %v1222_v14, %v1222_v14  ;;  %v560_v31 = vrot.slane %v2417_v40, %v2280_v28  ;;  %v429_v30 = vpack.c.bf16 %v425_v6, %v425_v6 }
 0x112   : > { %v489_v18 = vsel %vm488_vm3, %v483_v10, %v2434_v9  ;;  %v496_v41 = vsel %vm488_vm3, %v480_v43, %v483_v10  ;;  %v564_v10 = vrot.slane %v2417_v40, %v2276_v26 }
 0x113   : > { %1098 = vrot.lane.b32.xlu1 %v2199_v15, %s2136_s12  ;;  %v1542_v35 = vsel %vm1539_vm2, %v377_v11, %v1479_v1  ;;  %v2497_v23 = vsel %vm1539_vm2, %v1226_v46, %v1683_v13  ;;  %v521_v34 = vmul.f32 %v507_v48, %v489_v18  ;;  %v1312_v14 = vmul.f32 %v1295_v49, %v489_v18 }
 0x114   : > { %1812 = vmatpush1.bf16.msra.mxu0 %v1542_v35  ;;  %v428_v48 = vpack.c.bf16 %v424_v5, %v424_v5  ;;  %v1255_v1 = vpack.c.bf16 %v1251_v62, %v1251_v62  ;;  %v1330_v13 = vrot.slane %v2422_v2, %v2278_v27  ;;  %v520_v49 = vmul.f32 %v503_v47, %v496_v41 }
 0x115   : > { %v2506_v11 = vpop.permute.xlu0 %435  ;;  %v341_v22 = vpop.permute.xlu1 %340  ;;  %v1256_v18 = vpack.c.bf16 %v1252_v37, %v1252_v37  ;;  %v525_v5 = vpack.c.bf16 %v521_v34, %v521_v34  ;;  %v1315_v6 = vmul.f32 %v1307_v50, %v496_v41  ;;  %v1316_v35 = vpack.c.bf16 %v1312_v14, %v1312_v14 }
 0x116   : > { %v344_v24 = vsel %vm342_vm1, %v2361_v57, %v341_v22  ;;  %v345_v42 = vsel %vm342_vm1, %v341_v22, %v331_v21  ;;  %v1482_v37 = vrot.slane %v429_v30, 4  ;;  %v1681_v50 = vrot.slane %v1255_v1, 4 }
 0x117   : > { %1104 = vrot.lane.b32.xlu1 %v2201_v16, %s2136_s12  ;;  %v375_v57 = vmul.f32 %v364_v53, %v344_v24  ;;  %v376_v21 = vmul.f32 %v368_v54, %v345_v42  ;;  %v1220_v46 = vmul.f32 %v1206_v55, %v344_v24  ;;  %v1334_v53 = vrot.slane %v2422_v2, %v2280_v28  ;;  %s299_s12 = scalar_lea.vmem %s3046_s7, %s2044_s8 }
 0x118   : > { %v1221_v54 = vmul.f32 %v1210_v56, %v345_v42  ;;  %v1481_v55 = vrot.slane %v428_v48, 4  ;;  %v524_v41 = vpack.c.bf16 %v520_v49, %v520_v49  ;;  %v1319_v1 = vpack.c.bf16 %v1315_v6, %v1315_v6 }
 0x119   : > { %v487_v62 = vpop.permute.xlu0 %486  ;;  %v434_v47 = vpop.permute.xlu1 %433  ;;  %v379_v22 = vpack.c.bf16 %v375_v57, %v375_v57  ;;  %v380_v29 = vpack.c.bf16 %v376_v21, %v376_v21  ;;  %v1224_v34 = vpack.c.bf16 %v1220_v46, %v1220_v46  ;;  %v1488_v49 = vrot.slane %v525_v5, 4 }
 0x11a   : > { %v440_v24 = vsel %vm439_vm4, %v434_v47, %v2506_v11  ;;  %v490_v36 = vsel %vm488_vm3, %v2434_v9, %v487_v62  ;;  %v491_v58 = vsel %vm488_vm3, %v487_v62, %v480_v43  ;;  %v1688_v9 = vrot.slane %v1316_v35, 4 }
 0x11b   : > { %v472_v14 = vmul.f32 %v458_v3, %v440_v24  ;;  %v1281_v32 = vmul.f32 %v1264_v4, %v440_v24  ;;  %v1554_v56 = vsel %vm1539_vm2, %v380_v29, %v1482_v37  ;;  %v1550_v48 = vsel %vm1539_vm2, %v379_v22, %v1481_v55 }
 0x11c   : > { %v1225_v57 = vpack.c.bf16 %v1221_v54, %v1221_v54  ;;  %1852 = vmatprep.subr.bf16.mxu1 %v1554_v56  ;;  %v2559_v46 = vsel %vm1539_vm2, %v1224_v34, %v1681_v50  ;;  %v1682_v4 = vrot.slane %v1256_v18, 4  ;;  %v522_v62 = vmul.f32 %v511_v59, %v490_v36 }
 0x11d   : > { %v2554_v42 = vpop.permute.xlu0 %582  ;;  %v431_v30 = vpop.permute.xlu1 %430  ;;  %v476_v43 = vpack.c.bf16 %v472_v14, %v472_v14  ;;  %v1285_v21 = vpack.c.bf16 %v1281_v32, %v1281_v32  ;;  %1853 = vmatpush1.bf16.msra.mxu1 %v1550_v48  ;;  %v523_v5 = vmul.f32 %v515_v60, %v491_v58  ;;  %v707_v6 = vrot.slane %v2447_v12, %v2280_v28 }
 0x11e   : > { %v447_v3 = vsel %vm439_vm4, %v431_v30, %v434_v47  ;;  %v1313_v60 = vmul.f32 %v1299_v61, %v490_v36  ;;  %v711_v54 = vrot.slane %v2447_v12, %v2276_v26  ;;  %v2593_v55 = vsel %vm1539_vm2, %v1225_v57, %v1682_v4 }
 0x11f   : > { %v471_v35 = vmul.f32 %v454_v7, %v447_v3  ;;  %v1284_v47 = vmul.f32 %v1276_v8, %v447_v3  ;;  %v1562_v18 = vsel %vm1539_vm2, %v476_v43, %v1488_v49  ;;  %v2577_v59 = vsel %vm1539_vm2, %v1285_v21, %v1688_v9 }
 0x120   : > { %v3047_v7 = vrot.slane %v2315_v38, %v2280_v28  ;;  %1813 = vmatprep.subr.bf16.mxu0 %v1562_v18  ;;  %v1487_v37 = vrot.slane %v524_v41, 4  ;;  %v1691_v34 = vrot.slane %v1319_v1, 4  ;;  %v526_v14 = vpack.c.bf16 %v522_v62, %v522_v62 }
 0x121   : > { %v578_v22 = vpop.permute.xlu0 %577  ;;  %v581_v29 = vpop.permute.xlu1 %580  ;;  %v475_v24 = vpack.c.bf16 %v471_v35, %v471_v35  ;;  %v1288_v50 = vpack.c.bf16 %v1284_v47, %v1284_v47  ;;  %v2073_v61 = vcombine.high %v2582_v33, %v2582_v33  ;;  %v527_v38 = vpack.c.bf16 %v523_v5, %v523_v5 }
 0x122   : > { %v1314_v8 = vmul.f32 %v3047_v7, %v491_v58  ;;  %v587_v32 = vsel %vm586_vm5, %v581_v29, %v2554_v42  ;;  %v594_v58 = vsel %vm586_vm5, %v578_v22, %v581_v29  ;;  %v1317_v1 = vpack.c.bf16 %v1313_v60, %v1313_v60 }
 0x123   : > { %v1558_v36 = vsel %vm1539_vm2, %v475_v24, %v1487_v37  ;;  %v2604_v41 = vsel %vm1539_vm2, %v1288_v50, %v1691_v34  ;;  %v3048_v43 = vrot.slane %v2374_v63, %v2278_v27  ;;  %v3049_v3 = vrot.slane %v2346_v51, %v2280_v28  ;;  %2075 = vmatprep.mubr.msk.bf16.mxu0 %vm1795_vm6, %v2073_v61 }
 0x124   : > { %v1318_v49 = vpack.c.bf16 %v1314_v8, %v1314_v8  ;;  %1814 = vmatpush1.bf16.msra.mxu0 %v1558_v36  ;;  %v3050_v62 = vrot.slane %v2346_v51, %v2276_v26  ;;  %2077 = vmatprep.mubr.msk.bf16.mxu1 %vm1795_vm6, %v2073_v61  ;;  %v3052_v47 = vrot.slane %v2351_v52, %v2278_v27  ;;  %v1490_v61 = vrot.slane %v527_v38, 4  ;;  %v2646_v38 = vld [vmem:[%s3042_s3 + $0x6] ss:$8 sm:$0xf] }
 0x125   : > { %v2601_v56 = vpop.permute.xlu0 %533  ;;  %v438_v48 = vpop.permute.xlu1 %437  ;;  %v619_v21 = vmul.f32 %v3048_v43, %v587_v32  ;;  %v3053_v29 = vrot.slane %v2351_v52, %v2280_v28  ;;  %v3054_v51 = vrot.slane %v2379_v0, %v2274_v25  ;;  %v3055_v8 = vrot.slane %v2379_v0, %v2276_v26 }
 0x126   : > { %v441_v9 = vsel %vm439_vm4, %v2506_v11, %v438_v48  ;;  %v442_v57 = vsel %vm439_vm4, %v438_v48, %v431_v30  ;;  %v1489_v11 = vrot.slane %v526_v14, 4  ;;  %v3051_v30 = vrot.slane %v2374_v63, %v2274_v25 }
 0x127   : > { %v473_v4 = vmul.f32 %v3049_v3, %v441_v9  ;;  %v474_v5 = vmul.f32 %v3050_v62, %v442_v57  ;;  %v1282_v18 = vmul.f32 %v3052_v47, %v441_v9  ;;  %v1283_v60 = vmul.f32 %v3053_v29, %v442_v57 }
 0x128   : > { %v618_v35 = vmul.f32 %v3051_v30, %v594_v58  ;;  %v1374_v7 = vmul.f32 %v3054_v51, %v587_v32  ;;  %v1377_v37 = vmul.f32 %v3055_v8, %v594_v58  ;;  %v1689_v36 = vrot.slane %v1317_v1, 4 }
 0x129   : > { %v477_v34 = vpack.c.bf16 %v473_v4, %v473_v4  ;;  %v478_v24 = vpack.c.bf16 %v474_v5, %v474_v5  ;;  %v585_v50 = vpop.permute.xlu0 %584  ;;  %v532_v14 = vpop.permute.xlu1 %531  ;;  %v1286_v48 = vpack.c.bf16 %v1282_v18, %v1282_v18  ;;  %v1287_v9 = vpack.c.bf16 %v1283_v60, %v1283_v60 }
 0x12a   : > { %v1690_v43 = vrot.slane %v1318_v49, 4  ;;  %v623_v52 = vpack.c.bf16 %v619_v21, %v619_v21  ;;  %v588_v57 = vsel %vm586_vm5, %v2554_v42, %v585_v50  ;;  %v1423_v32 = vrot.slane %v2471_v39, %v2278_v27 }
 0x12b   : > { %v538_v58 = vsel %vm537_vm7, %v532_v14, %v2601_v56  ;;  %v1570_v3 = vsel %vm1539_vm2, %v478_v24, %v1490_v61  ;;  %v1566_v4 = vsel %vm1539_vm2, %v477_v34, %v1489_v11  ;;  %v2649_v1 = vsel %vm1539_vm2, %v1286_v48, %v1689_v36  ;;  %v2680_v48 = vld [vmem:[%s3042_s3 + $0x60] ss:$8 sm:$0xf] }
 0x12c   : > { %v622_v49 = vpack.c.bf16 %v618_v35, %v618_v35  ;;  %v1378_v42 = vpack.c.bf16 %v1374_v7, %v1374_v7  ;;  %v1381_v21 = vpack.c.bf16 %v1377_v37, %v1377_v37  ;;  %v589_v62 = vsel %vm586_vm5, %v585_v50, %v578_v22  ;;  %1854 = vmatprep.subr.bf16.mxu1 %v1570_v3 }
 0x12d   : > { %v2652_v5 = vpop.permute.xlu0 %680  ;;  %v529_v30 = vpop.permute.xlu1 %528  ;;  %v3056_v11 = vrot.slane %v2417_v40, %v2278_v27  ;;  %v3057_v18 = vrot.slane %v2422_v2, %v2274_v25  ;;  %1855 = vmatpush1.bf16.msra.mxu1 %v1566_v4  ;;  %v2662_v35 = vsel %vm1539_vm2, %v1287_v9, %v1690_v43  ;;  %v1496_v51 = vrot.slane %v623_v52, 4 }
 0x12e   : > { %v545_v60 = vsel %vm537_vm7, %v529_v30, %v532_v14  ;;  %v3058_v22 = vrot.slane %v2374_v63, %v2280_v28  ;;  %v1427_v8 = vrot.slane %v2471_v39, %v2280_v28  ;;  %v654_v37 = vrot.slane %v2646_v38, %v2278_v27 }
 0x12f   : > { %v570_v47 = vmul.f32 %v3056_v11, %v538_v58  ;;  %v1343_v29 = vmul.f32 %v3057_v18, %v538_v58  ;;  %v3059_v50 = vrot.slane %v2417_v40, %v2274_v25  ;;  %v3060_v61 = vrot.slane %v2422_v2, %v2276_v26 }
 0x130   : > { %v620_v7 = vmul.f32 %v3058_v22, %v588_v57  ;;  %v1495_v9 = vrot.slane %v622_v49, 4  ;;  %v1696_v43 = vrot.slane %v1378_v42, 4  ;;  %v1699_v52 = vrot.slane %v1381_v21, 4  ;;  %v2692_v49 = vld [vmem:[%s3042_s3 + $0x21] ss:$8 sm:$0xf] }
 0x131   : > { %v574_v34 = vpack.c.bf16 %v570_v47, %v570_v47  ;;  %v1347_v24 = vpack.c.bf16 %v1343_v29, %v1343_v29  ;;  %v569_v14 = vmul.f32 %v3059_v50, %v545_v60  ;;  %v1346_v36 = vmul.f32 %v3060_v61, %v545_v60  ;;  %v676_v4 = vpop.permute.xlu0 %675  ;;  %v679_v11 = vpop.permute.xlu1 %678 }
 0x132   : > { %v3061_v58 = vrot.slane %v2374_v63, %v2276_v26  ;;  %v3062_v47 = vrot.slane %v2379_v0, %v2278_v27  ;;  %v3063_v63 = vrot.slane %v2379_v0, %v2280_v28  ;;  %v1388_v21 = vrot.slane %v2680_v48, %v2274_v25 }
 0x133   : > { %v573_v29 = vpack.c.bf16 %v569_v14, %v569_v14  ;;  %v1350_v60 = vpack.c.bf16 %v1346_v36, %v1346_v36  ;;  %v1578_v22 = vsel %vm1539_vm2, %v574_v34, %v1496_v51  ;;  %v2702_v50 = vsel %vm1539_vm2, %v1347_v24, %v1696_v43 }
 0x134   : > { %v621_v3 = vmul.f32 %v3061_v58, %v589_v62  ;;  %v1375_v18 = vmul.f32 %v3062_v47, %v588_v57  ;;  %v1376_v42 = vmul.f32 %v3063_v63, %v589_v62  ;;  %1815 = vmatprep.subr.bf16.mxu0 %v1578_v22  ;;  %v650_v57 = vrot.slane %v2646_v38, %v2274_v25 }
 0x135   : > { %v624_v51 = vpack.c.bf16 %v620_v7, %v620_v7  ;;  %v685_v34 = vsel %vm684_vm8, %v679_v11, %v2652_v5  ;;  %v1574_v14 = vsel %vm1539_vm2, %v573_v29, %v1495_v9  ;;  %v2708_v61 = vsel %vm1539_vm2, %v1350_v60, %v1699_v52  ;;  %v2710_v62 = vpop.permute.xlu0 %631  ;;  %v536_v36 = vpop.permute.xlu1 %535 }
 0x136   : > { %v625_v0 = vpack.c.bf16 %v621_v3, %v621_v3  ;;  %1816 = vmatpush1.bf16.msra.mxu0 %v1574_v14  ;;  %v1400_v58 = vrot.slane %v2680_v48, %v2276_v26  ;;  %v801_v24 = vrot.slane %v2692_v49, %v2278_v27  ;;  %v658_v7 = vrot.slane %v2646_v38, %v2280_v28 }
 0x137   : > { %v1379_v43 = vpack.c.bf16 %v1375_v18, %v1375_v18  ;;  %v692_v9 = vsel %vm684_vm8, %v676_v4, %v679_v11  ;;  %v539_v52 = vsel %vm537_vm7, %v2601_v56, %v536_v36  ;;  %v540_v3 = vsel %vm537_vm7, %v536_v36, %v529_v30 }
 0x138   : > { %v1380_v47 = vpack.c.bf16 %v1376_v42, %v1376_v42  ;;  %v717_v29 = vmul.f32 %v703_v17, %v685_v34  ;;  %v571_v60 = vmul.f32 %v560_v31, %v539_v52  ;;  %v572_v18 = vmul.f32 %v564_v10, %v540_v3 }
 0x139   : > { %v1497_v22 = vrot.slane %v624_v51, 4  ;;  %v1436_v56 = vmul.f32 %v1419_v44, %v685_v34  ;;  %v1344_v30 = vmul.f32 %v1330_v13, %v539_v52  ;;  %v1345_v17 = vmul.f32 %v1334_v53, %v540_v3  ;;  %v683_v44 = vpop.permute.xlu0 %682  ;;  %v630_v51 = vpop.permute.xlu1 %629 }
 0x13a   : > { %v3064_v31 = vrot.slane %v2447_v12, %v2274_v25  ;;  %v3065_v40 = vrot.slane %v2471_v39, %v2276_v26  ;;  %v575_v63 = vpack.c.bf16 %v571_v60, %v571_v60  ;;  %v576_v42 = vpack.c.bf16 %v572_v18, %v572_v18 }
 0x13b   : > { %v1498_v34 = vrot.slane %v625_v0, 4  ;;  %v1697_v14 = vrot.slane %v1379_v43, 4  ;;  %v1348_v13 = vpack.c.bf16 %v1344_v30, %v1344_v30  ;;  %v1349_v36 = vpack.c.bf16 %v1345_v17, %v1345_v17 }
 0x13c   : > { %v716_v11 = vmul.f32 %v3064_v31, %v692_v9  ;;  %v1439_v10 = vmul.f32 %v3065_v40, %v692_v9  ;;  %v1698_v52 = vrot.slane %v1380_v47, 4  ;;  %v721_v2 = vpack.c.bf16 %v717_v29, %v717_v29 }
 0x13d   : > { %v686_v53 = vsel %vm684_vm8, %v2652_v5, %v683_v44  ;;  %v687_v3 = vsel %vm684_vm8, %v683_v44, %v676_v4  ;;  %v636_v31 = vsel %vm635_vm9, %v630_v51, %v2710_v62  ;;  %v1586_v9 = vsel %vm1539_vm2, %v576_v42, %v1498_v34  ;;  %v2756_v47 = vpop.permute.xlu0 %778  ;;  %v627_v29 = vpop.permute.xlu1 %626 }
 0x13e   : > { %v1582_v60 = vsel %vm1539_vm2, %v575_v63, %v1497_v22  ;;  %v2754_v18 = vsel %vm1539_vm2, %v1348_v13, %v1697_v14  ;;  %v720_v0 = vpack.c.bf16 %v716_v11, %v716_v11  ;;  %v1440_v43 = vpack.c.bf16 %v1436_v56, %v1436_v56  ;;  %1856 = vmatprep.subr.bf16.mxu1 %v1586_v9 }
 0x13f   : > { %v1443_v30 = vpack.c.bf16 %v1439_v10, %v1439_v10  ;;  %v662_v5 = vrot.slane %v2646_v38, %v2276_v26  ;;  %v668_v4 = vmul.f32 %v654_v37, %v636_v31  ;;  %v1405_v17 = vmul.f32 %v1388_v21, %v636_v31  ;;  %1857 = vmatpush1.bf16.msra.mxu1 %v1582_v60  ;;  %v2793_v31 = vld [vmem:[%s3042_s3 + $0x20] ss:$8 sm:$0xf] }
 0x140   : > { %v643_v22 = vsel %vm635_vm9, %v627_v29, %v630_v51  ;;  %v2765_v40 = vsel %vm1539_vm2, %v1349_v36, %v1698_v52  ;;  %v1504_v56 = vrot.slane %v721_v2, 4  ;;  %v718_v11 = vmul.f32 %v707_v6, %v686_v53 }
 0x141   : > { %v719_v10 = vmul.f32 %v711_v54, %v687_v3  ;;  %v1437_v37 = vmul.f32 %v1423_v32, %v686_v53  ;;  %v672_v21 = vpack.c.bf16 %v668_v4, %v668_v4  ;;  %v1409_v63 = vpack.c.bf16 %v1405_v17, %v1405_v17  ;;  %v774_v13 = vpop.permute.xlu0 %773  ;;  %v777_v6 = vpop.permute.xlu1 %776 }
 0x142   : > { %v667_v42 = vmul.f32 %v650_v57, %v643_v22  ;;  %v1408_v44 = vmul.f32 %v1400_v58, %v643_v22  ;;  %v1503_v51 = vrot.slane %v720_v0, 4  ;;  %v1704_v34 = vrot.slane %v1440_v43, 4 }
 0x143   : > { %v1438_v14 = vmul.f32 %v1427_v8, %v687_v3  ;;  %v1392_v12 = vrot.slane %v2680_v48, %v2278_v27  ;;  %v1707_v54 = vrot.slane %v1443_v30, 4  ;;  %v1594_v32 = vsel %vm1539_vm2, %v672_v21, %v1504_v56 }
 0x144   : > { %v671_v36 = vpack.c.bf16 %v667_v42, %v667_v42  ;;  %v1412_v52 = vpack.c.bf16 %v1408_v44, %v1408_v44  ;;  %v722_v2 = vpack.c.bf16 %v718_v11, %v718_v11  ;;  %1817 = vmatprep.subr.bf16.mxu0 %v1594_v32  ;;  %v783_v57 = vsel %vm782_vm10, %v777_v6, %v2756_v47 }
 0x145   : > { %v1396_v58 = vrot.slane %v2680_v48, %v2280_v28  ;;  %v2787_v39 = vsel %vm1539_vm2, %v1409_v63, %v1704_v34  ;;  %v723_v8 = vpack.c.bf16 %v719_v10, %v719_v10  ;;  %v1441_v53 = vpack.c.bf16 %v1437_v37, %v1437_v37  ;;  %v2800_v48 = vpop.permute.xlu0 %729  ;;  %v634_v43 = vpop.permute.xlu1 %633 }
 0x146   : > { %v1590_v3 = vsel %vm1539_vm2, %v671_v36, %v1503_v51  ;;  %v2796_v9 = vsel %vm1539_vm2, %v1412_v52, %v1707_v54  ;;  %v1442_v60 = vpack.c.bf16 %v1438_v14, %v1438_v14  ;;  %v797_v0 = vrot.slane %v2692_v49, %v2274_v25 }
 0x147   : > { %1818 = vmatpush1.bf16.msra.mxu0 %v1590_v3  ;;  %v790_v30 = vsel %vm782_vm10, %v774_v13, %v777_v6  ;;  %v815_v4 = vmul.f32 %v801_v24, %v783_v57  ;;  %v637_v17 = vsel %vm635_vm9, %v2710_v62, %v634_v43  ;;  %v638_v22 = vsel %vm635_vm9, %v634_v43, %v627_v29 }
 0x148   : > { %v669_v56 = vmul.f32 %v658_v7, %v637_v17  ;;  %v670_v11 = vmul.f32 %v662_v5, %v638_v22  ;;  %v1406_v10 = vmul.f32 %v1392_v12, %v637_v17  ;;  %v752_v37 = vrot.slane %v2793_v31, %v2278_v27 }
 0x149   : > { %v1505_v21 = vrot.slane %v722_v2, 4  ;;  %v1506_v63 = vrot.slane %v723_v8, 4  ;;  %v1705_v42 = vrot.slane %v1441_v53, 4  ;;  %v1407_v44 = vmul.f32 %v1396_v58, %v638_v22  ;;  %v781_v62 = vpop.permute.xlu0 %780  ;;  %v728_v6 = vpop.permute.xlu1 %727 }
 0x14a   : > { %v814_v51 = vmul.f32 %v797_v0, %v790_v30  ;;  %v673_v24 = vpack.c.bf16 %v669_v56, %v669_v56  ;;  %v674_v34 = vpack.c.bf16 %v670_v11, %v670_v11  ;;  %v1410_v14 = vpack.c.bf16 %v1406_v10, %v1406_v10 }
 0x14b   : > { %v1706_v29 = vrot.slane %v1442_v60, 4  ;;  %v819_v54 = vpack.c.bf16 %v815_v4, %v815_v4  ;;  %v1411_v36 = vpack.c.bf16 %v1407_v44, %v1407_v44  ;;  %v2816_v38 = vsel %vm733_vm11, %v728_v6, %v2800_v48 }
 0x14c   : > { %v766_v7 = vmul.f32 %v752_v37, %v2816_v38  ;;  %v748_v5 = vrot.slane %v2793_v31, %v2274_v25  ;;  %v1602_v12 = vsel %vm1539_vm2, %v674_v34, %v1506_v63  ;;  %v1598_v52 = vsel %vm1539_vm2, %v673_v24, %v1505_v21 }
 0x14d   : > { %v2824_v32 = vsel %vm1539_vm2, %v1410_v14, %v1705_v42  ;;  %v2827_v2 = vsel %vm1539_vm2, %v1411_v36, %v1706_v29  ;;  %v818_v57 = vpack.c.bf16 %v814_v51, %v814_v51  ;;  %v805_v58 = vrot.slane %v2692_v49, %v2280_v28  ;;  %1858 = vmatprep.subr.bf16.mxu1 %v1602_v12  ;;  %v877_v3 = vpop.permute.xlu0 %876  ;;  %v725_v60 = vpop.permute.xlu1 %724  ;;  %v2055_v29 = vld [vmem:[%s3042_s3 + $0x22] ss:$8 sm:$0xf] }
 0x14e   : > { %v809_v8 = vrot.slane %v2692_v49, %v2276_v26  ;;  %v770_v53 = vpack.c.bf16 %v766_v7, %v766_v7  ;;  %v1512_v0 = vrot.slane %v819_v54, 4  ;;  %v784_v43 = vsel %vm782_vm10, %v2756_v47, %v781_v62  ;;  %1859 = vmatpush1.bf16.msra.mxu1 %v1598_v52  ;;  %v2056_v49 = vld [vmem:[%s3042_s3 + $0x23] ss:$8 sm:$0xf] }
 0x14f   : > { %v785_v30 = vsel %vm782_vm10, %v781_v62, %v774_v13  ;;  %v2837_v4 = vsel %vm733_vm11, %v725_v60, %v728_v6  ;;  %v1511_v56 = vrot.slane %v818_v57, 4  ;;  %v816_v11 = vmul.f32 %v805_v58, %v784_v43 }
 0x150   : > { %v765_v17 = vmul.f32 %v748_v5, %v2837_v4  ;;  %v1610_v22 = vsel %vm1539_vm2, %v770_v53, %v1512_v0  ;;  %v817_v10 = vmul.f32 %v809_v8, %v785_v30  ;;  %v899_v21 = vrot.slane %v2056_v49, %v2278_v27 }
 0x151   : > { %1819 = vmatprep.subr.bf16.mxu0 %v1610_v22  ;;  %v872_v47 = vpop.permute.xlu0 %871  ;;  %v875_v13 = vpop.permute.xlu1 %874  ;;  %v756_v44 = vrot.slane %v2793_v31, %v2280_v28  ;;  %v760_v51 = vrot.slane %v2793_v31, %v2276_v26  ;;  %v820_v24 = vpack.c.bf16 %v816_v11, %v816_v11  ;;  %v895_v14 = vrot.slane %v2056_v49, %v2274_v25 }
 0x152   : > { %v769_v37 = vpack.c.bf16 %v765_v17, %v765_v17  ;;  %v881_v63 = vsel %vm880_vm12, %v875_v13, %v877_v3  ;;  %v821_v34 = vpack.c.bf16 %v817_v10, %v817_v10  ;;  %v888_v54 = vsel %vm880_vm12, %v872_v47, %v875_v13 }
 0x153   : > { %v913_v36 = vmul.f32 %v899_v21, %v881_v63  ;;  %v903_v52 = vrot.slane %v2056_v49, %v2280_v28  ;;  %v907_v57 = vrot.slane %v2056_v49, %v2276_v26  ;;  %v850_v58 = vrot.slane %v2055_v29, %v2278_v27 }
 0x154   : > { %v1606_v42 = vsel %vm1539_vm2, %v769_v37, %v1511_v56  ;;  %v1514_v8 = vrot.slane %v821_v34, 4  ;;  %v912_v53 = vmul.f32 %v895_v14, %v888_v54  ;;  %v1513_v17 = vrot.slane %v820_v24, 4 }
 0x155   : > { %1820 = vmatpush1.bf16.msra.mxu0 %v1606_v42  ;;  %v828_v62 = vpop.permute.xlu0 %827  ;;  %v732_v6 = vpop.permute.xlu1 %731  ;;  %v917_v22 = vpack.c.bf16 %v913_v36, %v913_v36  ;;  %v846_v37 = vrot.slane %v2055_v29, %v2274_v25  ;;  %vm1155_vm1 = vcmask 973824   ;;  %vm1106_vm3 = vcmask 982016  }
 0x156   : > { %v2858_v7 = vsel %vm733_vm11, %v2800_v48, %v732_v6  ;;  %v2861_v31 = vsel %vm733_vm11, %v732_v6, %v725_v60  ;;  %v2871_v60 = vld [vmem:[%s3042_s3 + $0x25] ss:$8 sm:$0xf]  ;;  %v916_v42 = vpack.c.bf16 %v912_v53, %v912_v53 }
 0x157   : > { %v767_v5 = vmul.f32 %v756_v44, %v2858_v7  ;;  %v768_v12 = vmul.f32 %v760_v51, %v2861_v31  ;;  %v979_v63 = vrot.slane %v2871_v60, %v2278_v27  ;;  %v1520_v34 = vrot.slane %v917_v22, 4 }
 0x158   : > { %v975_v54 = vrot.slane %v2871_v60, %v2274_v25 }
 0x159   : > { %v771_v0 = vpack.c.bf16 %v767_v5, %v767_v5  ;;  %v772_v43 = vpack.c.bf16 %v768_v12, %v768_v12  ;;  %v879_v48 = vpop.permute.xlu0 %878  ;;  %v826_v30 = vpop.permute.xlu1 %825  ;;  %v854_v5 = vrot.slane %v2055_v29, %v2280_v28  ;;  %v858_v12 = vrot.slane %v2055_v29, %v2276_v26 }
 0x15a   : > { %v882_v56 = vsel %vm880_vm12, %v877_v3, %v879_v48  ;;  %v883_v49 = vsel %vm880_vm12, %v879_v48, %v872_v47  ;;  %v832_v11 = vsel %vm831_vm13, %v826_v30, %v828_v62  ;;  %v2884_v47 = vld [vmem:[%s3042_s3 + $0x24] ss:$8 sm:$0xf] }
 0x15b   : > { %v1618_v10 = vsel %vm1539_vm2, %v772_v43, %v1514_v8  ;;  %v864_v13 = vmul.f32 %v850_v58, %v832_v11  ;;  %v1614_v21 = vsel %vm1539_vm2, %v771_v0, %v1513_v17  ;;  %v914_v44 = vmul.f32 %v903_v52, %v882_v56 }
 0x15c   : > { %1860 = vmatprep.subr.bf16.mxu1 %v1618_v10  ;;  %v915_v51 = vmul.f32 %v907_v57, %v883_v49  ;;  %v944_v57 = vrot.slane %v2884_v47, %v2274_v25  ;;  %v993_v58 = vmul.f32 %v979_v63, %v2205_v19  ;;  %v1519_v8 = vrot.slane %v916_v42, 4 }
 0x15d   : > { %v924_v24 = vpop.permute.xlu0 %923  ;;  %1861 = vmatpush1.bf16.msra.mxu1 %v1614_v21  ;;  %v823_v3 = vpop.permute.xlu1 %822  ;;  %v868_v14 = vpack.c.bf16 %v864_v13, %v864_v13  ;;  %v918_v53 = vpack.c.bf16 %v914_v44, %v914_v44  ;;  %v992_v56 = vmul.f32 %v975_v54, %v2199_v15  ;;  %v948_v19 = vrot.slane %v2884_v47, %v2278_v27 }
 0x15e   : > { %v839_v6 = vsel %vm831_vm13, %v823_v3, %v826_v30  ;;  %v919_v0 = vpack.c.bf16 %v915_v51, %v915_v51  ;;  %v997_v13 = vpack.c.bf16 %v993_v58, %v993_v58  ;;  %v987_v21 = vrot.slane %v2871_v60, %v2276_v26 }
 0x15f   : > { %v863_v36 = vmul.f32 %v846_v37, %v839_v6  ;;  %v1626_v52 = vsel %vm1539_vm2, %v868_v14, %v1520_v34  ;;  %v1521_v63 = vrot.slane %v918_v53, 4  ;;  %v2910_v34 = vld [vmem:[%s3042_s3 + $0x27] ss:$8 sm:$0xf]  ;;  %v996_v14 = vpack.c.bf16 %v992_v56, %v992_v56 }
 0x160   : > { %1821 = vmatprep.subr.bf16.mxu0 %v1626_v52  ;;  %v1522_v42 = vrot.slane %v919_v0, 4  ;;  %v983_v6 = vrot.slane %v2871_v60, %v2280_v28  ;;  %v995_v52 = vmul.f32 %v987_v21, %v2201_v16  ;;  %v1077_v58 = vrot.slane %v2910_v34, %v2278_v27 }
 0x161   : > { %v867_v43 = vpack.c.bf16 %v863_v36, %v863_v36  ;;  %v921_v48 = vpop.permute.xlu0 %920  ;;  %v830_v30 = vpop.permute.xlu1 %829  ;;  %v1528_v53 = vrot.slane %v997_v13, 4  ;;  %v1527_v0 = vrot.slane %v996_v14, 4  ;;  %v956_v16 = vrot.slane %v2884_v47, %v2276_v26 }
 0x162   : > { %v937_v17 = vsel %vm929_vm14, %v921_v48, %v924_v24  ;;  %v833_v22 = vsel %vm831_vm13, %v828_v62, %v830_v30  ;;  %v834_v29 = vsel %vm831_vm13, %v830_v30, %v823_v3  ;;  %v999_v56 = vpack.c.bf16 %v995_v52, %v995_v52 }
 0x163   : > { %v865_v49 = vmul.f32 %v854_v5, %v833_v22  ;;  %v866_v11 = vmul.f32 %v858_v12, %v834_v29  ;;  %v1622_v10 = vsel %vm1539_vm2, %v867_v43, %v1519_v8  ;;  %v961_v37 = vmul.f32 %v944_v57, %v937_v17  ;;  %v2931_v29 = vld [vmem:[%s3042_s3 + $0x26] ss:$8 sm:$0xf] }
 0x164   : > { %1822 = vmatpush1.bf16.msra.mxu0 %v1622_v10  ;;  %v994_v43 = vmul.f32 %v983_v6, %v2209_v20  ;;  %v952_v17 = vrot.slane %v2884_v47, %v2280_v28  ;;  %v1073_v20 = vrot.slane %v2910_v34, %v2274_v25  ;;  %v1024_v52 = vrot.slane %v2931_v29, %v2274_v25 }
 0x165   : > { %v869_v62 = vpack.c.bf16 %v865_v49, %v865_v49  ;;  %v870_v44 = vpack.c.bf16 %v866_v11, %v866_v11  ;;  %v2904_v51 = vpop.permute.xlu0 %1053  ;;  %v926_v15 = vpop.permute.xlu1 %925  ;;  %v965_v12 = vpack.c.bf16 %v961_v37, %v961_v37 }
 0x166   : > { %v930_v3 = vsel %vm929_vm14, %v924_v24, %v926_v15  ;;  %v998_v13 = vpack.c.bf16 %v994_v43, %v994_v43 }
 0x167   : > { %v962_v54 = vmul.f32 %v948_v19, %v930_v3  ;;  %v1634_v36 = vsel %vm1539_vm2, %v870_v44, %v1522_v42  ;;  %v1630_v5 = vsel %vm1539_vm2, %v869_v62, %v1521_v63  ;;  %v1638_v22 = vsel %vm1539_vm2, %v965_v12, %v1527_v0 }
 0x168   : > { %1862 = vmatprep.subr.bf16.mxu1 %v1634_v36  ;;  %v1028_v42 = vrot.slane %v2931_v29, %v2278_v27  ;;  %v1530_v62 = vrot.slane %v999_v56, 4  ;;  %v1529_v12 = vrot.slane %v998_v13, 4 }
 0x169   : > { %v966_v24 = vpack.c.bf16 %v962_v54, %v962_v54  ;;  %v1050_v57 = vpop.permute.xlu0 %1049  ;;  %1863 = vmatpush1.bf16.msra.mxu1 %v1630_v5  ;;  %v1052_v8 = vpop.permute.xlu1 %1051 }
 0x16a   : > { %v1059_v60 = vsel %vm1057_vm15, %v1052_v8, %v2904_v51  ;;  %v1058_v19 = vsel %vm1057_vm15, %v1050_v57, %v1052_v8 }
 0x16b   : > { %v1642_v30 = vsel %vm1539_vm2, %v966_v24, %v1528_v53  ;;  %v1091_v49 = vmul.f32 %v1077_v58, %v1059_v60  ;;  %v1090_v44 = vmul.f32 %v1073_v20, %v1058_v19  ;;  %v1085_v53 = vrot.slane %v2910_v34, %v2276_v26 }
 0x16c   : > { %1823 = vmatprep.subr.bf16.mxu0 %v1642_v30  ;;  %v1081_v30 = vrot.slane %v2910_v34, %v2280_v28 }
 0x16d   : > { %v1005_v11 = vpop.permute.xlu0 %1004  ;;  %v928_v10 = vpop.permute.xlu1 %927  ;;  %1824 = vmatpush1.bf16.msra.mxu0 %v1638_v22  ;;  %v1095_v3 = vpack.c.bf16 %v1091_v49, %v1091_v49  ;;  %v1094_v58 = vpack.c.bf16 %v1090_v44, %v1090_v44  ;;  %v2062_v22 = vld [vmem:[%s3042_s3 + $0x41] ss:$8 sm:$0xf]  ;;  %v2061_v44 = vld [vmem:[%s3042_s3 + $0x40] ss:$8 sm:$0xf] }
 0x16e   : > { %v931_v47 = vsel %vm929_vm14, %v926_v15, %v928_v10  ;;  %v932_v37 = vsel %vm929_vm14, %v928_v10, %v921_v48 }
 0x16f   : > { %v963_v21 = vmul.f32 %v952_v17, %v931_v47  ;;  %v964_v63 = vmul.f32 %v956_v16, %v932_v37  ;;  %v1536_v8 = vrot.slane %v1095_v3, 4  ;;  %v1535_v10 = vrot.slane %v1094_v58, 4 }
 0x170   : > { %v1179_v58 = vrot.slane %v2062_v22, %v2280_v28 }
 0x171   : > { %v967_v14 = vpack.c.bf16 %v963_v21, %v963_v21  ;;  %v968_v6 = vpack.c.bf16 %v964_v63, %v964_v63  ;;  %v1056_v54 = vpop.permute.xlu0 %1055  ;;  %v1003_v36 = vpop.permute.xlu1 %1002 }
 0x172   : > { %v1010_v5 = vsel %vm1008_vm0, %v1003_v36, %v1005_v11  ;;  %v1066_v17 = vsel %vm1057_vm15, %v1056_v54, %v1050_v57  ;;  %v1060_v56 = vsel %vm1057_vm15, %v2904_v51, %v1056_v54  ;;  %v1175_v57 = vrot.slane %v2062_v22, %v2278_v27 }
 0x173   : > { %v1042_v15 = vmul.f32 %v1028_v42, %v1010_v5  ;;  %v1650_v48 = vsel %vm1539_vm2, %v968_v6, %v1530_v62  ;;  %v1646_v24 = vsel %vm1539_vm2, %v967_v14, %v1529_v12  ;;  %v1093_v19 = vmul.f32 %v1085_v53, %v1066_v17 }
 0x174   : > { %1864 = vmatprep.subr.bf16.mxu1 %v1650_v48  ;;  %v1092_v13 = vmul.f32 %v1081_v30, %v1060_v56  ;;  %v1032_v51 = vrot.slane %v2931_v29, %v2280_v28  ;;  %v1036_v42 = vrot.slane %v2931_v29, %v2276_v26  ;;  %v1171_v62 = vrot.slane %v2062_v22, %v2274_v25 }
 0x175   : > { %v1046_v60 = vpack.c.bf16 %v1042_v15, %v1042_v15  ;;  %v1152_v0 = vpop.permute.xlu0 %1151  ;;  %1865 = vmatpush1.bf16.msra.mxu1 %v1646_v24  ;;  %v1001_v43 = vpop.permute.xlu1 %1000  ;;  %v1097_v3 = vpack.c.bf16 %v1093_v19, %v1093_v19 }
 0x176   : > { %v1009_v16 = vsel %vm1008_vm0, %v1001_v43, %v1003_v36  ;;  %v1096_v5 = vpack.c.bf16 %v1092_v13, %v1092_v13 }
 0x177   : > { %v1041_v20 = vmul.f32 %v1024_v52, %v1009_v16  ;;  %v1658_v49 = vsel %vm1539_vm2, %v1046_v60, %v1536_v8  ;;  %v1126_v52 = vrot.slane %v2061_v44, %v2278_v27  ;;  %v1183_v8 = vrot.slane %v2062_v22, %v2276_v26 }
 0x178   : > { %1825 = vmatprep.subr.bf16.mxu0 %v1658_v49  ;;  %v1538_v53 = vrot.slane %v1097_v3, 4  ;;  %v1134_v3 = vrot.slane %v2061_v44, %v2276_v26 }
 0x179   : > { %v1045_v47 = vpack.c.bf16 %v1041_v20, %v1041_v20  ;;  %v1148_v34 = vpop.permute.xlu0 %1147  ;;  %v1150_v37 = vpop.permute.xlu1 %1149  ;;  %v1537_v20 = vrot.slane %v1096_v5, 4 }
 0x17a   : > { %v1157_v21 = vsel %vm1155_vm1, %v1150_v37, %v1152_v0  ;;  %v1156_v14 = vsel %vm1155_vm1, %v1148_v34, %v1150_v37 }
 0x17b   : > { %v1654_v63 = vsel %vm1539_vm2, %v1045_v47, %v1535_v10  ;;  %v1189_v6 = vmul.f32 %v1175_v57, %v1157_v21  ;;  %v1188_v24 = vmul.f32 %v1171_v62, %v1156_v14  ;;  %v1122_v47 = vrot.slane %v2061_v44, %v2274_v25 }
 0x17c   : > { %1826 = vmatpush1.bf16.msra.mxu0 %v1654_v63  ;;  %v1130_v62 = vrot.slane %v2061_v44, %v2280_v28 }
 0x17d   : > { %v1103_v54 = vpop.permute.xlu0 %1102  ;;  %v1007_v36 = vpop.permute.xlu1 %1006  ;;  %v1193_v60 = vpack.c.bf16 %v1189_v6, %v1189_v6  ;;  %v1192_v57 = vpack.c.bf16 %v1188_v24, %v1188_v24 }
 0x17e   : > { %v1011_v12 = vsel %vm1008_vm0, %v1005_v11, %v1007_v36  ;;  %v1017_v15 = vsel %vm1008_vm0, %v1007_v36, %v1001_v43 }
 0x17f   : > { %v1043_v48 = vmul.f32 %v1032_v51, %v1011_v12  ;;  %v1044_v29 = vmul.f32 %v1036_v42, %v1017_v15  ;;  %v1673_v37 = vrot.slane %v1193_v60, 4  ;;  %v1672_v14 = vrot.slane %v1192_v57, 4 }
 0x181   : > { %v1047_v30 = vpack.c.bf16 %v1043_v48, %v1043_v48  ;;  %v1048_v17 = vpack.c.bf16 %v1044_v29, %v1044_v29  ;;  %v1154_v16 = vpop.permute.xlu0 %1153  ;;  %v1101_v56 = vpop.permute.xlu1 %1100 }
 0x182   : > { %v1158_v11 = vsel %vm1155_vm1, %v1152_v0, %v1154_v16  ;;  %v1164_v43 = vsel %vm1155_vm1, %v1154_v16, %v1148_v34  ;;  %v1108_v49 = vsel %vm1106_vm3, %v1101_v56, %v1103_v54 }
 0x183   : > { %v1140_v10 = vmul.f32 %v1126_v52, %v1108_v49  ;;  %v1666_v19 = vsel %vm1539_vm2, %v1048_v17, %v1538_v53  ;;  %v1662_v22 = vsel %vm1539_vm2, %v1047_v30, %v1537_v20  ;;  %v1190_v13 = vmul.f32 %v1179_v58, %v1158_v11 }
 0x184   : > { %1866 = vmatprep.subr.bf16.mxu1 %v1666_v19  ;;  %v1191_v21 = vmul.f32 %v1183_v8, %v1164_v43 }
 0x185   : > { %v1144_v63 = vpack.c.bf16 %v1140_v10, %v1140_v10  ;;  %1867 = vmatpush1.bf16.msra.mxu1 %v1662_v22  ;;  %v1099_v51 = vpop.permute.xlu1 %1098  ;;  %v1194_v6 = vpack.c.bf16 %v1190_v13, %v1190_v13 }
 0x186   : > { %v1107_v0 = vsel %vm1106_vm3, %v1099_v51, %v1101_v56  ;;  %v1195_v36 = vpack.c.bf16 %v1191_v21, %v1191_v21 }
 0x187   : > { %v1139_v34 = vmul.f32 %v1122_v47, %v1107_v0  ;;  %v1714_v42 = vsel %vm1539_vm2, %v1144_v63, %v1673_v37  ;;  %v1674_v58 = vrot.slane %v1194_v6, 4 }
 0x188   : > { %1827 = vmatprep.subr.bf16.mxu0 %v1714_v42  ;;  %v1675_v8 = vrot.slane %v1195_v36, 4 }
 0x189   : > { %v1143_v5 = vpack.c.bf16 %v1139_v34, %v1139_v34  ;;  %v1105_v12 = vpop.permute.xlu1 %1104 }
 0x18a   : > { %v1109_v15 = vsel %vm1106_vm3, %v1103_v54, %v1105_v12  ;;  %v1115_v48 = vsel %vm1106_vm3, %v1105_v12, %v1099_v51  ;;  %v2071_v54 = vld [vmem:[%s3042_s3 + $0x62] ss:$8 sm:$0xf] }
 0x18b   : > { %v1141_v29 = vmul.f32 %v1130_v62, %v1109_v15  ;;  %v1142_v52 = vmul.f32 %v1134_v3, %v1115_v48  ;;  %v1710_v24 = vsel %vm1539_vm2, %v1143_v5, %v1672_v14  ;;  %v1450_v17 = vrot.slane %v2071_v54, %v2274_v25 }
 0x18c   : > { %1828 = vmatpush1.bf16.msra.mxu0 %v1710_v24 }
 0x18d   : > { %v1145_v53 = vpack.c.bf16 %v1141_v29, %v1141_v29  ;;  %v1146_v60 = vpack.c.bf16 %v1142_v52, %v1142_v52  ;;  %1829 = vmatprep.subr.bf16.mxu0 %v2559_v46  ;;  %v1454_v46 = vrot.slane %v2071_v54, %v2278_v27 }
 0x18f   : > { %v1722_v44 = vsel %vm1539_vm2, %v1146_v60, %v1675_v8  ;;  %v1718_v30 = vsel %vm1539_vm2, %v1145_v53, %v1674_v58  ;;  %v1468_v16 = vmul.f32 %v1454_v46, %v2858_v7 }
 0x190   : > { %1830 = vmatpush1.bf16.msra.mxu0 %v2474_v45  ;;  %1868 = vmatprep.subr.bf16.mxu1 %v1722_v44  ;;  %v1467_v45 = vmul.f32 %v1450_v17, %v2816_v38 }
 0x191   : > { %1831 = vmatprep.subr.bf16.mxu0 %v2649_v1  ;;  %1869 = vmatpush1.bf16.msra.mxu1 %v1718_v30  ;;  %v1462_v1 = vrot.slane %v2071_v54, %v2276_v26  ;;  %v1472_v27 = vpack.c.bf16 %v1468_v16, %v1468_v16 }
 0x192   : > { %1870 = vmatprep.subr.bf16.mxu1 %v2497_v23  ;;  %v1458_v23 = vrot.slane %v2071_v54, %v2280_v28  ;;  %v1471_v25 = vpack.c.bf16 %v1467_v45, %v1467_v45  ;;  %v2072_v28 = vcombine.low %v2582_v33, %v2582_v33 }
 0x194   : > { %1832 = vmatpush1.bf16.msra.mxu0 %v2577_v59  ;;  %v1470_v59 = vmul.f32 %v1462_v1, %v2837_v4  ;;  %v1800_v26 = vsel %vm1539_vm2, %v1471_v25, 0 }
 0x195   : > { %1833 = vmatprep.subr.bf16.mxu0 %v2754_v18  ;;  %1871 = vmatpush1.bf16.msra.mxu1 %v2593_v55  ;;  %v1469_v55 = vmul.f32 %v1458_v23, %v2861_v31 }
 0x196   : > { %1872 = vmatprep.subr.bf16.mxu1 %v2604_v41  ;;  %v1474_v41 = vpack.c.bf16 %v1470_v59, %v1470_v59 }
 0x198   : > { %1834 = vmatpush1.bf16.msra.mxu0 %v2702_v50 }
 0x199   : > { %1835 = vmatprep.subr.bf16.mxu0 %v2824_v32  ;;  %1873 = vmatpush1.bf16.msra.mxu1 %v2662_v35  ;;  %v1473_v35 = vpack.c.bf16 %v1469_v55, %v1469_v55 }
 0x19a   : > { %1874 = vmatprep.subr.bf16.mxu1 %v2708_v61 }
 0x19b   : > { %v1806_v50 = vsel %vm1539_vm2, %v1473_v35, 0 }
 0x19c   : > { %1836 = vmatpush1.bf16.msra.mxu0 %v2787_v39 }
 0x19d   : > { %2074 = vmatprep.subr.msk.bf16.mxu0 %vm1539_vm2, %v1472_v27  ;;  %1875 = vmatpush1.bf16.msra.mxu1 %v2765_v40 }
 0x19e   : > { %1876 = vmatprep.subr.bf16.mxu1 %v2796_v9 }
 0x1a0   : > { %1838 = vmatpush1.bf16.msra.mxu0 %v1800_v26 }
 0x1a1   : > { %1877 = vmatpush1.bf16.msra.mxu1 %v2827_v2 }
 0x1a2   : > { %2076 = vmatprep.subr.msk.bf16.mxu1 %vm1539_vm2, %v1474_v41 }
 0x1a3   : > { %1844 = vmatmul.mubr.bf16.vlgmr.msra.gmra.mrb[0].mxu0 %v2072_v28 }
 0x1a5   : > { %1879 = vmatpush1.bf16.msra.mxu1 %v1806_v50 }
 0x1a8   : > { %1885 = vmatmul.mubr.bf16.vlgmr.msra.gmra.mrb[0].mxu1 %v2072_v28 }
 0x276   : > { %v1845_v61 = vpop.f32.mrb[0].mxu0 }
 0x277   : > { %1893 = vst [vmem:[%s291_s29] sm:$0xff] %v1845_v61  ;;  %v1847_v33 = vpop.f32.mrb[1].mxu0 }
 0x278   : > { %1894 = vst [vmem:[%s291_s29 + $0x8] sm:$0xff] %v1847_v33  ;;  %v1897_v18 = vadd.f32 %v1847_v33, %v1845_v61  ;;  %v1849_v40 = vpop.f32.mrb[2].mxu0 }
 0x279   : > { %v1850_v39 = vpop.f32.mrb[3].mxu0 }
 0x27b   : > { %v1886_v9 = vpop.f32.mrb[0].mxu1 }
 0x27c   : > { %1895 = vst [vmem:[%s291_s29 + $0x10] sm:$0xff] %v1886_v9  ;;  %v1888_v38 = vpop.f32.mrb[1].mxu1  ;;  %v1898_v32 = vadd.f32 %v1897_v18, %v1886_v9 }
 0x27d   : > { %1896 = vst [vmem:[%s291_s29 + $0x18] sm:$0xff] %v1888_v38  ;;  %v1890_v2 = vpop.f32.mrb[2].mxu1 }
 0x27e   : > { %v1891_v4 = vpop.f32.mrb[3].mxu1  ;;  %v1899_v7 = vadd.f32 %v1898_v32, %v1888_v38 }
 0x280   : > { %1900 = vadd.xlane.f32.xlu0 %v1899_v7 }
 0x30d   : > { %v1901_v31 = vpop.xlane.xlu0 %1900 }
 0x30e   : > { %v1902_v56 = vmul.f32 0.001953125, %v1901_v31 }
 0x310   : > { %v1903_v20 = vsub.f32 %v1845_v61, %v1902_v56  ;;  %v1904_v11 = vsub.f32 %v1847_v33, %v1902_v56  ;;  %v1905_v43 = vsub.f32 %v1886_v9, %v1902_v56  ;;  %1907 = vst.msk [vmem:[%s295_s10] sm:$0xff] %vm929_vm14, %v1902_v56  ;;  %v1906_v49 = vsub.f32 %v1888_v38, %v1902_v56 }
 0x312   : > { %v1908_v10 = vmul.f32 %v1903_v20, %v1903_v20  ;;  %v1909_v19 = vmul.f32 %v1904_v11, %v1904_v11  ;;  %v1910_v47 = vmul.f32 %v1905_v43, %v1905_v43  ;;  %v1911_v22 = vmul.f32 %v1906_v49, %v1906_v49 }
 0x314   : > { %v1912_v57 = vadd.f32 %v1909_v19, %v1908_v10 }
 0x316   : > { %v1913_v37 = vadd.f32 %v1912_v57, %v1910_v47 }
 0x318   : > { %v1914_v13 = vadd.f32 %v1913_v37, %v1911_v22 }
 0x31a   : > { %1915 = vadd.xlane.f32.xlu1 %v1914_v13 }
 0x3a7   : > { %v1916_v21 = vpop.xlane.xlu1 %1915 }
 0x3a8   : > { %1917 = vst.msk [vmem:[%s299_s12] sm:$0xff] %vm929_vm14, %v1916_v21 }
 0x3a9 PF: > { %s18_s24 = sadd.s32 1, %s2117_s24  }
 0x3aa   : > { %p15_p4 = scmp.ge.s32.totalorder %s18_s24, 4  }
 0x3ac   :  { %17 = sbr.rel (!%p15_p4) target bundleno = 1 (0x1), region = 120 }

</bundles_post_ra>
